<compile_context>
chip_gen: v7x
topology: tpu7x:2x2x1
jax: 0.10.0
libtpu: 0.0.40
codegen_flags: <defaults>
</compile_context>

<pallas_src>
import numpy as np
import jax
import jax.numpy as jnp
from jax.experimental import pallas as pl
from jax.experimental.pallas import tpu as pltpu

EPS = 1e-5  # nn.BatchNorm2d default eps


def _round_up(v, m):
    return (v + m - 1) // m * m


# ----------------------------- fused kernel --------------------------------

def _make_block_kernel(N, H, W, n_stages, downsample, final):
    """Builds the fused BasicBlock kernel body for one static configuration."""
    Hp = H + 2                 # one zero row above / below every image
    L = Hp * W                 # flattened padded length of one image
    P = N * L                  # flattened padded length of the whole batch
    base = W + 1               # left margin so every 3x3 tap slice is in range
    HW = H * W
    f32 = jnp.float32
    inv_cnt = 1.0 / float(N * H * W)

    def kernel(*refs):
        refs = list(refs)
        out_ref = refs.pop()
        sel_ref = refs.pop()
        x_ref, valid_ref, mask_l_ref, mask_r_ref = refs[0:4]
        pos = 4
        stages = []
        for _ in range(n_stages):
            stages.append(tuple(refs[pos:pos + 4]))
            pos += 4
        if downsample:
            dsw_ref, dsb_ref = refs[pos], refs[pos + 1]
            pos += 2
        bnfg_ref, bnfb_ref = refs[pos], refs[pos + 1]

        valid = valid_ref[...]     # (1, P): 1 at real pixels, 0 at pad rows
        mask_l = mask_l_ref[...]   # (1, P): 0 where x == 0     (dx == 0 taps)
        mask_r = mask_r_ref[...]   # (1, P): 0 where x == W - 1 (dx == 2 taps)

        def with_margins(a):       # (C, P) -> (C, P + 2W + 2), zero margins
            c = a.shape[0]
            return jnp.concatenate(
                [jnp.zeros((c, base), f32), a, jnp.zeros((c, W + 1), f32)],
                axis=1)

        def conv3x3(a, wm_ref, b_ref):
            # single im2col matmul (Cout, 9*Cin) @ (9*Cin, P): bf16 in, f32 acc
            full = with_margins(a)
            taps = []
            for dy in range(3):
                for dx in range(3):
                    s0 = base + (dy - 1) * W + (dx - 1)
                    t = full[:, s0:s0 + P]          # contiguous lane slice
                    if dx == 0:
                        t = t * mask_l
                    elif dx == 2:
                        t = t * mask_r
                    taps.append(t)
            x9 = jnp.concatenate(taps, axis=0).astype(jnp.bfloat16)
            y = jnp.dot(wm_ref[...], x9, preferred_element_type=f32)
            return y + b_ref[...]                    # (Cout, 1) bias broadcast

        def bn(v, g_ref, bt_ref):
            # training-mode BatchNorm2d: batch stats over the N*H*W valid lanes
            mean = jnp.sum(v * valid, axis=1, keepdims=True) * inv_cnt
            d = (v - mean) * valid
            var = jnp.sum(d * d, axis=1, keepdims=True) * inv_cnt
            inv = jax.lax.rsqrt(var + EPS)
            return (v - mean) * inv * g_ref[...] + bt_ref[...]

        # in-kernel zero padding: one zero row above / below every image
        xin = x_ref[...].astype(f32)                 # (C0, N*H*W)
        c0 = xin.shape[0]
        pieces = []
        for n in range(N):
            pieces.append(jnp.zeros((c0, W), f32))
            pieces.append(xin[:, n * HW:(n + 1) * HW])
            pieces.append(jnp.zeros((c0, W), f32))
        x_pad = jnp.concatenate(pieces, axis=1)      # (C0, P), zeros at pads

        out = x_pad
        for (wm_ref, b_ref, g_ref, bt_ref) in stages:   # conv -> relu -> bn
            out = conv3x3(out, wm_ref, b_ref)
            out = jnp.maximum(out, 0.0)
            out = bn(out, g_ref, bt_ref)
            out = out * valid                           # keep pad lanes zero

        if downsample:                                   # 1x1-conv residual
            res = jnp.dot(dsw_ref[...], x_pad.astype(jnp.bfloat16),
                          preferred_element_type=f32) + dsb_ref[...]
        else:                                            # identity residual
            res = x_pad

        out = jnp.maximum(out + res, 0.0)
        out = bn(out, bnfg_ref, bnfb_ref)

        if not final:
            # 2x2 max pool: elementwise max of 4 shifted lane slices
            c = out.shape[0]
            ext = jnp.concatenate([out, jnp.zeros((c, W + 1), f32)], axis=1)
            out = jnp.maximum(
                jnp.maximum(ext[:, 0:P], ext[:, 1:P + 1]),
                jnp.maximum(ext[:, W:P + W], ext[:, W + 1:P + W + 1]))

        # gather the wanted lanes (valid pixels / pooled window anchors) with a
        # 0/1 selection matmul -> lane-dense (C, 128 or 512) unmasked store
        out_ref[...] = jnp.dot(out, sel_ref[...],
                               preferred_element_type=f32,
                               precision=jax.lax.Precision.HIGHEST)

    return kernel


# ------------------------------ wrappers ------------------------------------

def _make_masks(N, H, W):
    L = (H + 2) * W
    P = N * L
    row = (np.arange(P) % L) // W
    col = np.arange(P) % W
    valid = ((row >= 1) & (row <= H)).astype(np.float32)
    mask_l = (col != 0).astype(np.float32)
    mask_r = (col != W - 1).astype(np.float32)
    return (jnp.asarray(valid[None, :]), jnp.asarray(mask_l[None, :]),
            jnp.asarray(mask_r[None, :]))


def _make_sel(N, H, W, final):
    L = (H + 2) * W
    P = N * L
    if final:
        Mo = N * H * W
        q = np.arange(Mo)
        n, r = q // (H * W), q % (H * W)
        y, x = r // W, r % W
        p = n * L + (y + 1) * W + x
    else:
        Ho, Wo = H // 2, W // 2
        Mo = N * Ho * Wo
        q = np.arange(Mo)
        n, r = q // (Ho * Wo), q % (Ho * Wo)
        yo, xo = r // Wo, r % Wo
        p = n * L + (2 * yo + 1) * W + 2 * xo
    sel = np.zeros((P, Mo), np.float32)
    sel[p, q] = 1.0
    return jnp.asarray(sel)


def _col(v, cp):
    v = jnp.asarray(v, jnp.float32).reshape(-1)
    return jnp.pad(v, (0, cp - v.shape[0])).reshape(cp, 1)


def basic_block_forward(x_nchw, params, kernel_size=3, final=False):
    """Pallas implementation of BasicBlock.forward. Input/output are NCHW."""
    N, C0, H, W = x_nchw.shape
    n_stages = {3: 1, 5: 2, 7: 3}[kernel_size]
    Cout = params["stages"][0][0].shape[-1]
    C0p = _round_up(C0, 8)          # pad channels to the 8-sublane tile
    Cp = _round_up(Cout, 8)
    Mo = N * H * W if final else N * (H // 2) * (W // 2)
    downsample = (Cout != C0)

    # NCHW -> channel-major flat (C, N*H*W): lanes hold the (n, y, x) pixels
    x2d = jnp.transpose(x_nchw, (1, 0, 2, 3)).reshape(C0, N * H * W)
    if C0p > C0:
        x2d = jnp.concatenate(
            [x2d, jnp.zeros((C0p - C0, N * H * W), x2d.dtype)], axis=0)

    valid, mask_l, mask_r = _make_masks(N, H, W)
    inputs = [x2d.astype(jnp.float32), valid, mask_l, mask_r]

    for s, (w, b, g, bt) in enumerate(params["stages"]):
        cin = w.shape[2]
        cinp = C0p if s == 0 else Cp
        wm = jnp.transpose(w.reshape(9, cin, Cout), (2, 0, 1))  # (Cout, 9, cin)
        wm = jnp.pad(wm, ((0, Cp - Cout), (0, 0), (0, cinp - cin)))
        wm = wm.reshape(Cp, 9 * cinp).astype(jnp.bfloat16)
        inputs += [wm, _col(b, Cp), _col(g, Cp), _col(bt, Cp)]

    if downsample:
        dsw = jnp.pad(params["ds_w"].T, ((0, Cp - Cout), (0, C0p - C0)))
        inputs += [dsw.astype(jnp.bfloat16), _col(params["ds_b"], Cp)]
    inputs += [_col(params["bnf_g"], Cp), _col(params["bnf_b"], Cp)]
    inputs.append(_make_sel(N, H, W, final))

    kernel = _make_block_kernel(N, H, W, n_stages, downsample, final)
    out = pl.pallas_call(
        kernel,
        out_shape=jax.ShapeDtypeStruct((Cp, Mo), jnp.float32),
        in_specs=[pl.BlockSpec(memory_space=pltpu.MemorySpace.VMEM)] * len(inputs),
        out_specs=pl.BlockSpec(memory_space=pltpu.MemorySpace.VMEM),
    )(*inputs)

    out = out[:Cout]
    if final:
        out = out.reshape(Cout, N, H, W)
    else:
        out = out.reshape(Cout, N, H // 2, W // 2)
    return jnp.transpose(out, (1, 0, 2, 3))            # back to NCHW


# ------------------------- deterministic params -----------------------------

def init_params(key, in_channels, out_channels, kernel_size):
    n_stages = {3: 1, 5: 2, 7: 3}[kernel_size]

    def bf16_round(a):       # store weights at bf16 resolution (MXU operands)
        return a.astype(jnp.bfloat16).astype(jnp.float32)

    params = {"stages": []}
    cin = in_channels
    for _ in range(n_stages):
        key, kw, kb, kg, kbt = jax.random.split(key, 5)
        w = bf16_round(0.1 * jax.random.normal(kw, (3, 3, cin, out_channels),
                                               jnp.float32))
        b = 0.1 * jax.random.normal(kb, (out_channels,), jnp.float32)
        g = 1.0 + 0.1 * jax.random.normal(kg, (out_channels,), jnp.float32)
        bt = 0.1 * jax.random.normal(kbt, (out_channels,), jnp.float32)
        params["stages"].append((w, b, g, bt))
        cin = out_channels
    key, kw, kb, kg, kbt = jax.random.split(key, 5)
    params["ds_w"] = bf16_round(
        0.1 * jax.random.normal(kw, (in_channels, out_channels), jnp.float32))
    params["ds_b"] = 0.1 * jax.random.normal(kb, (out_channels,), jnp.float32)
    params["bnf_g"] = 1.0 + 0.1 * jax.random.normal(kg, (out_channels,), jnp.float32)
    params["bnf_b"] = 0.1 * jax.random.normal(kbt, (out_channels,), jnp.float32)
    return params


# --------------------------- pure-JAX reference -----------------------------

def _ref_bn(x, g, b):
    m = jnp.mean(x, axis=(0, 1, 2), keepdims=True)
    v = jnp.mean((x - m) ** 2, axis=(0, 1, 2), keepdims=True)
    return (x - m) / jnp.sqrt(v + EPS) * g + b


def ref_forward(x_nchw, params, kernel_size=3, final=False):
    x = jnp.transpose(x_nchw, (0, 2, 3, 1))
    out = x
    for (w, b, g, beta) in params["stages"]:
        out = jax.lax.conv_general_dilated(
            out, w, window_strides=(1, 1), padding=((1, 1), (1, 1)),
            dimension_numbers=("NHWC", "HWIO", "NHWC"),
            precision=jax.lax.Precision.HIGHEST) + b[None, None, None, :]
        out = jnp.maximum(out, 0.0)
        out = _ref_bn(out, g, beta)
    if out.shape[-1] != x.shape[-1]:
        residual = jnp.einsum("nhwc,cd->nhwd", x, params["ds_w"],
                              precision=jax.lax.Precision.HIGHEST) + params["ds_b"]
    else:
        residual = x
    out = jnp.maximum(out + residual, 0.0)
    out = _ref_bn(out, params["bnf_g"], params["bnf_b"])
    if not final:
        N, H, W, C = out.shape
        out = out[:, :(H // 2) * 2, :(W // 2) * 2, :]
        out = out.reshape(N, H // 2, 2, W // 2, 2, C).max(axis=(2, 4))
    return jnp.transpose(out, (0, 3, 1, 2))


def _check(y, r, shape):
    assert y.shape == shape, y.shape
    err = jnp.abs(y - r)
    mx, mn = float(jnp.max(err)), float(jnp.mean(err))
    assert mx < 1.5e-1 and mn < 3e-2, (mx, mn)


# --------------------------------- main -------------------------------------

if __name__ == "__main__":
    key = jax.random.PRNGKey(0)
    kx, kp1, kp2, kp3 = jax.random.split(key, 4)

    # Config 1: kernel_size=3, channel change (downsample residual) + maxpool.
    x1 = jax.random.normal(kx, (2, 4, 16, 16), jnp.float32)   # NCHW
    p1 = init_params(kp1, in_channels=4, out_channels=8, kernel_size=3)
    y1 = jax.block_until_ready(basic_block_forward(x1, p1, kernel_size=3, final=False))
    _check(y1, ref_forward(x1, p1, kernel_size=3, final=False), (2, 8, 8, 8))

    # Config 2: kernel_size=5 (two conv stages), identity residual, final=True.
    x2 = jax.random.normal(kx, (2, 8, 16, 16), jnp.float32)
    p2 = init_params(kp2, in_channels=8, out_channels=8, kernel_size=5)
    y2 = jax.block_until_ready(basic_block_forward(x2, p2, kernel_size=5, final=True))
    _check(y2, ref_forward(x2, p2, kernel_size=5, final=True), (2, 8, 16, 16))

    # Config 3: kernel_size=7 (three conv stages), downsample + maxpool.
    x3 = jax.random.normal(kx, (2, 8, 16, 16), jnp.float32)
    p3 = init_params(kp3, in_channels=8, out_channels=16, kernel_size=7)
    y3 = jax.block_until_ready(basic_block_forward(x3, p3, kernel_size=7, final=False))
    _check(y3, ref_forward(x3, p3, kernel_size=7, final=False), (2, 16, 8, 8))

    print("KERNEL_OK")
</pallas_src>

<mosaic_0001>
module attributes {stable_mosaic.version = 11 : i64} {
  func.func @kernel(%arg0: memref<8x512xf32, #tpu.memory_space<vmem>>, %arg1: memref<1x576xf32, #tpu.memory_space<vmem>>, %arg2: memref<1x576xf32, #tpu.memory_space<vmem>>, %arg3: memref<1x576xf32, #tpu.memory_space<vmem>>, %arg4: memref<8x72xbf16, #tpu.memory_space<vmem>>, %arg5: memref<8x1xf32, #tpu.memory_space<vmem>>, %arg6: memref<8x1xf32, #tpu.memory_space<vmem>>, %arg7: memref<8x1xf32, #tpu.memory_space<vmem>>, %arg8: memref<8x8xbf16, #tpu.memory_space<vmem>>, %arg9: memref<8x1xf32, #tpu.memory_space<vmem>>, %arg10: memref<8x1xf32, #tpu.memory_space<vmem>>, %arg11: memref<8x1xf32, #tpu.memory_space<vmem>>, %arg12: memref<576x128xf32, #tpu.memory_space<vmem>>, %arg13: memref<8x128xf32, #tpu.memory_space<vmem>>) attributes {dimension_semantics = [], scalar_prefetch = 0 : i64, scratch_operands = 0 : i64, tpu.core_type = #tpu.core_type<tc>} {
    %c0 = arith.constant 0 : index
    %c0_0 = arith.constant 0 : index
    %0 = vector.load %arg1[%c0, %c0_0] : memref<1x576xf32, #tpu.memory_space<vmem>>, vector<1x576xf32>
    %c0_1 = arith.constant 0 : index
    %c0_2 = arith.constant 0 : index
    %1 = vector.load %arg2[%c0_1, %c0_2] : memref<1x576xf32, #tpu.memory_space<vmem>>, vector<1x576xf32>
    %c0_3 = arith.constant 0 : index
    %c0_4 = arith.constant 0 : index
    %2 = vector.load %arg3[%c0_3, %c0_4] : memref<1x576xf32, #tpu.memory_space<vmem>>, vector<1x576xf32>
    %c0_5 = arith.constant 0 : index
    %c0_6 = arith.constant 0 : index
    %3 = vector.load %arg0[%c0_5, %c0_6] : memref<8x512xf32, #tpu.memory_space<vmem>>, vector<8x512xf32>
    %cst = arith.constant 0.000000e+00 : f32
    %4 = vector.broadcast %cst : f32 to vector<8x16xf32>
    %5 = vector.extract_strided_slice %3 {offsets = [0, 0], sizes = [8, 256], strides = [1, 1]} : vector<8x512xf32> to vector<8x256xf32>
    %cst_7 = arith.constant 0.000000e+00 : f32
    %6 = vector.broadcast %cst_7 : f32 to vector<8x16xf32>
    %cst_8 = arith.constant 0.000000e+00 : f32
    %7 = vector.broadcast %cst_8 : f32 to vector<8x16xf32>
    %8 = vector.extract_strided_slice %3 {offsets = [0, 256], sizes = [8, 256], strides = [1, 1]} : vector<8x512xf32> to vector<8x256xf32>
    %cst_9 = arith.constant 0.000000e+00 : f32
    %9 = vector.broadcast %cst_9 : f32 to vector<8x16xf32>
    %10 = tpu.concatenate %4, %5, %6, %7, %8, %9 in 1 : vector<8x16xf32>, vector<8x256xf32>, vector<8x16xf32>, vector<8x16xf32>, vector<8x256xf32>, vector<8x16xf32> -> vector<8x576xf32>
    %cst_10 = arith.constant 0.000000e+00 : f32
    %11 = vector.broadcast %cst_10 : f32 to vector<8x17xf32>
    %cst_11 = arith.constant 0.000000e+00 : f32
    %12 = vector.broadcast %cst_11 : f32 to vector<8x17xf32>
    %13 = tpu.concatenate %11, %10, %12 in 1 : vector<8x17xf32>, vector<8x576xf32>, vector<8x17xf32> -> vector<8x610xf32>
    %14 = vector.extract_strided_slice %13 {offsets = [0, 0], sizes = [8, 576], strides = [1, 1]} : vector<8x610xf32> to vector<8x576xf32>
    %15 = vector.broadcast %1 : vector<1x576xf32> to vector<8x576xf32>
    %16 = arith.mulf %14, %15 : vector<8x576xf32>
    %17 = vector.extract_strided_slice %13 {offsets = [0, 1], sizes = [8, 576], strides = [1, 1]} : vector<8x610xf32> to vector<8x576xf32>
    %18 = vector.extract_strided_slice %13 {offsets = [0, 2], sizes = [8, 576], strides = [1, 1]} : vector<8x610xf32> to vector<8x576xf32>
    %19 = vector.broadcast %2 : vector<1x576xf32> to vector<8x576xf32>
    %20 = arith.mulf %18, %19 : vector<8x576xf32>
    %21 = vector.extract_strided_slice %13 {offsets = [0, 16], sizes = [8, 576], strides = [1, 1]} : vector<8x610xf32> to vector<8x576xf32>
    %22 = vector.broadcast %1 : vector<1x576xf32> to vector<8x576xf32>
    %23 = arith.mulf %21, %22 : vector<8x576xf32>
    %24 = vector.extract_strided_slice %13 {offsets = [0, 17], sizes = [8, 576], strides = [1, 1]} : vector<8x610xf32> to vector<8x576xf32>
    %25 = vector.extract_strided_slice %13 {offsets = [0, 18], sizes = [8, 576], strides = [1, 1]} : vector<8x610xf32> to vector<8x576xf32>
    %26 = vector.broadcast %2 : vector<1x576xf32> to vector<8x576xf32>
    %27 = arith.mulf %25, %26 : vector<8x576xf32>
    %28 = vector.extract_strided_slice %13 {offsets = [0, 32], sizes = [8, 576], strides = [1, 1]} : vector<8x610xf32> to vector<8x576xf32>
    %29 = vector.broadcast %1 : vector<1x576xf32> to vector<8x576xf32>
    %30 = arith.mulf %28, %29 : vector<8x576xf32>
    %31 = vector.extract_strided_slice %13 {offsets = [0, 33], sizes = [8, 576], strides = [1, 1]} : vector<8x610xf32> to vector<8x576xf32>
    %32 = vector.extract_strided_slice %13 {offsets = [0, 34], sizes = [8, 576], strides = [1, 1]} : vector<8x610xf32> to vector<8x576xf32>
    %33 = vector.broadcast %2 : vector<1x576xf32> to vector<8x576xf32>
    %34 = arith.mulf %32, %33 : vector<8x576xf32>
    %35 = tpu.concatenate %16, %17, %20, %23, %24, %27, %30, %31, %34 in 0 : vector<8x576xf32>, vector<8x576xf32>, vector<8x576xf32>, vector<8x576xf32>, vector<8x576xf32>, vector<8x576xf32>, vector<8x576xf32>, vector<8x576xf32>, vector<8x576xf32> -> vector<72x576xf32>
    %36 = arith.truncf %35 : vector<72x576xf32> to vector<72x576xbf16>
    %c0_12 = arith.constant 0 : index
    %c0_13 = arith.constant 0 : index
    %37 = vector.load %arg4[%c0_12, %c0_13] : memref<8x72xbf16, #tpu.memory_space<vmem>>, vector<8x72xbf16>
    %cst_14 = arith.constant dense<0.000000e+00> : vector<8x576xf32>
    %38 = tpu.matmul %37, %36, %cst_14 {dimension_numbers = #tpu.dot_dimension_numbers<[1], [0], [0], [1], [0, 0, 1, 1], [], []>} : vector<8x72xbf16>, vector<72x576xbf16>, vector<8x576xf32> -> vector<8x576xf32>
    %c0_15 = arith.constant 0 : index
    %c0_16 = arith.constant 0 : index
    %39 = vector.load %arg5[%c0_15, %c0_16] : memref<8x1xf32, #tpu.memory_space<vmem>>, vector<8x1xf32>
    %40 = vector.broadcast %39 : vector<8x1xf32> to vector<8x576xf32>
    %41 = arith.addf %38, %40 : vector<8x576xf32>
    %cst_17 = arith.constant 0.000000e+00 : f32
    %42 = vector.broadcast %cst_17 : f32 to vector<8x576xf32>
    %43 = arith.maximumf %41, %42 : vector<8x576xf32>
    %44 = vector.broadcast %0 : vector<1x576xf32> to vector<8x576xf32>
    %45 = arith.mulf %43, %44 : vector<8x576xf32>
    %cst_18 = arith.constant dense<0.000000e+00> : vector<8xf32>
    %46 = vector.multi_reduction <add>, %45, %cst_18 [1] : vector<8x576xf32> to vector<8xf32>
    %47 = vector.shape_cast %46 : vector<8xf32> to vector<8x1xf32>
    %cst_19 = arith.constant 0.001953125 : f32
    %48 = vector.broadcast %cst_19 : f32 to vector<8x1xf32>
    %49 = arith.mulf %47, %48 : vector<8x1xf32>
    %50 = vector.broadcast %49 : vector<8x1xf32> to vector<8x576xf32>
    %51 = arith.subf %43, %50 : vector<8x576xf32>
    %52 = vector.broadcast %0 : vector<1x576xf32> to vector<8x576xf32>
    %53 = arith.mulf %51, %52 : vector<8x576xf32>
    %54 = arith.mulf %53, %53 : vector<8x576xf32>
    %cst_20 = arith.constant dense<0.000000e+00> : vector<8xf32>
    %55 = vector.multi_reduction <add>, %54, %cst_20 [1] : vector<8x576xf32> to vector<8xf32>
    %56 = vector.shape_cast %55 : vector<8xf32> to vector<8x1xf32>
    %cst_21 = arith.constant 0.001953125 : f32
    %57 = vector.broadcast %cst_21 : f32 to vector<8x1xf32>
    %58 = arith.mulf %56, %57 : vector<8x1xf32>
    %cst_22 = arith.constant 9.99999974E-6 : f32
    %59 = vector.broadcast %cst_22 : f32 to vector<8x1xf32>
    %60 = arith.addf %58, %59 : vector<8x1xf32>
    %61 = math.rsqrt %60 : vector<8x1xf32>
    %62 = vector.broadcast %49 : vector<8x1xf32> to vector<8x576xf32>
    %63 = arith.subf %43, %62 : vector<8x576xf32>
    %64 = vector.broadcast %61 : vector<8x1xf32> to vector<8x576xf32>
    %65 = arith.mulf %63, %64 : vector<8x576xf32>
    %c0_23 = arith.constant 0 : index
    %c0_24 = arith.constant 0 : index
    %66 = vector.load %arg6[%c0_23, %c0_24] : memref<8x1xf32, #tpu.memory_space<vmem>>, vector<8x1xf32>
    %67 = vector.broadcast %66 : vector<8x1xf32> to vector<8x576xf32>
    %68 = arith.mulf %65, %67 : vector<8x576xf32>
    %c0_25 = arith.constant 0 : index
    %c0_26 = arith.constant 0 : index
    %69 = vector.load %arg7[%c0_25, %c0_26] : memref<8x1xf32, #tpu.memory_space<vmem>>, vector<8x1xf32>
    %70 = vector.broadcast %69 : vector<8x1xf32> to vector<8x576xf32>
    %71 = arith.addf %68, %70 : vector<8x576xf32>
    %72 = vector.broadcast %0 : vector<1x576xf32> to vector<8x576xf32>
    %73 = arith.mulf %71, %72 : vector<8x576xf32>
    %c0_27 = arith.constant 0 : index
    %c0_28 = arith.constant 0 : index
    %74 = vector.load %arg8[%c0_27, %c0_28] : memref<8x8xbf16, #tpu.memory_space<vmem>>, vector<8x8xbf16>
    %75 = arith.truncf %10 : vector<8x576xf32> to vector<8x576xbf16>
    %cst_29 = arith.constant dense<0.000000e+00> : vector<8x576xf32>
    %76 = tpu.matmul %74, %75, %cst_29 {dimension_numbers = #tpu.dot_dimension_numbers<[1], [0], [0], [1], [0, 0, 1, 1], [], []>} : vector<8x8xbf16>, vector<8x576xbf16>, vector<8x576xf32> -> vector<8x576xf32>
    %c0_30 = arith.constant 0 : index
    %c0_31 = arith.constant 0 : index
    %77 = vector.load %arg9[%c0_30, %c0_31] : memref<8x1xf32, #tpu.memory_space<vmem>>, vector<8x1xf32>
    %78 = vector.broadcast %77 : vector<8x1xf32> to vector<8x576xf32>
    %79 = arith.addf %76, %78 : vector<8x576xf32>
    %80 = arith.addf %73, %79 : vector<8x576xf32>
    %cst_32 = arith.constant 0.000000e+00 : f32
    %81 = vector.broadcast %cst_32 : f32 to vector<8x576xf32>
    %82 = arith.maximumf %80, %81 : vector<8x576xf32>
    %83 = vector.broadcast %0 : vector<1x576xf32> to vector<8x576xf32>
    %84 = arith.mulf %82, %83 : vector<8x576xf32>
    %cst_33 = arith.constant dense<0.000000e+00> : vector<8xf32>
    %85 = vector.multi_reduction <add>, %84, %cst_33 [1] : vector<8x576xf32> to vector<8xf32>
    %86 = vector.shape_cast %85 : vector<8xf32> to vector<8x1xf32>
    %cst_34 = arith.constant 0.001953125 : f32
    %87 = vector.broadcast %cst_34 : f32 to vector<8x1xf32>
    %88 = arith.mulf %86, %87 : vector<8x1xf32>
    %89 = vector.broadcast %88 : vector<8x1xf32> to vector<8x576xf32>
    %90 = arith.subf %82, %89 : vector<8x576xf32>
    %91 = vector.broadcast %0 : vector<1x576xf32> to vector<8x576xf32>
    %92 = arith.mulf %90, %91 : vector<8x576xf32>
    %93 = arith.mulf %92, %92 : vector<8x576xf32>
    %cst_35 = arith.constant dense<0.000000e+00> : vector<8xf32>
    %94 = vector.multi_reduction <add>, %93, %cst_35 [1] : vector<8x576xf32> to vector<8xf32>
    %95 = vector.shape_cast %94 : vector<8xf32> to vector<8x1xf32>
    %cst_36 = arith.constant 0.001953125 : f32
    %96 = vector.broadcast %cst_36 : f32 to vector<8x1xf32>
    %97 = arith.mulf %95, %96 : vector<8x1xf32>
    %cst_37 = arith.constant 9.99999974E-6 : f32
    %98 = vector.broadcast %cst_37 : f32 to vector<8x1xf32>
    %99 = arith.addf %97, %98 : vector<8x1xf32>
    %100 = math.rsqrt %99 : vector<8x1xf32>
    %101 = vector.broadcast %88 : vector<8x1xf32> to vector<8x576xf32>
    %102 = arith.subf %82, %101 : vector<8x576xf32>
    %103 = vector.broadcast %100 : vector<8x1xf32> to vector<8x576xf32>
    %104 = arith.mulf %102, %103 : vector<8x576xf32>
    %c0_38 = arith.constant 0 : index
    %c0_39 = arith.constant 0 : index
    %105 = vector.load %arg10[%c0_38, %c0_39] : memref<8x1xf32, #tpu.memory_space<vmem>>, vector<8x1xf32>
    %106 = vector.broadcast %105 : vector<8x1xf32> to vector<8x576xf32>
    %107 = arith.mulf %104, %106 : vector<8x576xf32>
    %c0_40 = arith.constant 0 : index
    %c0_41 = arith.constant 0 : index
    %108 = vector.load %arg11[%c0_40, %c0_41] : memref<8x1xf32, #tpu.memory_space<vmem>>, vector<8x1xf32>
    %109 = vector.broadcast %108 : vector<8x1xf32> to vector<8x576xf32>
    %110 = arith.addf %107, %109 : vector<8x576xf32>
    %cst_42 = arith.constant 0.000000e+00 : f32
    %111 = vector.broadcast %cst_42 : f32 to vector<8x17xf32>
    %112 = tpu.concatenate %110, %111 in 1 : vector<8x576xf32>, vector<8x17xf32> -> vector<8x593xf32>
    %113 = vector.extract_strided_slice %112 {offsets = [0, 0], sizes = [8, 576], strides = [1, 1]} : vector<8x593xf32> to vector<8x576xf32>
    %114 = vector.extract_strided_slice %112 {offsets = [0, 1], sizes = [8, 576], strides = [1, 1]} : vector<8x593xf32> to vector<8x576xf32>
    %115 = arith.maximumf %113, %114 : vector<8x576xf32>
    %116 = vector.extract_strided_slice %112 {offsets = [0, 16], sizes = [8, 576], strides = [1, 1]} : vector<8x593xf32> to vector<8x576xf32>
    %117 = vector.extract_strided_slice %112 {offsets = [0, 17], sizes = [8, 576], strides = [1, 1]} : vector<8x593xf32> to vector<8x576xf32>
    %118 = arith.maximumf %116, %117 : vector<8x576xf32>
    %119 = arith.maximumf %115, %118 : vector<8x576xf32>
    %c0_43 = arith.constant 0 : index
    %c0_44 = arith.constant 0 : index
    %120 = vector.load %arg12[%c0_43, %c0_44] : memref<576x128xf32, #tpu.memory_space<vmem>>, vector<576x128xf32>
    %cst_45 = arith.constant dense<0.000000e+00> : vector<8x128xf32>
    %121 = tpu.matmul %119, %120, %cst_45 {dimension_numbers = #tpu.dot_dimension_numbers<[1], [0], [0], [1], [0, 0, 1, 1], [], []>, precision = #tpu.contract_precision<fp32>} : vector<8x576xf32>, vector<576x128xf32>, vector<8x128xf32> -> vector<8x128xf32>
    %c0_46 = arith.constant 0 : index
    %c0_47 = arith.constant 0 : index
    %122 = vector.load %arg13[%c0_46, %c0_47] : memref<8x128xf32, #tpu.memory_space<vmem>>, vector<8x128xf32>
    tpu.vector_store %arg13[%c0_46, %c0_47], %121 {strides = array<i32>} : memref<8x128xf32, #tpu.memory_space<vmem>>, vector<8x128xf32>,
    return
  }
}

</mosaic_0001>

<bundles_post_ra>
// kernel: tpu_custom_call.1
= control target key start
LH: loop header
LB: loop body
LE: loop exit
PB: predicated region body
PF: predicated region fallthrough
CT: control target
= control target key end

     0   :  { %18 = vsyncpa [#allocation3], 0  ;;  %s6658_s0 = inlined_call_operand.vmem [shape: f32[8,512], index: 0, kind: input, shape index: {}]   ;;  %s6659_s1 = inlined_call_operand.vmem [shape: f32[1,576], index: 1, kind: input, shape index: {}]   ;;  %s6660_s2 = inlined_call_operand.vmem [shape: f32[1,576], index: 2, kind: input, shape index: {}]   ;;  %s6661_s3 = inlined_call_operand.vmem [shape: f32[1,576], index: 3, kind: input, shape index: {}]   ;;  %s6662_s4 = inlined_call_operand.vmem [shape: bf16[8,72], index: 4, kind: input, shape index: {}]   ;;  %s6663_s5 = inlined_call_operand.vmem [shape: f32[8,1], index: 5, kind: input, shape index: {}]   ;;  %s6664_s6 = inlined_call_operand.vmem [shape: f32[8,1], index: 6, kind: input, shape index: {}]   ;;  %s6665_s7 = inlined_call_operand.vmem [shape: f32[8,1], index: 7, kind: input, shape index: {}]   ;;  %s6666_s8 = inlined_call_operand.vmem [shape: bf16[8,8], index: 8, kind: input, shape index: {}]   ;;  %s6667_s9 = inlined_call_operand.vmem [shape: f32[8,1], index: 9, kind: input, shape index: {}]   ;;  %s6668_s10 = inlined_call_operand.vmem [shape: f32[8,1], index: 10, kind: input, shape index: {}]   ;;  %s6669_s11 = inlined_call_operand.vmem [shape: f32[8,1], index: 11, kind: input, shape index: {}]   ;;  %s6670_s12 = inlined_call_operand.hbm [shape: f32[576,128], index: 12, kind: input, shape index: {}]   ;;  %s6671_s13 = inlined_call_operand.hbm [shape: f32[8,128], index: 13, kind: output, shape index: {}]  }
   0x1   :  { %19 = vsyncpa [#allocation4], 0  ;;  %s4647_s25 = smov [#allocation2]   ;;  %s4599_s29 = scalar_lea.hbm %s6670_s12, 9216 }
   0x2   :  { %s49_s26 = sshll.u32 %s4647_s25, 4  ;;  %p4600_p0 = scmp.ne.s32.totalorder %s6670_s12, %s4599_s29  ;;  %s50_s26 = int_to_ptr.vmem [resolvable:$true] %s49_s26 }
   0x3   :  { %p4603_p1 = scmp.lt.u32.totalorder %s4599_s29, %s6670_s12 }
   0x5   :  { %p4605_p2 = pnand %p4603_p1, %p4600_p0 }
   0x7   :  { %4608 = shalt.err (!%p4605_p2)
}
   0x8   :  { %s4609_s17 = scalar_lea.vmem %s50_s26, 9216  ;;  %p4614_p4 = scmp.lt.s32.totalorder %s50_s26, %s50_s26 }
   0x9   :  { %p4610_p3 = scmp.ne.s32.totalorder %s50_s26, %s4609_s17  ;;  %p4615_p5 = scmp.lt.s32.totalorder %s4609_s17, %s4609_s17 }
   0xb   :  { %p4616_p6 = por %p4615_p5, %p4614_p4 }
   0xd   :  { %p4617_p7 = pnand %p4616_p6, %p4610_p3 }
   0xf   :  { %4620 = shalt.err (!%p4617_p7)
}
  0x10   :  { %s4648_s18 = smov 128   ;;  %s4649_s19 = smov 8  }
  0x11   :  { %55 = dma.hbm_to_vmem [thread:$0]  %s6670_s12, 9216, %s50_s26, [#allocation3], %s4648_s18, %s4648_s18, %s4649_s19  }
  0x12   :  { %4643 = dma.done.wait [#allocation3], 9216  }
  0x13   :  { %4644 = vsyncadd [#allocation3], 4294958080  ;;  %v122_v0 = vlaneseq  ;;  %v64_v2 = vld [vmem:[%s6658_s0 + $0x8] sm:$0xff]  ;;  %v65_v3 = vld [vmem:[%s6658_s0 + $0x10] sm:$0xff]  ;;  %s4650_s27 = smov 16   ;;  %s4651_s28 = smov 48  }
  0x14   :  { %71 = vrot.lane.b32.xlu0 %v64_v2, %s4650_s27  ;;  %80 = vrot.lane.b32.xlu1 %v65_v3, %s4651_s28  ;;  %v63_v6 = vld [vmem:[%s6658_s0] sm:$0xff]  ;;  %v66_v7 = vld [vmem:[%s6658_s0 + $0x18] sm:$0xff]  ;;  %s4652_s18 = smov 2   ;;  %s4653_s0 = smov 18   ;;  %vm73_vm0 = vcmask 130048   ;;  %vm91_vm1 = vcmask 261120  }
  0x15   :  { %v123_v1 = vshrl.u32 %v122_v0, 7  ;;  %v62_v8 = vld [vmem:[%s6661_s3] sm:$0x1f]  ;;  %s4655_s3 = smov 17   ;;  %vm84_vm2 = vcmask 392192   ;;  %s4656_s19 = smov 34  }
  0x16   :  { %v61_v12 = vld [vmem:[%s6660_s2] sm:$0x1f]  ;;  %s4654_s2 = smov 32   ;;  %vm108_vm3 = vcmask 138240   ;;  %s4657_s20 = smov 111   ;;  %vm183_vm4 = vcmask 15360  }
  0x17   :  { %v4759_v4 = vsub.s32 0, %v123_v1  ;;  %v4761_v5 = vsub.s32 1, %v123_v1  ;;  %v4775_v11 = vsub.s32 2, %v123_v1  ;;  %v4786_v15 = vsub.s32 4, %v123_v1  ;;  %s4658_s21 = smov 127   ;;  %s4659_s22 = smov 112  }
  0x18   :  { %69 = vrot.lane.b32.xlu0 %v63_v6, %s4650_s27  ;;  %82 = vrot.lane.b32.xlu1 %v66_v7, %s4651_s28  ;;  %v4788_v16 = vsub.s32 3, %v123_v1  ;;  %s4660_s23 = smov 110   ;;  %vm232_vm5 = vcmask 146432   ;;  %s4661_s24 = smov 126   ;;  %vm281_vm6 = vcmask 277504   ;;  %vm119_vm7 = vcmask 662528  }
  0x19   :  { %v156_v9 = vrot.slane %v62_v8, %v4759_v4  ;;  %v160_v10 = vrot.slane %v62_v8, %v4761_v5  ;;  %v164_v13 = vrot.slane %v62_v8, %v4775_v11  ;;  %v4784_v14 = vrot.slane %v61_v12, %v4759_v4  ;;  %s4662_s25 = smov 95   ;;  %s4664_s28 = smov 94  }
  0x1a   :  { %v172_v17 = vrot.slane %v62_v8, %v4786_v15  ;;  %v168_v18 = vrot.slane %v62_v8, %v4788_v16  ;;  %v4793_v19 = vrot.slane %v61_v12, %v4761_v5  ;;  %v4799_v20 = vrot.slane %v61_v12, %v4775_v11 }
  0x1b   :  { %v4802_v21 = vrot.slane %v61_v12, %v4786_v15  ;;  %v4805_v22 = vrot.slane %v61_v12, %v4788_v16  ;;  %vm308_vm8 = vcmask 1039360   ;;  %vm358_vm9 = vcmask 916480  }
  0x1c   :  { %173 = vrot.lane.b32.xlu1 %v156_v9, %s4652_s18  ;;  %175 = vrot.lane.b32.xlu0 %v160_v10, %s4652_s18  ;;  %vm333_vm10 = vcmask 1031168   ;;  %vm378_vm11 = vcmask 908288   ;;  %vm403_vm12 = vcmask 900096   ;;  %vm448_vm13 = vcmask 777216  }
  0x1d   :  { %vm428_vm14 = vcmask 785408   ;;  %vm473_vm15 = vcmask 769024  }
  0x20   :  { %177 = vrot.lane.b32.xlu1 %v164_v13, %s4652_s18  ;;  %198 = vrot.lane.b32.xlu0 %v4784_v14, %s4650_s27 }
  0x24   :  { %200 = vrot.lane.b32.xlu1 %v4793_v19, %s4650_s27  ;;  %202 = vrot.lane.b32.xlu0 %v4799_v20, %s4650_s27 }
  0x28   :  { %222 = vrot.lane.b32.xlu1 %v156_v9, %s4653_s0  ;;  %224 = vrot.lane.b32.xlu0 %v160_v10, %s4653_s0 }
  0x2c   :  { %226 = vrot.lane.b32.xlu1 %v164_v13, %s4653_s0  ;;  %247 = vrot.lane.b32.xlu0 %v4784_v14, %s4654_s2 }
  0x30   :  { %249 = vrot.lane.b32.xlu1 %v4793_v19, %s4654_s2 }
  0x86   :  { %v72_v23 = vpop.permute.xlu0 %71  ;;  %v81_v29 = vpop.permute.xlu1 %80 }
  0x87   :  { %v90_v24 = vsel %vm73_vm0, %v72_v23, 0.0 }
  0x88   :  { %v92_v28 = vsel %vm91_vm1, %v90_v24, 0.0 }
  0x89   :  { %v4828_v30 = vsel %vm84_vm2, %v92_v28, %v81_v29 }
  0x8a   :  { %v70_v25 = vpop.permute.xlu0 %69  ;;  %v83_v31 = vpop.permute.xlu1 %82 }
  0x8b   :  { %v4820_v26 = vsel %vm73_vm0, %v70_v25, %v72_v23  ;;  %v4823_v27 = vsel %vm73_vm0, 0.0, %v70_v25  ;;  %v4833_v32 = vsel %vm84_vm2, %v83_v31, 0.0  ;;  %v4836_v33 = vsel %vm84_vm2, %v81_v29, %v83_v31 }
  0x8c   :  { %100 = vrot.lane.b32.xlu1 %v4820_v26, %s4655_s3  ;;  %98 = vrot.lane.b32.xlu0 %v4823_v27, %s4655_s3  ;;  %vm4667_vm2 = vmmov 0  }
  0x8e   :  { %v174_v34 = vpop.permute.xlu1 %173  ;;  %v176_v35 = vpop.permute.xlu0 %175 }
  0x8f   :  { %v184_v2 = vsel %vm183_vm4, %v174_v34, %v176_v35 }
  0x90   :  { %271 = vrot.lane.b32.xlu1 %v156_v9, %s4656_s19  ;;  %102 = vrot.lane.b32.xlu0 %v4828_v30, %s4655_s3 }
  0x92   :  { %v4851_v36 = vpop.permute.xlu1 %177  ;;  %v199_v38 = vpop.permute.xlu0 %198 }
  0x93   :  { %v185_v62 = vsel %vm183_vm4, %v176_v35, %v4851_v36 }
  0x94   :  { %251 = vrot.lane.b32.xlu0 %v4799_v20, %s4654_s2  ;;  %275 = vrot.lane.b32.xlu1 %v164_v13, %s4656_s19 }
  0x96   :  { %v201_v37 = vpop.permute.xlu1 %200  ;;  %v4853_v40 = vpop.permute.xlu0 %202 }
  0x97   :  { %v209_v58 = vsel %vm73_vm0, %v201_v37, %v4853_v40  ;;  %v208_v63 = vsel %vm73_vm0, %v199_v38, %v201_v37 }
  0x98   :  { %273 = vrot.lane.b32.xlu0 %v160_v10, %s4656_s19  ;;  %106 = vrot.lane.b32.xlu1 %v4833_v32, %s4655_s3 }
  0x9a   :  { %v223_v39 = vpop.permute.xlu1 %222  ;;  %v225_v42 = vpop.permute.xlu0 %224 }
  0x9b   :  { %v233_v12 = vsel %vm232_vm5, %v223_v39, %v225_v42 }
  0x9c   :  { %104 = vrot.lane.b32.xlu0 %v4836_v33, %s4655_s3  ;;  %181 = vrot.lane.b32.xlu1 %v172_v17, %s4652_s18 }
  0x9e   :  { %v4855_v41 = vpop.permute.xlu1 %226  ;;  %v248_v44 = vpop.permute.xlu0 %247 }
  0x9f   :  { %v234_v3 = vsel %vm232_vm5, %v225_v42, %v4855_v41 }
  0xa0   :  { %179 = vrot.lane.b32.xlu0 %v168_v18, %s4652_s18  ;;  %206 = vrot.lane.b32.xlu1 %v4802_v21, %s4650_s27 }
  0xa2   :  { %v250_v43 = vpop.permute.xlu1 %249 }
  0xa3   :  { %v257_v31 = vsel %vm91_vm1, %v248_v44, %v250_v43 }
  0xa4   :  { %204 = vrot.lane.b32.xlu0 %v4805_v22, %s4650_s27  ;;  %230 = vrot.lane.b32.xlu1 %v172_v17, %s4653_s0  ;;  %s4663_s27 = smov 96  }
  0xa8   :  { %228 = vrot.lane.b32.xlu0 %v168_v18, %s4653_s0  ;;  %255 = vrot.lane.b32.xlu1 %v4802_v21, %s4654_s2 }
  0xac   :  { %253 = vrot.lane.b32.xlu0 %v4805_v22, %s4654_s2  ;;  %279 = vrot.lane.b32.xlu1 %v172_v17, %s4656_s19 }
  0xb0   :  { %277 = vrot.lane.b32.xlu0 %v168_v18, %s4656_s19 }
  0xfe   :  { %v101_v45 = vpop.permute.xlu1 %100  ;;  %v99_v46 = vpop.permute.xlu0 %98 }
  0xff   :  { %v4858_v47 = vsel %vm108_vm3, 0.0, %v99_v46  ;;  %v4870_v51 = vsel %vm108_vm3, %v99_v46, %v101_v45 }
 0x100   :  { %368 = vrot.lane.b32.xlu0 %v4858_v47, %s4657_s20  ;;  %298 = vrot.lane.b32.xlu1 %v4858_v47, %s4658_s21  ;;  %v217_v50 = vmul.f32 %v199_v38, %v4858_v47  ;;  %v242_v55 = vmul.f32 %v223_v39, %v4858_v47  ;;  %v193_v57 = vmul.f32 %v174_v34, %v4858_v47 }
 0x101   :  { %v218_v0 = vmul.f32 %v208_v63, %v4870_v51  ;;  %v194_v9 = vmul.f32 %v184_v2, %v4870_v51  ;;  %v243_v17 = vmul.f32 %v233_v12, %v4870_v51  ;;  %v266_v29 = vmul.f32 %v248_v44, %v4858_v47 }
 0x102   :  { %v4864_v48 = vpop.permute.xlu1 %271  ;;  %v4866_v49 = vpop.permute.xlu0 %102  ;;  %v267_v39 = vmul.f32 %v257_v31, %v4870_v51  ;;  %v509_v31 = vld [vmem:[%s6663_s5] sm:$0xff] }
 0x103   :  { %v4874_v52 = vsel %vm108_vm3, %v101_v45, %v4866_v49 }
 0x104   :  { %348 = vrot.lane.b32.xlu1 %v217_v50, %s4659_s22  ;;  %v4513_v53 = vpack.i.bf16 %v4874_v52, %v4870_v51  ;;  %v219_v61 = vmul.f32 %v209_v58, %v4874_v52  ;;  %v195_v1 = vmul.f32 %v185_v62, %v4874_v52  ;;  %v244_v10 = vmul.f32 %v234_v3, %v4874_v52 }
 0x106   :  { %4514 = vrot.lane.b32.xlu0 %v4513_v53, %s4658_s21  ;;  %v4880_v54 = vpop.permute.xlu0 %251  ;;  %v4883_v56 = vpop.permute.xlu1 %275  ;;  %v4533_v7 = vpack.i.bf16 %v219_v61, %v218_v0  ;;  %v4528_v13 = vpack.i.bf16 %v195_v1, %v194_v9  ;;  %v4538_v24 = vpack.i.bf16 %v244_v10, %v243_v17  ;;  %v4665_v61 = vmov 0  }
 0x107   :  { %v258_v18 = vsel %vm91_vm1, %v250_v43, %v4880_v54  ;;  %567 = vmatprep.mubr.bf16.mxu0 %v4665_v61  ;;  %608 = vmatprep.mubr.bf16.mxu1 %v4665_v61 }
 0x108   :  { %393 = vrot.lane.b32.xlu1 %v242_v55, %s4660_s23  ;;  %v268_v28 = vmul.f32 %v258_v18, %v4874_v52  ;;  %v291_v55 = vmul.f32 %v4864_v48, %v4858_v47  ;;  %4593 = vset.pattern.permute.xlu0 %v4665_v61 }
 0x109   :  { %4594 = vset.pattern.permute.xlu1 %v4665_v61 }
 0x10a   :  { %323 = vrot.lane.b32.xlu0 %v193_v57, %s4661_s24  ;;  %v274_v59 = vpop.permute.xlu0 %273  ;;  %v107_v60 = vpop.permute.xlu1 %106  ;;  %v4543_v46 = vpack.i.bf16 %v268_v28, %v267_v39 }
 0x10b   :  { %v282_v34 = vsel %vm281_vm6, %v4864_v48, %v274_v59  ;;  %v283_v42 = vsel %vm281_vm6, %v274_v59, %v4883_v56 }
 0x10c   :  { %4524 = vrot.lane.b32.xlu1 %v4513_v53, %s4662_s25  ;;  %v292_v44 = vmul.f32 %v282_v34, %v4870_v51  ;;  %v293_v57 = vmul.f32 %v283_v42, %v4874_v52 }
 0x10e   :  { %4519 = vrot.lane.b32.xlu0 %v4513_v53, %s4657_s20  ;;  %v105_v6 = vpop.permute.xlu0 %104  ;;  %v182_v8 = vpop.permute.xlu1 %181 }
 0x10f   :  { %v112_v35 = vsel %vm108_vm3, %v105_v6, %v107_v60  ;;  %v4928_v50 = vsel %vm108_vm3, %v4866_v49, %v105_v6  ;;  %v4548_v49 = vpack.i.bf16 %v292_v44, %v291_v55  ;;  %v147_v44 = vmul.f32 %v4784_v14, %v4858_v47 }
 0x110   :  { %4534 = vrot.lane.b32.xlu1 %v4533_v7, %s4659_s22  ;;  %v4930_v53 = vsel %vm119_vm7, %v112_v35, 0.0  ;;  %vm771_vm3 = vcmask 64512  }
 0x111   :  { %v4553_v7 = vpack.i.bf16 %v4930_v53, %v4928_v50 }
 0x112   :  { %4529 = vrot.lane.b32.xlu0 %v4528_v13, %s4661_s24  ;;  %v180_v23 = vpop.permute.xlu0 %179  ;;  %v207_v25 = vpop.permute.xlu1 %206 }
 0x113   :  { %v186_v45 = vsel %vm183_vm4, %v4851_v36, %v180_v23  ;;  %v187_v43 = vsel %vm183_vm4, %v180_v23, %v182_v8  ;;  %vm696_vm4 = vcmask 523264  }
 0x114   :  { %4539 = vrot.lane.b32.xlu1 %v4538_v24, %s4660_s23  ;;  %v196_v36 = vmul.f32 %v186_v45, %v4928_v50  ;;  %v197_v58 = vmul.f32 %v187_v43, %v4930_v53  ;;  %v148_v43 = vmul.f32 %v4793_v19, %v4870_v51 }
 0x116   :  { %418 = vrot.lane.b32.xlu0 %v266_v29, %s4663_s27  ;;  %v205_v37 = vpop.permute.xlu0 %204  ;;  %v231_v38 = vpop.permute.xlu1 %230  ;;  %v4558_v0 = vpack.i.bf16 %v197_v58, %v196_v36 }
 0x117   :  { %v210_v48 = vsel %vm73_vm0, %v4853_v40, %v205_v37  ;;  %v211_v62 = vsel %vm73_vm0, %v205_v37, %v207_v25  ;;  %vm519_vm0 = vcmask 1043456  }
 0x118   :  { %438 = vrot.lane.b32.xlu1 %v4858_v47, %s4662_s25  ;;  %v220_v3 = vmul.f32 %v210_v48, %v4928_v50  ;;  %v221_v40 = vmul.f32 %v211_v62, %v4930_v53 }
 0x11a   :  { %4544 = vrot.lane.b32.xlu0 %v4543_v46, %s4663_s27  ;;  %v229_v59 = vpop.permute.xlu0 %228  ;;  %v256_v60 = vpop.permute.xlu1 %255 }
 0x11b   :  { %v235_v8 = vsel %vm232_vm5, %v4855_v41, %v229_v59  ;;  %v236_v9 = vsel %vm232_vm5, %v229_v59, %v231_v38  ;;  %v4568_v41 = vpack.i.bf16 %v221_v40, %v220_v3 }
 0x11c   :  { %467 = vrot.lane.b32.xlu1 %v293_v57, %s4664_s28  ;;  %v245_v18 = vmul.f32 %v235_v8, %v4928_v50  ;;  %v246_v23 = vmul.f32 %v236_v9, %v4930_v53 }
 0x11e   :  { %4549 = vrot.lane.b32.xlu0 %v4548_v49, %s4664_s28  ;;  %v254_v63 = vpop.permute.xlu0 %253  ;;  %v280_v6 = vpop.permute.xlu1 %279  ;;  %v4573_v29 = vpack.i.bf16 %v246_v23, %v245_v18 }
 0x11f   :  { %v259_v1 = vsel %vm91_vm1, %v4880_v54, %v254_v63  ;;  %v260_v2 = vsel %vm91_vm1, %v254_v63, %v256_v60  ;;  %vm515_vm1 = vcmask 588800  }
 0x120   :  { %4559 = vrot.lane.b32.xlu1 %v4558_v0, %s4661_s24  ;;  %v269_v10 = vmul.f32 %v259_v1, %v4928_v50  ;;  %v270_v54 = vmul.f32 %v260_v2, %v4930_v53 }
 0x122   :  { %4554 = vrot.lane.b32.xlu0 %v4553_v7, %s4658_s21  ;;  %v278_v12 = vpop.permute.xlu0 %277  ;;  %v4583_v28 = vpack.i.bf16 %v270_v54, %v269_v10 }
 0x123   :  { %v284_v13 = vsel %vm281_vm6, %v4883_v56, %v278_v12  ;;  %v285_v17 = vsel %vm281_vm6, %v278_v12, %v280_v6 }
 0x124   :  { %4564 = vrot.lane.b32.xlu1 %v4553_v7, %s4657_s20  ;;  %v294_v24 = vmul.f32 %v284_v13, %v4928_v50  ;;  %v295_v25 = vmul.f32 %v285_v17, %v4930_v53 }
 0x126   :  { %4569 = vrot.lane.b32.xlu0 %v4568_v41, %s4659_s22  ;;  %v4588_v56 = vpack.i.bf16 %v295_v25, %v294_v24 }
 0x128   :  { %4584 = vrot.lane.b32.xlu1 %v4583_v28, %s4663_s27 }
 0x12a   :  { %4574 = vrot.lane.b32.xlu0 %v4573_v29, %s4660_s23 }
 0x12c   :  { %4589 = vrot.lane.b32.xlu1 %v4588_v56, %s4664_s28 }
 0x12e   :  { %4579 = vrot.lane.b32.xlu0 %v4553_v7, %s4662_s25 }
 0x132   :  { %512 = vperm.xlu0 %4593, %v509_v31  }
 0x172   :  { %v299_v34 = vpop.permute.xlu1 %298  ;;  %v369_v35 = vpop.permute.xlu0 %368 }
 0x176   :  { %v349_v37 = vpop.permute.xlu1 %348 }
 0x178   :  { %v4977_v38 = vpop.permute.xlu0 %4514 }
 0x179   :  { %v4517_v39 = vunpack.i.h.bf16 %v4977_v38  ;;  %v4516_v42 = vunpack.i.l.bf16 %v4977_v38 }
 0x17a   :  { %v394_v45 = vpop.permute.xlu1 %393 }
 0x17b   :  { %v310_v46 = vsel %vm308_vm8, %v4516_v42, %v4517_v39  ;;  %v309_v55 = vsel %vm308_vm8, %v299_v34, %v4516_v42 }
 0x17c   :  { %v324_v57 = vpop.permute.xlu0 %323  ;;  %v484_v36 = vpack.c.bf16 %v310_v46, %v148_v43  ;;  %v483_v58 = vpack.c.bf16 %v309_v55, %v147_v44 }
 0x17e   :  { %v4989_v59 = vpop.permute.xlu1 %4524  ;;  %535 = vmatprep.subr.bf16.mxu0 %v484_v36 }
 0x17f   :  { %536 = vmatpush1.bf16.msra.mxu0 %v483_v58  ;;  %v4527_v23 = vunpack.i.h.bf16 %v4989_v59  ;;  %v4526_v41 = vunpack.i.l.bf16 %v4989_v59 }
 0x180   :  { %v4991_v60 = vpop.permute.xlu0 %4519 }
 0x181   :  { %v4522_v51 = vunpack.i.h.bf16 %v4991_v60  ;;  %v4521_v48 = vunpack.i.l.bf16 %v4991_v60  ;;  %v450_v42 = vsel %vm448_vm13, %v4526_v41, %v4527_v23 }
 0x182   :  { %v4993_v49 = vpop.permute.xlu1 %4534 }
 0x183   :  { %v4537_v19 = vunpack.i.h.bf16 %v4993_v49  ;;  %v4536_v14 = vunpack.i.l.bf16 %v4993_v49  ;;  %v380_v54 = vsel %vm378_vm11, %v4521_v48, %v4522_v51  ;;  %v379_v25 = vsel %vm378_vm11, %v369_v35, %v4521_v48 }
 0x184   :  { %v4997_v47 = vpop.permute.xlu0 %4529 }
 0x185   :  { %v4532_v62 = vunpack.i.h.bf16 %v4997_v47  ;;  %v4531_v63 = vunpack.i.l.bf16 %v4997_v47  ;;  %v360_v1 = vsel %vm358_vm9, %v4536_v14, %v4537_v19  ;;  %v359_v2 = vsel %vm358_vm9, %v349_v37, %v4536_v14 }
 0x186   :  { %v5003_v0 = vpop.permute.xlu1 %4539 }
 0x187   :  { %v4542_v3 = vunpack.i.h.bf16 %v5003_v0  ;;  %v4541_v40 = vunpack.i.l.bf16 %v5003_v0  ;;  %v335_v6 = vsel %vm333_vm10, %v4531_v63, %v4532_v62  ;;  %v334_v7 = vsel %vm333_vm10, %v324_v57, %v4531_v63 }
 0x188   :  { %v419_v8 = vpop.permute.xlu0 %418  ;;  %v489_v9 = vpack.c.bf16 %v360_v1, %v335_v6  ;;  %v488_v10 = vpack.c.bf16 %v359_v2, %v334_v7 }
 0x189   :  { %v405_v12 = vsel %vm403_vm12, %v4541_v40, %v4542_v3  ;;  %v404_v18 = vsel %vm403_vm12, %v394_v45, %v4541_v40  ;;  %v151_v40 = vmul.f32 %v4802_v21, %v4930_v53  ;;  %v5054_v21 = vld [vmem:[%s6662_s4] sm:$0xf] }
 0x18a   :  { %v439_v13 = vpop.permute.xlu1 %438  ;;  %537 = vmatprep.subr.bf16.mxu0 %v489_v9  ;;  %v494_v17 = vpack.c.bf16 %v405_v12, %v380_v54  ;;  %v493_v56 = vpack.c.bf16 %v404_v18, %v379_v25  ;;  %v149_v9 = vmul.f32 %v4799_v20, %v4874_v52 }
 0x18b   :  { %538 = vmatpush1.bf16.msra.mxu0 %v488_v10  ;;  %v449_v34 = vsel %vm448_vm13, %v439_v13, %v4526_v41 }
 0x18c   :  { %v5024_v24 = vpop.permute.xlu0 %4544  ;;  %539 = vmatprep.subr.bf16.mxu0 %v494_v17  ;;  %v6672_v17 = vmov 0.0  }
 0x18d   :  { %v4547_v28 = vunpack.i.h.bf16 %v5024_v24  ;;  %v4546_v29 = vunpack.i.l.bf16 %v5024_v24 }
 0x18e   :  { %v5029_v31 = vpop.permute.xlu1 %467 }
 0x18f   :  { %540 = vmatpush1.bf16.msra.mxu0 %v493_v56  ;;  %v430_v37 = vsel %vm428_vm14, %v4546_v29, %v4547_v28  ;;  %v429_v35 = vsel %vm428_vm14, %v419_v8, %v4546_v29  ;;  %v150_v8 = vmul.f32 %v4805_v22, %v4928_v50 }
 0x190   :  { %v4550_v45 = vpop.permute.xlu0 %4549  ;;  %v499_v43 = vpack.c.bf16 %v450_v42, %v430_v37  ;;  %v498_v44 = vpack.c.bf16 %v449_v34, %v429_v35 }
 0x191   :  { %v4552_v46 = vunpack.i.h.bf16 %v4550_v45  ;;  %v4551_v55 = vunpack.i.l.bf16 %v4550_v45 }
 0x192   :  { %v4560_v57 = vpop.permute.xlu1 %4559  ;;  %541 = vmatprep.subr.bf16.mxu0 %v499_v43 }
 0x193   :  { %v475_v36 = vsel %vm473_vm15, %v4552_v46, %v5029_v31  ;;  %542 = vmatpush1.bf16.msra.mxu0 %v498_v44  ;;  %v474_v58 = vsel %vm473_vm15, %v4551_v55, %v4552_v46  ;;  %v4562_v10 = vunpack.i.h.bf16 %v4560_v57  ;;  %v4561_v54 = vunpack.i.l.bf16 %v4560_v57 }
 0x194   :  { %v504_v14 = vpack.c.bf16 %v475_v36, %v475_v36  ;;  %v4555_v48 = vpop.permute.xlu0 %4554  ;;  %v503_v63 = vpack.c.bf16 %v474_v58, %v474_v58 }
 0x195   :  { %v4557_v1 = vunpack.i.h.bf16 %v4555_v48  ;;  %v4556_v2 = vunpack.i.l.bf16 %v4555_v48  ;;  %v337_v56 = vsel %vm333_vm10, %v4561_v54, %v4562_v10 }
 0x196   :  { %v4565_v6 = vpop.permute.xlu1 %4564  ;;  %3398 = vmatprep.subr.msk.bf16.mxu0 %vm519_vm0, %v504_v14  ;;  %v521_v7 = vsel %vm519_vm0, %v503_v63, 0 }
 0x197   :  { %544 = vmatpush1.bf16.msra.mxu0 %v521_v7  ;;  %v312_v12 = vsel %vm308_vm8, %v4556_v2, %v4557_v1  ;;  %v311_v20 = vsel %vm308_vm8, %v4517_v39, %v4556_v2  ;;  %v487_v22 = vpack.c.bf16 %v4557_v1, %v151_v40  ;;  %v4567_v25 = vunpack.i.h.bf16 %v4565_v6 }
 0x198   :  { %v4570_v53 = vpop.permute.xlu0 %4569  ;;  %v486_v13 = vpack.c.bf16 %v312_v12, %v150_v8  ;;  %3890 = vmatprep.subr.bf16.mxu0 %v6672_v17  ;;  %v485_v18 = vpack.c.bf16 %v311_v20, %v149_v9  ;;  %v4566_v29 = vunpack.i.l.bf16 %v4565_v6  ;;  %v336_v39 = vsel %vm333_vm10, %v4532_v62, %v4561_v54 }
 0x199   :  { %v4572_v52 = vunpack.i.h.bf16 %v4570_v53  ;;  %v4571_v50 = vunpack.i.l.bf16 %v4570_v53  ;;  %v763_v53 = vpack.c.bf16 %v4836_v33, %v4836_v33 }
 0x19a   :  { %v4585_v41 = vpop.permute.xlu1 %4584  ;;  %576 = vmatprep.subr.bf16.mxu1 %v486_v13  ;;  %3399 = vmatmul.mubr.msk.bf16.vlgmr.msra.gmra.mrb[0].mxu0 %vm515_vm1, %v5054_v21  ;;  %v382_v49 = vsel %vm378_vm11, %v4566_v29, %v4567_v25  ;;  %v381_v2 = vsel %vm378_vm11, %v4522_v51, %v4566_v29  ;;  %v759_v13 = vld [vmem:[%s6666_s8] sm:$0xf] }
 0x19b   :  { %577 = vmatpush1.bf16.msra.mxu1 %v485_v18  ;;  %3891 = vmatpush3.bf16.msra.mxu0 %v487_v22  ;;  %v362_v34 = vsel %vm358_vm9, %v4571_v50, %v4572_v52  ;;  %v361_v42 = vsel %vm358_vm9, %v4537_v19, %v4571_v50  ;;  %v492_v35 = vpack.c.bf16 %v4572_v52, %v4562_v10  ;;  %v4587_v46 = vunpack.i.h.bf16 %v4585_v41 }
 0x19c   :  { %v4575_v38 = vpop.permute.xlu0 %4574  ;;  %v491_v37 = vpack.c.bf16 %v362_v34, %v337_v56  ;;  %3892 = vmatprep.subr.bf16.mxu0 %v6672_v17  ;;  %3900 = vmatprep.mubr.msk.bf16.mxu0 %vm4667_vm2, %v6672_v17  ;;  %v490_v44 = vpack.c.bf16 %v361_v42, %v336_v39  ;;  %v4586_v55 = vunpack.i.l.bf16 %v4585_v41 }
 0x19d   :  { %v4577_v45 = vunpack.i.h.bf16 %v4575_v38  ;;  %v4576_v43 = vunpack.i.l.bf16 %v4575_v38 }
 0x19e   :  { %v4590_v57 = vpop.permute.xlu1 %4589  ;;  %578 = vmatprep.subr.bf16.mxu1 %v491_v37  ;;  %v432_v6 = vsel %vm428_vm14, %v4586_v55, %v4587_v46  ;;  %v431_v0 = vsel %vm428_vm14, %v4547_v28, %v4586_v55  ;;  %v760_v28 = vpack.c.bf16 %v4823_v27, %v4823_v27  ;;  %v762_v27 = vpack.c.bf16 %v4828_v30, %v4828_v30 }
 0x19f   :  { %v4592_v36 = vunpack.i.h.bf16 %v4590_v57  ;;  %v4591_v47 = vunpack.i.l.bf16 %v4590_v57  ;;  %579 = vmatpush1.bf16.msra.mxu1 %v490_v44  ;;  %3893 = vmatpush3.bf16.msra.mxu0 %v492_v35  ;;  %v407_v19 = vsel %vm403_vm12, %v4576_v43, %v4577_v45  ;;  %v406_v14 = vsel %vm403_vm12, %v4542_v3, %v4576_v43 }
 0x1a0   :  { %v4580_v62 = vpop.permute.xlu0 %4579  ;;  %v496_v58 = vpack.c.bf16 %v407_v19, %v382_v49  ;;  %3894 = vmatprep.subr.bf16.mxu0 %v6672_v17  ;;  %v497_v48 = vpack.c.bf16 %v4577_v45, %v4567_v25  ;;  %v495_v40 = vpack.c.bf16 %v406_v14, %v381_v2  ;;  %v782_v33 = vsel %vm519_vm0, %v762_v27, 0  ;;  %v60_v25 = vld [vmem:[%s6659_s1] sm:$0x1f] }
 0x1a1   :  { %v4582_v63 = vunpack.i.h.bf16 %v4580_v62  ;;  %v4581_v1 = vunpack.i.l.bf16 %v4580_v62  ;;  %v477_v7 = vsel %vm473_vm15, %v4591_v47, %v4592_v36  ;;  %v476_v9 = vsel %vm473_vm15, %v5029_v31, %v4591_v47 }
 0x1a2   :  { %580 = vmatprep.subr.bf16.mxu1 %v496_v58  ;;  %v507_v54 = vpack.c.bf16 %v4592_v36, %v4592_v36  ;;  %v506_v12 = vpack.c.bf16 %v477_v7, %v477_v7  ;;  %v505_v24 = vpack.c.bf16 %v476_v9, %v476_v9  ;;  %v5132_v29 = vrot.slane %v60_v25, %v4761_v5 }
 0x1a3   :  { %3895 = vmatpush3.bf16.msra.mxu0 %v497_v48  ;;  %v452_v8 = vsel %vm448_vm13, %v4581_v1, %v4582_v63  ;;  %v451_v3 = vsel %vm448_vm13, %v4527_v23, %v4581_v1  ;;  %581 = vmatpush1.bf16.msra.mxu1 %v495_v40  ;;  %v502_v10 = vpack.c.bf16 %v4582_v63, %v4587_v46  ;;  %v732_v40 = vld [vmem:[%s6664_s6] sm:$0xff] }
 0x1a4   :  { %v501_v60 = vpack.c.bf16 %v452_v8, %v432_v6  ;;  %3896 = vmatprep.subr.bf16.mxu0 %v6672_v17  ;;  %v500_v51 = vpack.c.bf16 %v451_v3, %v431_v0  ;;  %v533_v59 = vsel %vm519_vm0, %v507_v54, 0  ;;  %v761_v23 = vpack.c.bf16 %v4820_v26, %v4820_v26  ;;  %v765_v6 = vld [vmem:[%s6667_s9] sm:$0xff] }
 0x1a5   :  { %v527_v31 = vsel %vm519_vm0, %v505_v24, 0  ;;  %v776_v26 = vsel %vm519_vm0, %v760_v28, 0  ;;  %v5135_v35 = vrot.slane %v60_v25, %v4775_v11  ;;  %v5140_v55 = vrot.slane %v60_v25, %v4786_v15 }
 0x1a6   :  { %582 = vmatprep.subr.bf16.mxu1 %v501_v60  ;;  %v5143_v5 = vrot.slane %v60_v25, %v4788_v16 }
 0x1a7   :  { %3897 = vmatpush3.bf16.msra.mxu0 %v502_v10  ;;  %583 = vmatpush1.bf16.msra.mxu1 %v500_v51 }
 0x1a8   :  { %3898 = vmatprep.subr.bf16.mxu0 %v6672_v17  ;;  %3400 = vmatprep.subr.msk.bf16.mxu1 %vm519_vm0, %v506_v12 }
 0x1ab   :  { %3899 = vmatpush3.bf16.msra.mxu0 %v533_v59  ;;  %585 = vmatpush1.bf16.msra.mxu1 %v527_v31 }
 0x1ac   :  { %3403 = vmatprep.subr.msk.bf16.mxu1 %vm519_vm0, %v761_v23 }
 0x1ae   :  { %3901 = vmatmul.mubr.msk.bf16.vlgmr.msra.gmra.mrb[4].mxu0 %vm515_vm1, %v5054_v21  ;;  %3401 = vmatmul.mubr.msk.bf16.vlgmr.msra.gmra.mrb[0].mxu1 %vm515_vm1, %v5054_v21  ;;  %v764_v21 = vpack.c.bf16 %v4833_v32, %v4833_v32  ;;  %v5129_v32 = vrot.slane %v60_v25, %v4759_v4 }
 0x1af   :  { %791 = vmatpush1.bf16.msra.mxu1 %v776_v26  ;;  %822 = vmatprep.mubr.bf16.mxu1 %v4665_v61 }
 0x1b0   :  { %3405 = vmatprep.subr.msk.bf16.mxu1 %vm519_vm0, %v763_v53  ;;  %v788_v20 = vsel %vm519_vm0, %v764_v21, 0 }
 0x1b1   :  { %v513_v18 = vpop.permute.xlu0 %512 }
 0x1b6   :  { %3404 = vmatmul.mubr.msk.bf16.vlgmr.msra.gmra.mrb[4].mxu1 %vm771_vm3, %v759_v13 }
 0x1b7   :  { %832 = vmatpush1.bf16.msra.mxu1 %v782_v33  ;;  %863 = vmatprep.mubr.bf16.mxu1 %v4665_v61 }
 0x1b8   :  { %3904 = vmatprep.subr.bf16.mxu1 %v6672_v17 }
 0x1be   :  { %3406 = vmatmul.mubr.msk.bf16.vlgmr.msra.gmra.mrb[8].mxu1 %vm771_vm3, %v759_v13 }
 0x1bf   :  { %3905 = vmatpush3.bf16.msra.mxu1 %v788_v20  ;;  %3906 = vmatprep.mubr.msk.bf16.mxu1 %vm4667_vm2, %v6672_v17  ;;  %v1077_v17 = vld [vmem:[#allocation2 + $0xf8] sm:$0xff] }
 0x1c6   :  { %3907 = vmatmul.mubr.msk.bf16.vlgmr.msra.gmra.mrb[12].mxu1 %vm771_vm3, %v759_v13 }
 0x26d   :  { %v569_v30 = vpop.f32.mrb[0].mxu0 }
 0x26e   :  { %v571_v22 = vpop.f32.mrb[1].mxu0  ;;  %v570_v41 = vadd.f32 %v569_v30, %v513_v18  ;;  %v743_v30 = vld [vmem:[%s6665_s7] sm:$0xff] }
 0x26f   :  { %v573_v52 = vpop.f32.mrb[2].mxu0  ;;  %v572_v61 = vadd.f32 %v571_v22, %v513_v18 }
 0x270   :  { %v574_v50 = vpop.f32.mrb[3].mxu0  ;;  %v657_v56 = vmax.f32 %v570_v41, 0.0 }
 0x271   :  { %v658_v34 = vmax.f32 %v572_v61, 0.0 }
 0x272   :  { %v688_v43 = vmul.f32 %v5129_v32, %v657_v56 }
 0x273   :  { %v689_v44 = vmul.f32 %v5132_v29, %v658_v34 }
 0x275   :  { %v693_v14 = vadd.f32 %v689_v44, %v688_v43 }
 0x281   :  { %v651_v38 = vpop.f32.mrb[4].mxu0  ;;  %v610_v37 = vpop.f32.mrb[0].mxu1 }
 0x282   :  { %v652_v39 = vadd.f32 %v651_v38, %v513_v18  ;;  %v3902_v42 = vpop.f32.mrb[5].mxu0  ;;  %v611_v45 = vadd.f32 %v610_v37, %v513_v18  ;;  %v612_v46 = vpop.f32.mrb[1].mxu1 }
 0x283   :  { %v654_v4 = vpop.f32.mrb[6].mxu0  ;;  %v613_v36 = vadd.f32 %v612_v46, %v513_v18  ;;  %v614_v47 = vpop.f32.mrb[2].mxu1 }
 0x284   :  { %v661_v57 = vmax.f32 %v652_v39, 0.0  ;;  %v3903_v49 = vpop.f32.mrb[7].mxu0  ;;  %v659_v19 = vmax.f32 %v611_v45, 0.0  ;;  %v615_v11 = vpop.f32.mrb[3].mxu1 }
 0x285   :  { %v660_v62 = vmax.f32 %v613_v36, 0.0 }
 0x286   :  { %v690_v58 = vmul.f32 %v5135_v35, %v659_v19  ;;  %v692_v48 = vmul.f32 %v5140_v55, %v661_v57 }
 0x287   :  { %v691_v63 = vmul.f32 %v5143_v5, %v660_v62 }
 0x288   :  { %v694_v1 = vadd.f32 %v693_v14, %v690_v58  ;;  %v697_v16 = vsel %vm696_vm4, %v692_v48, 0.0 }
 0x289   :  { %v824_v22 = vpop.f32.mrb[4].mxu1 }
 0x28a   :  { %v695_v15 = vadd.f32 %v694_v1, %v691_v63  ;;  %v826_v52 = vpop.f32.mrb[5].mxu1 }
 0x28b   :  { %v828_v50 = vpop.f32.mrb[6].mxu1 }
 0x28c   :  { %v698_v2 = vadd.f32 %v697_v16, %v695_v15  ;;  %v829_v18 = vpop.f32.mrb[7].mxu1 }
 0x28e   :  { %699 = vadd.xlane.f32.xlu1 %v698_v2 }
 0x291   :  { %v865_v41 = vpop.f32.mrb[8].mxu1 }
 0x292   :  { %v867_v61 = vpop.f32.mrb[9].mxu1 }
 0x293   :  { %v869_v25 = vpop.f32.mrb[10].mxu1 }
 0x294   :  { %v976_v25 = vld [vmem:[%s6669_s11] sm:$0xff] }
 0x29f   :  { %735 = vperm.xlu1 %4594, %v732_v40  }
 0x2a3   :  { %768 = vperm.xlu1 %4594, %v765_v6  }
 0x31b   :  { %v700_v7 = vpop.xlane.xlu1 %699 }
 0x31c   :  { %v701_v8 = vmul.f32 0.001953125, %v700_v7 }
 0x31e   :  { %v702_v0 = vsub.f32 %v657_v56, %v701_v8  ;;  %v703_v3 = vsub.f32 %v658_v34, %v701_v8  ;;  %v704_v60 = vsub.f32 %v659_v19, %v701_v8  ;;  %v705_v51 = vsub.f32 %v660_v62, %v701_v8  ;;  %v870_v56 = vpop.f32.mrb[11].mxu1 }
 0x31f   :  { %v706_v9 = vsub.f32 %v661_v57, %v701_v8  ;;  %v906_v34 = vpop.f32.mrb[12].mxu1  ;;  %v736_v44 = vpop.permute.xlu1 %735 }
 0x320   :  { %v707_v10 = vmul.f32 %v702_v0, %v5129_v32  ;;  %v708_v54 = vmul.f32 %v703_v3, %v5132_v29  ;;  %v709_v12 = vmul.f32 %v704_v60, %v5135_v35  ;;  %v710_v59 = vmul.f32 %v705_v51, %v5143_v5  ;;  %v3908_v38 = vpop.f32.mrb[13].mxu1 }
 0x321   :  { %v711_v24 = vmul.f32 %v706_v9, %v5140_v55  ;;  %v909_v37 = vpop.f32.mrb[14].mxu1 }
 0x322   :  { %v712_v23 = vmul.f32 %v707_v10, %v707_v10  ;;  %v713_v28 = vmul.f32 %v708_v54, %v708_v54  ;;  %v714_v31 = vmul.f32 %v709_v12, %v709_v12  ;;  %v715_v27 = vmul.f32 %v710_v59, %v710_v59  ;;  %v3909_v39 = vpop.f32.mrb[15].mxu1 }
 0x323   :  { %v716_v26 = vmul.f32 %v711_v24, %v711_v24  ;;  %v769_v36 = vpop.permute.xlu1 %768 }
 0x324   :  { %v717_v53 = vadd.f32 %v713_v28, %v712_v23  ;;  %v825_v63 = vadd.f32 %v824_v22, %v769_v36  ;;  %v827_v6 = vadd.f32 %v826_v52, %v769_v36  ;;  %v866_v7 = vadd.f32 %v865_v41, %v769_v36 }
 0x325   :  { %v720_v21 = vsel %vm696_vm4, %v716_v26, 0.0  ;;  %v868_v8 = vadd.f32 %v867_v61, %v769_v36  ;;  %v907_v54 = vadd.f32 %v906_v34, %v769_v36 }
 0x326   :  { %v718_v13 = vadd.f32 %v717_v53, %v714_v31 }
 0x328   :  { %v719_v33 = vadd.f32 %v718_v13, %v715_v27 }
 0x32a   :  { %v721_v20 = vadd.f32 %v720_v21, %v719_v33 }
 0x32c   :  { %722 = vadd.xlane.f32.xlu0 %v721_v20 }
 0x342   :  { %746 = vperm.xlu0 %4593, %v743_v30  }
 0x3b9   :  { %v723_v42 = vpop.xlane.xlu0 %722 }
 0x3ba   :  { %v724_v45 = vmul.f32 0.001953125, %v723_v42 }
 0x3bc   :  { %v725_v43 = vadd.f32 1e-05, %v724_v45 }
 0x3be   :  { %4595 = vrsqrt.f32 %v725_v43 }
 0x3c1   :  { %v747_v48 = vpop.permute.xlu0 %746 }
 0x3c8   :  { %v4596_v46 = vpop.eup %4595 }
 0x3c9   :  { %v727_v4 = vmul.f32 %v4596_v46, %v702_v0  ;;  %v728_v57 = vmul.f32 %v4596_v46, %v703_v3  ;;  %v729_v47 = vmul.f32 %v4596_v46, %v704_v60  ;;  %v730_v49 = vmul.f32 %v4596_v46, %v705_v51 }
 0x3ca   :  { %v731_v19 = vmul.f32 %v4596_v46, %v706_v9 }
 0x3cb   :  { %v738_v11 = vmul.f32 %v736_v44, %v727_v4  ;;  %v739_v62 = vmul.f32 %v736_v44, %v728_v57  ;;  %v740_v58 = vmul.f32 %v736_v44, %v729_v47  ;;  %v741_v14 = vmul.f32 %v736_v44, %v730_v49 }
 0x3cc   :  { %v742_v1 = vmul.f32 %v736_v44, %v731_v19 }
 0x3cd   :  { %v749_v15 = vadd.f32 %v747_v48, %v738_v11  ;;  %v750_v16 = vadd.f32 %v747_v48, %v739_v62  ;;  %v751_v2 = vadd.f32 %v747_v48, %v740_v58  ;;  %v752_v40 = vadd.f32 %v747_v48, %v741_v14 }
 0x3ce   :  { %v753_v0 = vadd.f32 %v747_v48, %v742_v1 }
 0x3cf   :  { %v754_v3 = vmul.f32 %v749_v15, %v5129_v32  ;;  %v755_v60 = vmul.f32 %v750_v16, %v5132_v29  ;;  %v756_v51 = vmul.f32 %v751_v2, %v5135_v35  ;;  %v757_v9 = vmul.f32 %v752_v40, %v5143_v5 }
 0x3d0   :  { %v758_v10 = vmul.f32 %v753_v0, %v5140_v55 }
 0x3d1   :  { %v912_v12 = vadd.f32 %v825_v63, %v754_v3  ;;  %v913_v24 = vadd.f32 %v827_v6, %v755_v60  ;;  %v914_v59 = vadd.f32 %v866_v7, %v756_v51  ;;  %v915_v23 = vadd.f32 %v868_v8, %v757_v9  ;;  %v1062_v9 = vld [vmem:[#allocation2 + $0x80] sm:$0xff] }
 0x3d2   :  { %v916_v28 = vadd.f32 %v907_v54, %v758_v10  ;;  %v1063_v10 = vld [vmem:[#allocation2 + $0x88] sm:$0xff]  ;;  %v1046_v54 = vld [vmem:[#allocation2] sm:$0xff] }
 0x3d3   :  { %v917_v31 = vmax.f32 %v912_v12, 0.0  ;;  %v918_v53 = vmax.f32 %v913_v24, 0.0  ;;  %v919_v26 = vmax.f32 %v914_v59, 0.0  ;;  %v920_v13 = vmax.f32 %v915_v23, 0.0  ;;  %v1047_v59 = vld [vmem:[#allocation2 + $0x8] sm:$0xff] }
 0x3d4   :  { %v921_v27 = vmax.f32 %v916_v28, 0.0  ;;  %v1170_v12 = vand.u32 4294901760, %v1062_v9  ;;  %v1173_v24 = vand.u32 4294901760, %v1063_v10  ;;  %v1122_v23 = vand.u32 4294901760, %v1046_v54  ;;  %v1064_v28 = vld [vmem:[#allocation2 + $0x90] sm:$0xff] }
 0x3d5   :  { %v922_v33 = vmul.f32 %v917_v31, %v5129_v32  ;;  %v923_v21 = vmul.f32 %v918_v53, %v5132_v29  ;;  %v924_v20 = vmul.f32 %v919_v26, %v5135_v35  ;;  %v925_v52 = vmul.f32 %v920_v13, %v5143_v5 }
 0x3d6   :  { %v926_v22 = vmul.f32 %v921_v27, %v5140_v55 }
 0x3d7   :  { %v927_v30 = vadd.f32 %v923_v21, %v922_v33  ;;  %v1048_v33 = vld [vmem:[#allocation2 + $0x10] sm:$0xff]  ;;  %v1049_v21 = vld [vmem:[#allocation2 + $0x18] sm:$0xff] }
 0x3d8   :  { %v930_v41 = vsel %vm696_vm4, %v926_v22, 0.0  ;;  %v5222_v22 = vsub.f32 %v1063_v10, %v1173_v24  ;;  %v1055_v10 = vld [vmem:[#allocation2 + $0x48] sm:$0xff] }
 0x3d9   :  { %v928_v50 = vadd.f32 %v927_v30, %v924_v20  ;;  %v5220_v30 = vsub.f32 %v1062_v9, %v1170_v12  ;;  %v1054_v9 = vld [vmem:[#allocation2 + $0x40] sm:$0xff] }
 0x3db   :  { %v929_v18 = vadd.f32 %v928_v50, %v925_v52  ;;  %v5224_v52 = vsub.f32 %v1046_v54, %v1122_v23  ;;  %v1066_v50 = vld [vmem:[#allocation2 + $0xa0] sm:$0xff] }
 0x3dd   :  { %v931_v61 = vadd.f32 %v930_v41, %v929_v18 }
 0x3df   :  { %932 = vadd.xlane.f32.xlu1 %v931_v61 }
 0x3f0   :  { %979 = vperm.xlu1 %4594, %v976_v25   ;;  %v1128_v25 = vand.u32 4294901760, %v1048_v33 }
 0x46c   :  { %v933_v56 = vpop.xlane.xlu1 %932 }
 0x46d   :  { %v934_v34 = vmul.f32 0.001953125, %v933_v56  ;;  %v1067_v56 = vld [vmem:[#allocation2 + $0xa8] sm:$0xff] }
 0x46f   :  { %v935_v38 = vsub.f32 %v917_v31, %v934_v34  ;;  %v936_v37 = vsub.f32 %v918_v53, %v934_v34  ;;  %v937_v39 = vsub.f32 %v919_v26, %v934_v34  ;;  %v938_v42 = vsub.f32 %v920_v13, %v934_v34  ;;  %v1065_v31 = vld [vmem:[#allocation2 + $0x98] sm:$0xff] }
 0x470   :  { %v5178_v45 = vsub.f32 %v921_v27, %v934_v34  ;;  %v5201_v0 = vpop.permute.xlu1 %979  ;;  %v1125_v26 = vand.u32 4294901760, %v1047_v59  ;;  %v1176_v27 = vand.u32 4294901760, %v1064_v28  ;;  %v1179_v13 = vand.u32 4294901760, %v1065_v31  ;;  %v1050_v34 = vld [vmem:[#allocation2 + $0x20] sm:$0xff] }
 0x471   :  { %v940_v43 = vmul.f32 %v935_v38, %v5129_v32  ;;  %v941_v44 = vmul.f32 %v936_v37, %v5132_v29  ;;  %v942_v46 = vmul.f32 %v937_v39, %v5135_v35  ;;  %v943_v57 = vmul.f32 %v938_v42, %v5143_v5  ;;  %v965_v29 = vld [vmem:[%s6668_s10] sm:$0xff]  ;;  %s4669_s10 = smov [#allocation5]  }
 0x472   :  { %v944_v4 = vmul.f32 %v5178_v45, %v5140_v55  ;;  %v5226_v18 = vsub.f32 %v1047_v59, %v1125_v26  ;;  %v5228_v41 = vsub.f32 %v1064_v28, %v1176_v27  ;;  %v5230_v61 = vsub.f32 %v1065_v31, %v1179_v13  ;;  %s3389_s2 = sshll.u32 %s4669_s10, 4  ;;  %s3390_s2 = int_to_ptr.vmem [resolvable:$true] %s3389_s2 }
 0x473   :  { %v945_v36 = vmul.f32 %v940_v43, %v940_v43  ;;  %v946_v47 = vmul.f32 %v941_v44, %v941_v44  ;;  %v947_v49 = vmul.f32 %v942_v46, %v942_v46  ;;  %v948_v62 = vmul.f32 %v943_v57, %v943_v57  ;;  %v1068_v44 = vld [vmem:[#allocation2 + $0xb0] sm:$0xff]  ;;  %s4621_s3 = scalar_lea.vmem %s3390_s2, 128  ;;  %p4626_p9 = scmp.lt.s32.totalorder %s3390_s2, %s3390_s2 }
 0x474   :  { %v949_v11 = vmul.f32 %v944_v4, %v944_v4  ;;  %v5236_v43 = vpack.c.bf16 %v1125_v26, %v1122_v23  ;;  %v4090_v46 = vpack.c.bf16 %v5226_v18, %v5224_v52  ;;  %v4092_v4 = vpack.c.bf16 %v5230_v61, %v5228_v41  ;;  %p4622_p8 = scmp.ne.s32.totalorder %s3390_s2, %s4621_s3  ;;  %p4627_p10 = scmp.lt.s32.totalorder %s4621_s3, %s4621_s3 }
 0x475   :  { %v950_v19 = vadd.f32 %v946_v47, %v945_v36  ;;  %v5246_v57 = vsub.f32 %v1048_v33, %v1128_v25  ;;  %v1182_v36 = vand.u32 4294901760, %v1066_v50  ;;  %v1146_v33 = vand.u32 4294901760, %v1054_v9 }
 0x476   :  { %v953_v48 = vsel %vm696_vm4, %v949_v11, 0.0  ;;  %6796 = vst [vmem:[#allocation9_spill] sm:$0xff] %v5236_v43  ;;  %p4628_p11 = por %p4627_p10, %p4626_p9 }
 0x477   :  { %v951_v58 = vadd.f32 %v950_v19, %v947_v49  ;;  %v1185_v49 = vand.u32 4294901760, %v1067_v56  ;;  %v1134_v19 = vand.u32 4294901760, %v1050_v34 }
 0x478   :  { %p4629_p12 = pnand %p4628_p11, %p4622_p8 }
 0x479   :  { %v952_v14 = vadd.f32 %v951_v58, %v948_v62  ;;  %v1069_v62 = vld [vmem:[#allocation2 + $0xb8] sm:$0xff]  ;;  %v1052_v58 = vld [vmem:[#allocation2 + $0x30] sm:$0xff] }
 0x47b   :  { %v954_v32 = vadd.f32 %v953_v48, %v952_v14  ;;  %v1053_v14 = vld [vmem:[#allocation2 + $0x38] sm:$0xff]  ;;  %v5252_v48 = vsub.f32 %v1066_v50, %v1182_v36 }
 0x47d   :  { %955 = vadd.xlane.f32.xlu0 %v954_v32  ;;  %v5254_v32 = vpack.c.bf16 %v1179_v13, %v1176_v27  ;;  %v5287_v27 = vld [vmem:[#allocation2 + $0xd0] sm:$0xff] }
 0x47f   :  { %6797 = vst [vmem:[#allocation10_spill] sm:$0xff] %v5254_v32 }
 0x493   :  { %968 = vperm.xlu0 %4593, %v965_v29  }
 0x50a   :  { %v956_v35 = vpop.xlane.xlu0 %955 }
 0x50b   :  { %v957_v55 = vmul.f32 0.001953125, %v956_v35  ;;  %v1188_v35 = vand.u32 4294901760, %v1068_v44 }
 0x50d   :  { %v958_v5 = vadd.f32 1e-05, %v957_v55 }
 0x50f   :  { %4597 = vrsqrt.f32 %v958_v5  ;;  %v5260_v5 = vsub.f32 %v1067_v56, %v1185_v49 }
 0x511   :  { %v4096_v54 = vpack.c.bf16 %v5260_v5, %v5252_v48 }
 0x512   :  { %v5196_v40 = vpop.permute.xlu0 %968 }
 0x519   :  { %v5190_v63 = vpop.eup %4597 }
 0x51a   :  { %v962_v1 = vmul.f32 %v5190_v63, %v937_v39  ;;  %v961_v15 = vmul.f32 %v5190_v63, %v936_v37  ;;  %v963_v16 = vmul.f32 %v5190_v63, %v938_v42  ;;  %v960_v2 = vmul.f32 %v5190_v63, %v935_v38  ;;  %v1051_v38 = vld [vmem:[#allocation2 + $0x28] sm:$0xff] }
 0x51b   :  { %v4088_v37 = vpack.c.bf16 %v5222_v22, %v5220_v30  ;;  %v1131_v39 = vand.u32 4294901760, %v1049_v21  ;;  %v5234_v42 = vpack.c.bf16 %v1173_v24, %v1170_v12  ;;  %v1137_v11 = vand.u32 4294901760, %v1051_v38 }
 0x51c   :  { %v973_v6 = vmul.f32 %v5196_v40, %v962_v1  ;;  %v972_v7 = vmul.f32 %v5196_v40, %v961_v15  ;;  %v974_v8 = vmul.f32 %v5196_v40, %v963_v16  ;;  %v971_v3 = vmul.f32 %v5196_v40, %v960_v2  ;;  %v5266_v16 = vld [vmem:[#allocation2 + $0xc0] sm:$0xff] }
 0x51d   :  { %6795 = vst [vmem:[#allocation8_spill] sm:$0xff] %v5234_v42  ;;  %4089 = vmatprep.subr.bf16.mxu0 %v4088_v37  ;;  %v5248_v47 = vsub.f32 %v1049_v21, %v1131_v39  ;;  %4025 = vmatprep.subr.bf16.mxu1 %v5234_v42  ;;  %v5256_v29 = vpack.c.bf16 %v1131_v39, %v1128_v25  ;;  %v1191_v2 = vand.u32 4294901760, %v1069_v62  ;;  %v1194_v26 = vand.u32 4294901760, %v5266_v16  ;;  %v1073_v25 = vld [vmem:[#allocation2 + $0xd8] sm:$0xff] }
 0x51e   :  { %v5205_v60 = vadd.f32 %v5201_v0, %v973_v6  ;;  %v5208_v51 = vadd.f32 %v5201_v0, %v972_v7  ;;  %v5215_v53 = vadd.f32 %v5201_v0, %v974_v8  ;;  %v5218_v20 = vadd.f32 %v5201_v0, %v971_v3  ;;  %4091 = vmatpush3.bf16.msra.mxu0 %v4090_v46  ;;  %v1071_v3 = vld [vmem:[#allocation2 + $0xc8] sm:$0xff] }
 0x51f   :  { %4027 = vmatpush3.bf16.msra.mxu1 %v5236_v43  ;;  %6798 = vst [vmem:[#allocation11_spill] sm:$0xff] %v5256_v29  ;;  %4093 = vmatprep.subr.bf16.mxu0 %v4092_v4  ;;  %v4094_v55 = vpack.c.bf16 %v5248_v47, %v5246_v57  ;;  %v5262_v1 = vsub.f32 %v1050_v34, %v1134_v19  ;;  %v1140_v7 = vand.u32 4294901760, %v1052_v58  ;;  %v1143_v8 = vand.u32 4294901760, %v1053_v14  ;;  %v5572_v43 = vld [vmem:[#allocation2 + $0x128] sm:$0xff] }
 0x520   :  { %997 = vrot.lane.b32.xlu0 %v5205_v60, %s4658_s21  ;;  %995 = vrot.lane.b32.xlu1 %v5208_v51, %s4658_s21  ;;  %v5264_v15 = vsub.f32 %v1051_v38, %v1137_v11  ;;  %v5269_v6 = vsub.f32 %v1068_v44, %v1188_v35  ;;  %v5275_v24 = vpack.c.bf16 %v1185_v49, %v1182_v36  ;;  %v1197_v13 = vand.u32 4294901760, %v1071_v3 }
 0x521   :  { %4029 = vmatprep.subr.bf16.mxu1 %v5254_v32  ;;  %v5277_v59 = vpack.c.bf16 %v1137_v11, %v1134_v19  ;;  %v5280_v23 = vsub.f32 %v1069_v62, %v1191_v2  ;;  %v5282_v28 = vsub.f32 %v1052_v58, %v1140_v7  ;;  %v5284_v31 = vsub.f32 %v1053_v14, %v1143_v8  ;;  %v1056_v14 = vld [vmem:[#allocation2 + $0x50] sm:$0xff] }
 0x522   :  { %v4098_v12 = vpack.c.bf16 %v5264_v15, %v5262_v1  ;;  %6799 = vst [vmem:[#allocation12_spill] sm:$0xff] %v5275_v24  ;;  %4095 = vmatpush3.bf16.msra.mxu0 %v4094_v55  ;;  %v1149_v21 = vand.u32 4294901760, %v1055_v10  ;;  %v5290_v50 = vpack.c.bf16 %v1191_v2, %v1188_v35  ;;  %v5295_v34 = vsub.f32 %v5266_v16, %v1194_v26  ;;  %v1057_v35 = vld [vmem:[#allocation2 + $0x58] sm:$0xff] }
 0x523   :  { %6800 = vst [vmem:[#allocation13_spill] sm:$0xff] %v5277_v59  ;;  %4031 = vmatpush3.bf16.msra.mxu1 %v5256_v29  ;;  %4097 = vmatprep.subr.bf16.mxu0 %v4096_v54  ;;  %v4100_v56 = vpack.c.bf16 %v5280_v23, %v5269_v6  ;;  %v4102_v38 = vpack.c.bf16 %v5284_v31, %v5282_v28  ;;  %v1200_v39 = vand.u32 4294901760, %v5287_v27  ;;  %v1203_v36 = vand.u32 4294901760, %v1073_v25  ;;  %v1058_v54 = vld [vmem:[#allocation2 + $0x60] sm:$0xff] }
 0x524   :  { %999 = vrot.lane.b32.xlu1 %v5215_v53, %s4658_s21  ;;  %993 = vrot.lane.b32.xlu0 %v5218_v20, %s4658_s21  ;;  %6801 = vst [vmem:[#allocation14_spill] sm:$0xff] %v5290_v50  ;;  %v5299_v37 = vsub.f32 %v1071_v3, %v1197_v13  ;;  %v5303_v44 = vsub.f32 %v1054_v9, %v1146_v33  ;;  %v1152_v55 = vand.u32 4294901760, %v1056_v14  ;;  %v1155_v16 = vand.u32 4294901760, %v1057_v35  ;;  %v1075_v3 = vld [vmem:[#allocation2 + $0xe8] sm:$0xff] }
 0x525   :  { %4033 = vmatprep.subr.bf16.mxu1 %v5275_v24  ;;  %v5305_v46 = vsub.f32 %v1055_v10, %v1149_v21  ;;  %v5307_v4 = vpack.c.bf16 %v1143_v8, %v1140_v7  ;;  %v5313_v19 = vsub.f32 %v5287_v27, %v1200_v39  ;;  %v5315_v11 = vsub.f32 %v1073_v25, %v1203_v36  ;;  %v1074_v8 = vld [vmem:[#allocation2 + $0xe0] sm:$0xff] }
 0x526   :  { %4099 = vmatpush3.bf16.msra.mxu0 %v4098_v12  ;;  %v4104_v49 = vpack.c.bf16 %v5299_v37, %v5295_v34  ;;  %v5322_v2 = vsub.f32 %v1056_v14, %v1152_v55  ;;  %v5324_v7 = vsub.f32 %v1057_v35, %v1155_v16  ;;  %v1206_v9 = vand.u32 4294901760, %v1074_v8  ;;  %v1059_v12 = vld [vmem:[#allocation2 + $0x68] sm:$0xff]  ;;  %v1076_v35 = vld [vmem:[#allocation2 + $0xf0] sm:$0xff]  ;;  %6836 = vst [vmem:[#allocation45_spill] sm:$0xff] %v5572_v43 }
 0x527   :  { %4035 = vmatpush3.bf16.msra.mxu1 %v5277_v59  ;;  %6802 = vst [vmem:[#allocation15_spill] sm:$0xff] %v5307_v4  ;;  %4101 = vmatprep.subr.bf16.mxu0 %v4100_v56  ;;  %v4106_v62 = vpack.c.bf16 %v5305_v46, %v5303_v44  ;;  %v4108_v58 = vpack.c.bf16 %v5315_v11, %v5313_v19  ;;  %v1209_v10 = vand.u32 4294901760, %v1075_v3 }
 0x528   :  { %4037 = vmatprep.subr.bf16.mxu1 %v5290_v50  ;;  %v4110_v27 = vpack.c.bf16 %v5324_v7, %v5322_v2  ;;  %v5328_v25 = vpack.c.bf16 %v1197_v13, %v1194_v26  ;;  %v5330_v56 = vpack.c.bf16 %v1149_v21, %v1146_v33  ;;  %v1212_v33 = vand.u32 4294901760, %v1076_v35 }
 0x529   :  { %v1215_v21 = vand.u32 4294901760, %v1077_v17  ;;  %v5352_v59 = vpack.c.bf16 %v1155_v16, %v1152_v55  ;;  %v1348_v55 = vand.u32 4294901760, %v5220_v30  ;;  %v1355_v16 = vand.u32 4294901760, %v5222_v22 }
 0x52a   :  { %4103 = vmatpush3.bf16.msra.mxu0 %v4102_v38  ;;  %6803 = vst [vmem:[#allocation16_spill] sm:$0xff] %v5328_v25  ;;  %6804 = vst [vmem:[#allocation17_spill] sm:$0xff] %v5330_v56  ;;  %v1158_v38 = vand.u32 4294901760, %v1058_v54 }
 0x52b   :  { %4039 = vmatpush3.bf16.msra.mxu1 %v5307_v4  ;;  %4105 = vmatprep.subr.bf16.mxu0 %v4104_v49  ;;  %v5332_v49 = vsub.f32 %v1074_v8, %v1206_v9  ;;  %v1060_v8 = vld [vmem:[#allocation2 + $0x70] sm:$0xff]  ;;  %6806 = vst [vmem:[#allocation19_spill] sm:$0xff] %v5352_v59 }
 0x52c   :  { %4041 = vmatprep.subr.bf16.mxu1 %v5328_v25  ;;  %v5337_v14 = vsub.f32 %v1058_v54, %v1158_v38  ;;  %v1164_v4 = vand.u32 4294901760, %v1060_v8  ;;  %v5348_v25 = vsub.f32 %v1076_v35, %v1212_v33 }
 0x52e   :  { %4107 = vmatpush3.bf16.msra.mxu0 %v4106_v62  ;;  %v5334_v62 = vsub.f32 %v1075_v3, %v1209_v10  ;;  %v1061_v3 = vld [vmem:[#allocation2 + $0x78] sm:$0xff] }
 0x52f   :  { %4109 = vmatprep.subr.bf16.mxu0 %v4108_v58  ;;  %v1161_v58 = vand.u32 4294901760, %v1059_v12  ;;  %4043 = vmatpush3.bf16.msra.mxu1 %v5330_v56  ;;  %v1167_v50 = vand.u32 4294901760, %v1061_v3  ;;  %v5350_v56 = vsub.f32 %v1077_v17, %v1215_v21  ;;  %v964_v17 = vmul.f32 %v5190_v63, %v5178_v45 }
 0x530   :  { %v4112_v26 = vpack.c.bf16 %v5334_v62, %v5332_v49  ;;  %v5379_v63 = vpack.c.bf16 %v1215_v21, %v1212_v33 }
 0x531   :  { %v5342_v13 = vsub.f32 %v1059_v12, %v1161_v58  ;;  %v5354_v12 = vsub.f32 %v1060_v8, %v1164_v4  ;;  %v5356_v24 = vsub.f32 %v1061_v3, %v1167_v50  ;;  %v5370_v3 = vpack.c.bf16 %v1161_v58, %v1158_v38 }
 0x532   :  { %4111 = vmatpush3.bf16.msra.mxu0 %v4110_v27  ;;  %v5346_v27 = vpack.c.bf16 %v1203_v36, %v1200_v39  ;;  %v5366_v36 = vpack.c.bf16 %v1209_v10, %v1206_v9  ;;  %v975_v45 = vmul.f32 %v5196_v40, %v964_v17  ;;  %6809 = vst [vmem:[#allocation22_spill] sm:$0xff] %v5379_v63  ;;  %v1439_v17 = vand.u32 4294901760, %v5334_v62 }
 0x533   :  { %4113 = vmatprep.subr.bf16.mxu0 %v4112_v26  ;;  %v4114_v54 = vpack.c.bf16 %v5342_v13, %v5337_v14  ;;  %v4116_v26 = vpack.c.bf16 %v5350_v56, %v5348_v25  ;;  %v4118_v39 = vpack.c.bf16 %v5356_v24, %v5354_v12  ;;  %6808 = vst [vmem:[#allocation21_spill] sm:$0xff] %v5370_v3 }
 0x534   :  { %6805 = vst [vmem:[#allocation18_spill] sm:$0xff] %v5346_v27  ;;  %4045 = vmatprep.subr.bf16.mxu1 %v5346_v27  ;;  %6807 = vst [vmem:[#allocation20_spill] sm:$0xff] %v5366_v36  ;;  %v1349_v9 = vsub.f32 %v5220_v30, %v1348_v55  ;;  %v5386_v58 = vpack.c.bf16 %v1167_v50, %v1164_v4  ;;  %v986_v4 = vadd.f32 %v5201_v0, %v975_v45 }
 0x535   :  { %4047 = vmatpush3.bf16.msra.mxu1 %v5352_v59  ;;  %v4152_v59 = vpack.c.bf16 %v1355_v16, %v1348_v55  ;;  %v1432_v0 = vand.u32 4294901760, %v5332_v49  ;;  %v1320_v55 = vand.u32 4294901760, %v5337_v14 }
 0x536   :  { %4115 = vmatpush3.bf16.msra.mxu0 %v4114_v54  ;;  %4049 = vmatprep.subr.bf16.mxu1 %v5366_v36  ;;  %6810 = vst [vmem:[#allocation23_spill] sm:$0xff] %v5386_v58  ;;  %v5406_v21 = vsel %vm696_vm4, %v986_v4, 0.0 }
 0x537   :  { %4117 = vmatprep.subr.bf16.mxu0 %v4116_v26  ;;  %v1433_v4 = vsub.f32 %v5332_v49, %v1432_v0 }
 0x539   :  { %4051 = vmatpush3.bf16.msra.mxu1 %v5370_v3 }
 0x53a   :  { %4119 = vmatpush3.bf16.msra.mxu0 %v4118_v39  ;;  %4053 = vmatprep.subr.bf16.mxu1 %v5379_v63 }
 0x53b   :  { %4153 = vmatprep.subr.bf16.mxu0 %v4152_v59  ;;  %v1350_v59 = vand.u32 4294901760, %v1349_v9  ;;  %v1446_v9 = vand.u32 4294901760, %v5348_v25 }
 0x53d   :  { %4055 = vmatpush3.bf16.msra.mxu1 %v5386_v58 }
 0x592   :  { %v998_v35 = vpop.permute.xlu0 %997  ;;  %v996_v8 = vpop.permute.xlu1 %995 }
 0x593   :  { %v1004_v54 = vsel %vm308_vm8, %v996_v8, %v998_v35 }
 0x594   :  { %v5375_v27 = vmax.f32 %v5208_v51, %v1004_v54  ;;  %v1356_v51 = vsub.f32 %v5222_v22, %v1355_v16  ;;  %v1327_v16 = vand.u32 4294901760, %v5342_v13 }
 0x596   :  { %1024 = vrot.lane.b32.xlu1 %v5375_v27, %s4659_s22  ;;  %v5384_v10 = vpop.permute.xlu1 %999  ;;  %v994_v38 = vpop.permute.xlu0 %993  ;;  %v1357_v50 = vand.u32 4294901760, %v1356_v51 }
 0x597   :  { %v1005_v26 = vsel %vm308_vm8, %v998_v35, %v5384_v10  ;;  %v1003_v40 = vsel %vm308_vm8, %v994_v38, %v996_v8  ;;  %v5418_v35 = vpack.c.bf16 %v1439_v17, %v1432_v0  ;;  %v5420_v8 = vpack.c.bf16 %v1327_v16, %v1320_v55 }
 0x598   :  { %v5394_v30 = vmax.f32 %v5205_v60, %v1005_v26  ;;  %v5397_v33 = vmax.f32 %v5218_v20, %v1003_v40  ;;  %v4056_v22 = vpack.c.bf16 %v1357_v50, %v1350_v59  ;;  %v1306_v60 = vand.u32 4294901760, %v5322_v2 }
 0x599   :  { %v1313_v20 = vand.u32 4294901760, %v5324_v7  ;;  %6813 = vst [vmem:[#allocation26_spill] sm:$0xff] %v5418_v35  ;;  %6814 = vst [vmem:[#allocation27_spill] sm:$0xff] %v5420_v8  ;;  %v1453_v38 = vand.u32 4294901760, %v5350_v56  ;;  %v1334_v40 = vand.u32 4294901760, %v5354_v12  ;;  %v1341_v59 = vand.u32 4294901760, %v5356_v24 }
 0x59a   :  { %6811 = vst [vmem:[#allocation24_spill] sm:$0xff] %v5394_v30  ;;  %1026 = vrot.lane.b32.xlu0 %v5394_v30, %s4659_s22  ;;  %1022 = vrot.lane.b32.xlu1 %v5397_v33, %s4659_s22  ;;  %v1307_v54 = vsub.f32 %v5322_v2, %v1306_v60 }
 0x59b   :  { %4057 = vmatprep.subr.bf16.mxu1 %v4056_v22  ;;  %v5412_v39 = vpack.c.bf16 %v1313_v20, %v1306_v60  ;;  %v1314_v45 = vsub.f32 %v5324_v7, %v1313_v20  ;;  %v5428_v50 = vpack.c.bf16 %v1453_v38, %v1446_v9  ;;  %v1440_v22 = vsub.f32 %v5334_v62, %v1439_v17 }
 0x59c   :  { %v1308_v51 = vand.u32 4294901760, %v1307_v54  ;;  %v5434_v2 = vpack.c.bf16 %v1341_v59, %v1334_v40  ;;  %v1321_v7 = vsub.f32 %v5337_v14, %v1320_v55  ;;  %v1328_v60 = vsub.f32 %v5342_v13, %v1327_v16 }
 0x59d   :  { %6812 = vst [vmem:[#allocation25_spill] sm:$0xff] %v5412_v39  ;;  %v1315_v26 = vand.u32 4294901760, %v1314_v45  ;;  %6815 = vst [vmem:[#allocation28_spill] sm:$0xff] %v5428_v50  ;;  %v1434_v20 = vand.u32 4294901760, %v1433_v4  ;;  %v1441_v54 = vand.u32 4294901760, %v1440_v22  ;;  %v1447_v45 = vsub.f32 %v5348_v25, %v1446_v9  ;;  %v5716_v50 = vld [vmem:[#allocation2 + $0x1d0] sm:$0xff] }
 0x59e   :  { %1001 = vrot.lane.b32.xlu0 %v5406_v21, %s4658_s21  ;;  %6817 = vst [vmem:[#allocation30_spill] sm:$0xff] %v5434_v2  ;;  %v1454_v58 = vsub.f32 %v5350_v56, %v1453_v38  ;;  %v1322_v63 = vand.u32 4294901760, %v1321_v7  ;;  %v1329_v3 = vand.u32 4294901760, %v1328_v60  ;;  %v1335_v49 = vsub.f32 %v5354_v12, %v1334_v40  ;;  %6869 = vst [vmem:[#allocation63_spill] sm:$0xff] %v5716_v50 }
 0x59f   :  { %v5432_v30 = vpack.c.bf16 %v1315_v26, %v1308_v51  ;;  %v1342_v62 = vsub.f32 %v5356_v24, %v1341_v59  ;;  %v5442_v0 = vpack.c.bf16 %v1441_v54, %v1434_v20  ;;  %v1448_v17 = vand.u32 4294901760, %v1447_v45 }
 0x5a0   :  { %v1455_v51 = vand.u32 4294901760, %v1454_v58  ;;  %v5444_v26 = vpack.c.bf16 %v1329_v3, %v1322_v63  ;;  %v1336_v14 = vand.u32 4294901760, %v1335_v49  ;;  %v1236_v25 = vand.u32 4294901760, %v5224_v52 }
 0x5a1   :  { %6816 = vst [vmem:[#allocation29_spill] sm:$0xff] %v5432_v30  ;;  %6818 = vst [vmem:[#allocation31_spill] sm:$0xff] %v5442_v0  ;;  %v1343_v13 = vand.u32 4294901760, %v1342_v62  ;;  %v1243_v56 = vand.u32 4294901760, %v5226_v18  ;;  %v1362_v12 = vand.u32 4294901760, %v5228_v41  ;;  %v1369_v24 = vand.u32 4294901760, %v5230_v61 }
 0x5a2   :  { %6819 = vst [vmem:[#allocation32_spill] sm:$0xff] %v5444_v26  ;;  %v5446_v55 = vpack.c.bf16 %v1455_v51, %v1448_v17  ;;  %v1250_v9 = vand.u32 4294901760, %v5246_v57  ;;  %v1257_v58 = vand.u32 4294901760, %v5248_v47  ;;  %v1237_v3 = vsub.f32 %v5224_v52, %v1236_v25 }
 0x5a3   :  { %v5448_v16 = vpack.c.bf16 %v1343_v13, %v1336_v14  ;;  %v1244_v63 = vsub.f32 %v5226_v18, %v1243_v56  ;;  %v1363_v38 = vsub.f32 %v5228_v41, %v1362_v12  ;;  %v1370_v40 = vsub.f32 %v5230_v61, %v1369_v24 }
 0x5a4   :  { %6820 = vst [vmem:[#allocation33_spill] sm:$0xff] %v5446_v55  ;;  %v1251_v59 = vsub.f32 %v5246_v57, %v1250_v9  ;;  %v1258_v4 = vsub.f32 %v5248_v47, %v1257_v58  ;;  %v1376_v22 = vand.u32 4294901760, %v5252_v48  ;;  %v1383_v7 = vand.u32 4294901760, %v5260_v5 }
 0x5a5   :  { %6821 = vst [vmem:[#allocation34_spill] sm:$0xff] %v5448_v16  ;;  %v1238_v60 = vand.u32 4294901760, %v1237_v3  ;;  %v1245_v20 = vand.u32 4294901760, %v1244_v63  ;;  %v1264_v54 = vand.u32 4294901760, %v5262_v1  ;;  %v1271_v52 = vand.u32 4294901760, %v5264_v15 }
 0x5a6   :  { %v1364_v45 = vand.u32 4294901760, %v1363_v38  ;;  %v1371_v18 = vand.u32 4294901760, %v1370_v40  ;;  %v1390_v41 = vand.u32 4294901760, %v5269_v6  ;;  %v1397_v61 = vand.u32 4294901760, %v5280_v23 }
 0x5a7   :  { %v1252_v49 = vand.u32 4294901760, %v1251_v59  ;;  %v1259_v57 = vand.u32 4294901760, %v1258_v4  ;;  %v1278_v47 = vand.u32 4294901760, %v5282_v28  ;;  %v1285_v62 = vand.u32 4294901760, %v5284_v31 }
 0x5a8   :  { %v5470_v17 = vpack.c.bf16 %v1243_v56, %v1236_v25  ;;  %v5472_v51 = vpack.c.bf16 %v1369_v24, %v1362_v12  ;;  %v1377_v14 = vsub.f32 %v5252_v48, %v1376_v22  ;;  %v1384_v13 = vsub.f32 %v5260_v5, %v1383_v7 }
 0x5a9   :  { %v5476_v3 = vpack.c.bf16 %v1257_v58, %v1250_v9  ;;  %v5478_v63 = vpack.c.bf16 %v1383_v7, %v1376_v22  ;;  %v1265_v38 = vsub.f32 %v5262_v1, %v1264_v54  ;;  %v1272_v40 = vsub.f32 %v5264_v15, %v1271_v52  ;;  %v5498_v22 = vld [vmem:[#allocation2 + $0x100] sm:$0xff]  ;;  %v5500_v7 = vld [vmem:[#allocation2 + $0x108] sm:$0xff] }
 0x5aa   :  { %v5482_v59 = vpack.c.bf16 %v1245_v20, %v1238_v60  ;;  %v5484_v4 = vpack.c.bf16 %v1271_v52, %v1264_v54  ;;  %v5486_v25 = vpack.c.bf16 %v1371_v18, %v1364_v45  ;;  %v5488_v56 = vpack.c.bf16 %v1397_v61, %v1390_v41  ;;  %6822 = vst [vmem:[#allocation35_spill] sm:$0xff] %v5498_v22 }
 0x5ab   :  { %v5490_v12 = vpack.c.bf16 %v1259_v57, %v1252_v49  ;;  %v5492_v48 = vpack.c.bf16 %v1285_v62, %v1278_v47  ;;  %v1391_v5 = vsub.f32 %v5269_v6, %v1390_v41  ;;  %v1398_v24 = vsub.f32 %v5280_v23, %v1397_v61  ;;  %6823 = vst [vmem:[#allocation36_spill] sm:$0xff] %v5500_v7 }
 0x5ac   :  { %v1378_v9 = vand.u32 4294901760, %v1377_v14  ;;  %v1385_v1 = vand.u32 4294901760, %v1384_v13  ;;  %v1404_v15 = vand.u32 4294901760, %v5295_v34  ;;  %v1411_v58 = vand.u32 4294901760, %v5299_v37  ;;  %v5518_v14 = vld [vmem:[#allocation2 + $0x190] sm:$0xff]  ;;  %v5520_v13 = vld [vmem:[#allocation2 + $0x198] sm:$0xff] }
 0x5ad   :  { %v1266_v60 = vand.u32 4294901760, %v1265_v38  ;;  %v1273_v20 = vand.u32 4294901760, %v1272_v40  ;;  %v6698_v54 = vand.u32 4294901760, %v5498_v22  ;;  %v6697_v52 = vand.u32 4294901760, %v5500_v7  ;;  %6824 = vst [vmem:[#allocation37_spill] sm:$0xff] %v5518_v14  ;;  %6825 = vst [vmem:[#allocation38_spill] sm:$0xff] %v5520_v13 }
 0x5ae   :  { %v1292_v6 = vand.u32 4294901760, %v5303_v44  ;;  %v1299_v23 = vand.u32 4294901760, %v5305_v46  ;;  %v1279_v45 = vsub.f32 %v5282_v28, %v1278_v47  ;;  %v1286_v18 = vsub.f32 %v5284_v31, %v1285_v62  ;;  %v5526_v38 = vld [vmem:[#allocation2 + $0x110] sm:$0xff]  ;;  %v5528_v40 = vld [vmem:[#allocation2 + $0x118] sm:$0xff] }
 0x5af   :  { %v1392_v41 = vand.u32 4294901760, %v1391_v5  ;;  %v1399_v61 = vand.u32 4294901760, %v1398_v24  ;;  %v5511_v49 = vsub.f32 %v5498_v22, %v6698_v54  ;;  %v5516_v57 = vsub.f32 %v5500_v7, %v6697_v52  ;;  %6826 = vst [vmem:[#allocation39_spill] sm:$0xff] %v5526_v38  ;;  %6827 = vst [vmem:[#allocation40_spill] sm:$0xff] %v5528_v40  ;;  %v5684_v7 = vld [vmem:[#allocation2 + $0x1c8] sm:$0xff] }
 0x5b0   :  { %v5530_v5 = vpack.c.bf16 %v1385_v1, %v1378_v9  ;;  %v5532_v24 = vpack.c.bf16 %v1273_v20, %v1266_v60  ;;  %v5534_v52 = vpack.c.bf16 %v1411_v58, %v1404_v15  ;;  %v5537_v36 = vpack.c.bf16 %v1299_v23, %v1292_v6  ;;  %v5549_v60 = vld [vmem:[#allocation2 + $0x1a0] sm:$0xff]  ;;  %v5551_v20 = vld [vmem:[#allocation2 + $0x1a8] sm:$0xff]  ;;  %6861 = vst [vmem:[#allocation60_spill] sm:$0xff] %v5684_v7 }
 0x5b1   :  { %v1280_v28 = vand.u32 4294901760, %v1279_v45  ;;  %v6709_v47 = vand.u32 4294901760, %v5511_v49  ;;  %v5541_v62 = vpack.c.bf16 %v1399_v61, %v1392_v41  ;;  %v1287_v29 = vand.u32 4294901760, %v1286_v18  ;;  %6829 = vst [vmem:[#allocation41_spill] sm:$0xff] %v5549_v60  ;;  %6830 = vst [vmem:[#allocation42_spill] sm:$0xff] %v5551_v20  ;;  %v5570_v1 = vld [vmem:[#allocation2 + $0x120] sm:$0xff] }
 0x5b2   :  { %v6828_v32 = vand.u32 4294901760, %v5518_v14  ;;  %v6831_v45 = vand.u32 4294901760, %v5313_v19  ;;  %v6832_v31 = vand.u32 4294901760, %v5315_v11  ;;  %v5560_v41 = vsub.f32 %v5295_v34, %v1404_v15  ;;  %6835 = vst [vmem:[#allocation44_spill] sm:$0xff] %v5570_v1 }
 0x5b3   :  { %v6834_v18 = vand.u32 4294901760, %v5520_v13  ;;  %v2099_v61 = vsub.f32 %v5511_v49, %v6709_v47  ;;  %v5575_v42 = vsub.f32 %v5299_v37, %v1411_v58  ;;  %v6838_v15 = vand.u32 4294901760, %v5516_v57  ;;  %v5605_v37 = vld [vmem:[#allocation2 + $0x1b0] sm:$0xff] }
 0x5b4   :  { %v5546_v9 = vsub.f32 %v5518_v14, %v6828_v32  ;;  %v5557_v54 = vpack.c.bf16 %v6832_v31, %v6831_v45  ;;  %v6837_v31 = vand.u32 4294901760, %v5526_v38  ;;  %v6839_v47 = vand.u32 4294901760, %v5528_v40  ;;  %6843 = vst [vmem:[#allocation49_spill] sm:$0xff] %v5605_v37 }
 0x5b5   :  { %v5565_v32 = vsub.f32 %v5520_v13, %v6834_v18  ;;  %v2106_v45 = vsub.f32 %v5516_v57, %v6838_v15  ;;  %v2100_v55 = vand.u32 4294901760, %v2099_v61  ;;  %v5593_v26 = vpack.c.bf16 %v1287_v29, %v1280_v28 }
 0x5b6   :  { %6833 = vst [vmem:[#allocation43_spill] sm:$0xff] %v5557_v54  ;;  %v5580_v34 = vsub.f32 %v5526_v38, %v6837_v31  ;;  %v5589_v16 = vsub.f32 %v5528_v40, %v6839_v47  ;;  %v6720_v38 = vand.u32 4294901760, %v5572_v43  ;;  %v6712_v13 = vand.u32 4294901760, %v5546_v9 }
 0x5b7   :  { %6840 = vst [vmem:[#allocation46_spill] sm:$0xff] %v5593_v26  ;;  %v2107_v31 = vand.u32 4294901760, %v2106_v45  ;;  %v5599_v18 = vsub.f32 %v5303_v44, %v1292_v6  ;;  %v5602_v47 = vsub.f32 %v5305_v46, %v1299_v23  ;;  %v6716_v61 = vand.u32 4294901760, %v5565_v32  ;;  %v5618_v6 = vld [vmem:[#allocation2 + $0x1b8] sm:$0xff]  ;;  %v5620_v46 = vld [vmem:[#allocation2 + $0x130] sm:$0xff] }
 0x5b8   :  { %v6845_v29 = vand.u32 4294901760, %v5549_v60  ;;  %v2225_v45 = vsub.f32 %v5546_v9, %v6712_v13  ;;  %6846 = vst [vmem:[#allocation51_spill] sm:$0xff] %v5618_v6  ;;  %6847 = vst [vmem:[#allocation52_spill] sm:$0xff] %v5620_v46  ;;  %v6848_v23 = vand.u32 4294901760, %v5551_v20  ;;  %v6723_v15 = vand.u32 4294901760, %v5589_v16  ;;  %v5636_v44 = vld [vmem:[#allocation2 + $0x138] sm:$0xff] }
 0x5b9   :  { %6841 = vst [vmem:[#allocation47_spill] sm:$0xff] %v5599_v18  ;;  %6842 = vst [vmem:[#allocation48_spill] sm:$0xff] %v5602_v47  ;;  %v5607_v58 = vpack.c.bf16 %v2107_v31, %v2100_v55  ;;  %v6849_v31 = vand.u32 4294901760, %v5570_v1  ;;  %v2232_v13 = vsub.f32 %v5565_v32, %v6716_v61  ;;  %v6734_v30 = vand.u32 4294901760, %v5684_v7 }
 0x5ba   :  { %v5612_v28 = vsub.f32 %v5549_v60, %v6845_v29  ;;  %v5625_v55 = vsub.f32 %v5551_v20, %v6848_v23  ;;  %6851 = vst [vmem:[#allocation54_spill] sm:$0xff] %v5636_v44  ;;  %v2226_v23 = vand.u32 4294901760, %v2225_v45  ;;  %v6852_v20 = vand.u32 4294901760, %v5580_v34 }
 0x5bb   :  { %6844 = vst [vmem:[#allocation50_spill] sm:$0xff] %v5607_v58  ;;  %v5630_v29 = vsub.f32 %v5570_v1, %v6849_v31  ;;  %v5641_v58 = vsub.f32 %v5572_v43, %v6720_v38  ;;  %v2233_v1 = vand.u32 4294901760, %v2232_v13  ;;  %v2120_v61 = vsub.f32 %v5589_v16, %v6723_v15  ;;  %v5667_v38 = vld [vmem:[#allocation2 + $0x1c0] sm:$0xff] }
 0x5bc   :  { %v2113_v60 = vsub.f32 %v5580_v34, %v6852_v20  ;;  %v6724_v31 = vand.u32 4294901760, %v5612_v28  ;;  %v6854_v15 = vand.u32 4294901760, %v5605_v37  ;;  %v6728_v14 = vand.u32 4294901760, %v5625_v55  ;;  %6856 = vst [vmem:[#allocation57_spill] sm:$0xff] %v5667_v38 }
 0x5bd   :  { %6850 = vst [vmem:[#allocation53_spill] sm:$0xff] %v5630_v29  ;;  %v5656_v22 = vpack.c.bf16 %v2233_v1, %v2226_v23  ;;  %v2121_v13 = vand.u32 4294901760, %v2120_v61  ;;  %v6858_v1 = vand.u32 4294901760, %v5618_v6  ;;  %v6859_v23 = vand.u32 4294901760, %v5620_v46 }
 0x5be   :  { %v2114_v45 = vand.u32 4294901760, %v2113_v60  ;;  %v5662_v40 = vsub.f32 %v5605_v37, %v6854_v15  ;;  %v2239_v20 = vsub.f32 %v5612_v28, %v6724_v31  ;;  %v6862_v60 = vand.u32 4294901760, %v5636_v44  ;;  %v5700_v31 = vld [vmem:[#allocation2 + $0x140] sm:$0xff] }
 0x5bf   :  { %6853 = vst [vmem:[#allocation55_spill] sm:$0xff] %v5656_v22  ;;  %v5674_v61 = vsub.f32 %v5618_v6, %v6858_v1  ;;  %v5679_v15 = vsub.f32 %v5620_v46, %v6859_v23  ;;  %v6863_v1 = vand.u32 4294901760, %v5630_v29  ;;  %6865 = vst [vmem:[#allocation61_spill] sm:$0xff] %v5700_v31  ;;  %v5702_v46 = vld [vmem:[#allocation2 + $0x148] sm:$0xff]  ;;  %v6867_v6 = vand.u32 4294901760, %v5313_v19 }
 0x5c0   :  { %6855 = vst [vmem:[#allocation56_spill] sm:$0xff] %v5662_v40  ;;  %v5669_v43 = vpack.c.bf16 %v2121_v13, %v2114_v45  ;;  %v5689_v45 = vsub.f32 %v5636_v44, %v6862_v60  ;;  %v2246_v13 = vsub.f32 %v5625_v55, %v6728_v14  ;;  %6866 = vst [vmem:[#allocation62_spill] sm:$0xff] %v5702_v46  ;;  %v6868_v44 = vand.u32 4294901760, %v5315_v11 }
 0x5c1   :  { %6860 = vst [vmem:[#allocation59_spill] sm:$0xff] %v5679_v15  ;;  %v2127_v23 = vsub.f32 %v5630_v29, %v6863_v1  ;;  %v5707_v60 = vsub.f32 %v5313_v19, %v6867_v6  ;;  %v2240_v37 = vand.u32 4294901760, %v2239_v20  ;;  %v6730_v1 = vand.u32 4294901760, %v5667_v38 }
 0x5c2   :  { %6857 = vst [vmem:[#allocation58_spill] sm:$0xff] %v5669_v43  ;;  %v6864_v43 = vand.u32 4294901760, %v5641_v58  ;;  %v5712_v14 = vsub.f32 %v5315_v11, %v6868_v44  ;;  %v2247_v2 = vand.u32 4294901760, %v2246_v13  ;;  %v6731_v6 = vand.u32 4294901760, %v5662_v40  ;;  %v5722_v11 = vld [vmem:[#allocation2 + $0x1d8] sm:$0xff] }
 0x5c3   :  { %v2128_v0 = vand.u32 4294901760, %v2127_v23  ;;  %v6732_v35 = vand.u32 4294901760, %v5674_v61  ;;  %6870 = vst [vmem:[#allocation64_spill] sm:$0xff] %v5722_v11  ;;  %v5733_v8 = vsub.f32 %v5667_v38, %v6730_v1  ;;  %v5749_v23 = vsub.f32 %v5684_v7, %v6734_v30 }
 0x5c4   :  { %v2134_v22 = vsub.f32 %v5641_v58, %v6864_v43  ;;  %v5724_v20 = vpack.c.bf16 %v2247_v2, %v2240_v37  ;;  %v2253_v19 = vsub.f32 %v5662_v40, %v6731_v6  ;;  %v5742_v37 = vld [vmem:[#allocation2 + $0x150] sm:$0xff]  ;;  %v6876_v6 = vand.u32 4294901760, %v5689_v45 }
 0x5c5   :  { %6873 = vst [vmem:[#allocation67_spill] sm:$0xff] %v5733_v8  ;;  %v2260_v2 = vsub.f32 %v5674_v61, %v6732_v35  ;;  %6874 = vst [vmem:[#allocation68_spill] sm:$0xff] %v5742_v37  ;;  %v6879_v38 = vand.u32 4294901760, %v5702_v46 }
 0x5c6   :  { %v2135_v43 = vand.u32 4294901760, %v2134_v22  ;;  %6871 = vst [vmem:[#allocation65_spill] sm:$0xff] %v5724_v20  ;;  %v6737_v22 = vand.u32 4294901760, %v5679_v15  ;;  %v2254_v7 = vand.u32 4294901760, %v2253_v19 }
 0x5c7   :  { %v5766_v30 = vsub.f32 %v5702_v46, %v6879_v38  ;;  %v2261_v39 = vand.u32 4294901760, %v2260_v2  ;;  %v6882_v38 = vand.u32 4294901760, %v5716_v50  ;;  %v5782_v2 = vld [vmem:[#allocation2 + $0x1e0] sm:$0xff] }
 0x5c8   :  { %v5726_v13 = vpack.c.bf16 %v2135_v43, %v2128_v0  ;;  %v5744_v43 = vld [vmem:[#allocation2 + $0x158] sm:$0xff]  ;;  %v2141_v1 = vsub.f32 %v5679_v15, %v6737_v22  ;;  %v6877_v0 = vand.u32 4294901760, %v5700_v31  ;;  %6883 = vst [vmem:[#allocation73_spill] sm:$0xff] %v5782_v2 }
 0x5c9   :  { %6875 = vst [vmem:[#allocation69_spill] sm:$0xff] %v5744_v43  ;;  %v5780_v19 = vsub.f32 %v5716_v50, %v6882_v38 }
 0x5ca   :  { %6872 = vst [vmem:[#allocation66_spill] sm:$0xff] %v5726_v13  ;;  %v2148_v13 = vsub.f32 %v5689_v45, %v6876_v6  ;;  %v5761_v20 = vsub.f32 %v5700_v31, %v6877_v0  ;;  %v2142_v18 = vand.u32 4294901760, %v2141_v1  ;;  %v5775_v31 = vpack.c.bf16 %v2261_v39, %v2254_v7 }
 0x5cb   :  { %v6741_v39 = vand.u32 4294901760, %v5733_v8  ;;  %v6742_v7 = vand.u32 4294901760, %v5749_v23 }
 0x5cc   :  { %6878 = vst [vmem:[#allocation70_spill] sm:$0xff] %v5761_v20  ;;  %v2149_v26 = vand.u32 4294901760, %v2148_v13  ;;  %6881 = vst [vmem:[#allocation72_spill] sm:$0xff] %v5775_v31 }
 0x5cd   :  { %v2267_v38 = vsub.f32 %v5733_v8, %v6741_v39 }
 0x5ce   :  { %v5786_v6 = vpack.c.bf16 %v2149_v26, %v2142_v18  ;;  %v6886_v26 = vand.u32 4294901760, %v5742_v37  ;;  %v5806_v18 = vld [vmem:[#allocation2 + $0x1e8] sm:$0xff] }
 0x5cf   :  { %6887 = vst [vmem:[#allocation75_spill] sm:$0xff] %v5806_v18  ;;  %v2268_v39 = vand.u32 4294901760, %v2267_v38  ;;  %v6895_v38 = vand.u32 4294901760, %v5744_v43 }
 0x5d0   :  { %6884 = vst [vmem:[#allocation74_spill] sm:$0xff] %v5786_v6  ;;  %v2274_v6 = vsub.f32 %v5749_v23, %v6742_v7 }
 0x5d2   :  { %v2275_v7 = vand.u32 4294901760, %v2274_v6  ;;  %v5850_v6 = vsub.f32 %v5744_v43, %v6895_v38 }
 0x608   :  { %v1025_v44 = vpop.permute.xlu1 %1024 }
 0x60c   :  { %v1023_v47 = vpop.permute.xlu1 %1022  ;;  %v5768_v22 = vpop.permute.xlu0 %1026 }
 0x60d   :  { %6880 = vst [vmem:[#allocation71_spill] sm:$0xff] %v5768_v22  ;;  %v1032_v54 = vsel %vm358_vm9, %v1023_v47, %v1025_v44  ;;  %v1033_v0 = vsel %vm358_vm9, %v1025_v44, %v5768_v22  ;;  %v6885_v47 = vand.u32 4294901760, %v5722_v11 }
 0x60e   :  { %v1041_v1 = vmax.f32 %v5397_v33, %v1032_v54  ;;  %v1042_v13 = vmax.f32 %v5375_v27, %v1033_v0  ;;  %v5804_v54 = vsub.f32 %v5742_v37, %v6886_v26 }
 0x60f   :  { %v5791_v35 = vsub.f32 %v5722_v11, %v6885_v47 }
 0x610   :  { %v5797_v22 = vand.u32 4294901760, %v1041_v1  ;;  %v5799_v33 = vand.u32 4294901760, %v1042_v13  ;;  %v1002_v27 = vpop.permute.xlu0 %1001 }
 0x611   :  { %v1006_v47 = vsel %vm308_vm8, %v5384_v10, %v1002_v27  ;;  %v5812_v44 = vmax.f32 %v5406_v21, %v1002_v27  ;;  %v6891_v10 = vand.u32 4294901760, %v5761_v20  ;;  %v5832_v27 = vld [vmem:[#allocation2 + $0x160] sm:$0xff] }
 0x612   :  { %v5821_v26 = vsub.f32 %v1041_v1, %v5797_v22  ;;  %v5824_v31 = vmax.f32 %v5215_v53, %v1006_v47  ;;  %v5827_v0 = vsub.f32 %v1042_v13, %v5799_v33  ;;  %6892 = vst [vmem:[#allocation79_spill] sm:$0xff] %v5832_v27  ;;  %v6893_v1 = vand.u32 4294901760, %v5766_v30  ;;  %v5840_v47 = vld [vmem:[#allocation2 + $0x168] sm:$0xff] }
 0x613   :  { %6888 = vst [vmem:[#allocation76_spill] sm:$0xff] %v5812_v44  ;;  %v2155_v21 = vsub.f32 %v5761_v20, %v6891_v10  ;;  %1030 = vrot.lane.b32.xlu0 %v5812_v44, %s4659_s22  ;;  %6894 = vst [vmem:[#allocation80_spill] sm:$0xff] %v5840_v47  ;;  %v6897_v13 = vand.u32 4294901760, %v5782_v2 }
 0x614   :  { %6889 = vst [vmem:[#allocation77_spill] sm:$0xff] %v5821_v26  ;;  %6890 = vst [vmem:[#allocation78_spill] sm:$0xff] %v5824_v31  ;;  %v2162_v37 = vsub.f32 %v5766_v30, %v6893_v1  ;;  %1595 = vmatprep.mubr.f32.mxu0 %v5827_v0  ;;  %1028 = vrot.lane.b32.xlu1 %v5824_v31, %s4659_s22  ;;  %v6747_v10 = vand.u32 4294901760, %v5827_v0  ;;  %v5853_v1 = vpack.c.bf16 %v2275_v7, %v2268_v39  ;;  %v5887_v7 = vld [vmem:[#allocation2 + $0x178] sm:$0xff] }
 0x615   :  { %v2156_v44 = vand.u32 4294901760, %v2155_v21  ;;  %1598 = vmatmul.mubr.f32.vlgmr.msra.gmra.mrb[8].mxu0 %v5821_v26  ;;  %v5858_v11 = vsub.f32 %v5782_v2, %v6897_v13  ;;  %v6898_v38 = vand.u32 4294901760, %v5821_v26  ;;  %v5871_v13 = vld [vmem:[#allocation2 + $0x1f0] sm:$0xff]  ;;  %v6903_v2 = vand.u32 4294901760, %v5780_v19 }
 0x616   :  { %6896 = vst [vmem:[#allocation81_spill] sm:$0xff] %v5853_v1  ;;  %v2163_v53 = vand.u32 4294901760, %v2162_v37  ;;  %4155 = vmatpush3.bf16.msra.mxu0 %v5470_v17  ;;  %1872 = vmatprep.mubr.f32.mxu0 %v5799_v33  ;;  %v1220_v21 = vsub.f32 %v5827_v0, %v6747_v10  ;;  %v6900_v17 = vand.u32 4294901760, %v5806_v18  ;;  %v5885_v37 = vld [vmem:[#allocation2 + $0x170] sm:$0xff] }
 0x617   :  { %v1226_v39 = vsub.f32 %v5821_v26, %v6898_v38  ;;  %4157 = vmatprep.subr.bf16.mxu0 %v5472_v51  ;;  %v5883_v38 = vld [vmem:[#allocation2 + $0x1f8] sm:$0xff]  ;;  %v6901_v51 = vand.u32 4294901760, %v5832_v27  ;;  %v2281_v10 = vsub.f32 %v5780_v19, %v6903_v2  ;;  %v6756_v2 = vand.u32 4294901760, %v5887_v7 }
 0x618   :  { %v5874_v31 = vpack.c.bf16 %v2163_v53, %v2156_v44  ;;  %v5879_v1 = vsub.f32 %v5806_v18, %v6900_v17  ;;  %v1221_v26 = vand.u32 4294901760, %v1220_v21  ;;  %v6902_v53 = vand.u32 4294901760, %v5840_v47 }
 0x619   :  { %v1227_v43 = vand.u32 4294901760, %v1226_v39  ;;  %v5892_v44 = vsub.f32 %v5832_v27, %v6901_v51  ;;  %v6905_v21 = vand.u32 4294901760, %v5804_v54  ;;  %v6769_v51 = vand.u32 4294901760, %v5850_v6 }
 0x61a   :  { %6899 = vst [vmem:[#allocation82_spill] sm:$0xff] %v5874_v31  ;;  %v5897_v17 = vsub.f32 %v5840_v47, %v6902_v53  ;;  %v6904_v31 = vand.u32 4294901760, %v5791_v35  ;;  %4159 = vmatpush3.bf16.msra.mxu0 %v5476_v3  ;;  %1222 = vmatprep.mubr.f32.mxu1 %v1221_v26  ;;  %v6768_v53 = vand.u32 4294901760, %v5871_v13  ;;  %v6764_v47 = vand.u32 4294901760, %v5883_v38 }
 0x61b   :  { %v2169_v39 = vsub.f32 %v5804_v54, %v6905_v21  ;;  %1228 = vmatmul.mubr.f32.vlgmr.msra.gmra.mrb[16].mxu1 %v1227_v43  ;;  %4161 = vmatprep.subr.bf16.mxu0 %v5478_v63  ;;  %v2176_v21 = vsub.f32 %v5850_v6, %v6769_v51  ;;  %v6906_v3 = vand.u32 4294901760, %v5560_v41  ;;  %v6907_v26 = vand.u32 4294901760, %v5575_v42 }
 0x61c   :  { %v2288_v18 = vsub.f32 %v5791_v35, %v6904_v31  ;;  %v2282_v31 = vand.u32 4294901760, %v2281_v10  ;;  %4059 = vmatpush3.bf16.msra.mxu1 %v5482_v59  ;;  %1458 = vmatprep.mubr.f32.mxu1 %v5799_v33  ;;  %v1420_v43 = vand.u32 4294901760, %v5707_v60  ;;  %v5928_v63 = vsub.f32 %v5871_v13, %v6768_v53  ;;  %v6948_v53 = vld [vmem:[#allocation34_spill] sm:$0xff] }
 0x61d   :  { %v2170_v46 = vand.u32 4294901760, %v2169_v39  ;;  %v4072_v27 = vpack.c.bf16 %v6907_v26, %v6906_v3  ;;  %4061 = vmatprep.subr.bf16.mxu1 %v5486_v25  ;;  %v2177_v59 = vand.u32 4294901760, %v2176_v21  ;;  %v5937_v41 = vsub.f32 %v5883_v38, %v6764_v47 }
 0x61e   :  { %v2289_v50 = vand.u32 4294901760, %v2288_v18  ;;  %v6760_v18 = vand.u32 4294901760, %v5858_v11  ;;  %v6908_v42 = vand.u32 4294901760, %v5885_v37  ;;  %4163 = vmatpush3.bf16.msra.mxu0 %v5484_v4  ;;  %v5948_v39 = vsub.f32 %v5887_v7, %v6756_v2 }
 0x61f   :  { %v6757_v25 = vand.u32 4294901760, %v5879_v1  ;;  %4165 = vmatprep.subr.bf16.mxu0 %v5488_v56  ;;  %v1427_v21 = vand.u32 4294901760, %v5712_v14  ;;  %v5957_v3 = vpack.c.bf16 %v2177_v59, %v2170_v46  ;;  %v6759_v4 = vand.u32 4294901760, %v5897_v17 }
 0x620   :  { %v5932_v10 = vpack.c.bf16 %v2289_v50, %v2282_v31  ;;  %v5942_v60 = vsub.f32 %v5885_v37, %v6908_v42  ;;  %v2295_v50 = vsub.f32 %v5858_v11, %v6760_v18  ;;  %v6758_v31 = vand.u32 4294901760, %v5892_v44  ;;  %4063 = vmatpush3.bf16.msra.mxu1 %v5490_v12 }
 0x621   :  { %v2302_v2 = vsub.f32 %v5879_v1, %v6757_v25  ;;  %v6763_v14 = vand.u32 4294901760, %v5928_v63  ;;  %4065 = vmatprep.subr.bf16.mxu1 %v5530_v5  ;;  %v2190_v46 = vsub.f32 %v5897_v17, %v6759_v4  ;;  %v6761_v59 = vand.u32 4294901760, %v5937_v41 }
 0x622   :  { %v2296_v42 = vand.u32 4294901760, %v2295_v50  ;;  %v2183_v56 = vsub.f32 %v5892_v44, %v6758_v31  ;;  %v6762_v12 = vand.u32 4294901760, %v5942_v60  ;;  %v6765_v50 = vand.u32 4294901760, %v5948_v39  ;;  %4167 = vmatpush3.bf16.msra.mxu0 %v5492_v48 }
 0x623   :  { %v2303_v26 = vand.u32 4294901760, %v2302_v2  ;;  %v2309_v31 = vsub.f32 %v5928_v63, %v6763_v14  ;;  %4169 = vmatprep.subr.bf16.mxu0 %v5534_v52  ;;  %v2191_v4 = vand.u32 4294901760, %v2190_v46  ;;  %v2316_v18 = vsub.f32 %v5937_v41, %v6761_v59 }
 0x624   :  { %v2184_v25 = vand.u32 4294901760, %v2183_v56  ;;  %v2197_v48 = vsub.f32 %v5942_v60, %v6762_v12  ;;  %v2204_v2 = vsub.f32 %v5948_v39, %v6765_v50  ;;  %4067 = vmatpush3.bf16.msra.mxu1 %v5532_v24  ;;  %v6930_v50 = vld [vmem:[#allocation32_spill] sm:$0xff] }
 0x625   :  { %v5994_v56 = vpack.c.bf16 %v2303_v26, %v2296_v42  ;;  %v2310_v5 = vand.u32 4294901760, %v2309_v31  ;;  %4069 = vmatprep.subr.bf16.mxu1 %v5541_v62  ;;  %v2317_v12 = vand.u32 4294901760, %v2316_v18  ;;  %v6909_v62 = vld [vmem:[#allocation43_spill] sm:$0xff]  ;;  %v6913_v26 = vld [vmem:[#allocation48_spill] sm:$0xff] }
 0x626   :  { %v6001_v59 = vpack.c.bf16 %v2191_v4, %v2184_v25  ;;  %v2198_v14 = vand.u32 4294901760, %v2197_v48  ;;  %v2205_v47 = vand.u32 4294901760, %v2204_v2  ;;  %4171 = vmatpush3.bf16.msra.mxu0 %v5537_v36  ;;  %v6910_v48 = vld [vmem:[#allocation46_spill] sm:$0xff]  ;;  %v6911_v2 = vld [vmem:[#allocation47_spill] sm:$0xff]  ;;  %v6914_v24 = vand.u32 4294901760, %v6913_v26  ;;  %v6926_v4 = vld [vmem:[#allocation37_spill] sm:$0xff] }
 0x627   :  { %4173 = vmatprep.subr.bf16.mxu0 %v6909_v62  ;;  %v6013_v25 = vpack.c.bf16 %v2317_v12, %v2310_v5  ;;  %v6912_v31 = vand.u32 4294901760, %v6911_v2  ;;  %v4076_v12 = vpack.c.bf16 %v1427_v21, %v1420_v43  ;;  %v6031_v5 = vld [vmem:[#allocation2 + $0x188] sm:$0xff]  ;;  %v6916_v36 = vld [vmem:[#allocation26_spill] sm:$0xff]  ;;  %v6917_v43 = vld [vmem:[#allocation27_spill] sm:$0xff]  ;;  %v6927_v42 = vand.u32 4294901760, %v6926_v4 }
 0x628   :  { %v6015_v18 = vpack.c.bf16 %v2205_v47, %v2198_v14  ;;  %4071 = vmatpush3.bf16.msra.mxu1 %v6910_v48  ;;  %v6915_v47 = vld [vmem:[#allocation25_spill] sm:$0xff]  ;;  %v6029_v14 = vld [vmem:[#allocation2 + $0x180] sm:$0xff]  ;;  %v6918_v21 = vld [vmem:[#allocation28_spill] sm:$0xff] }
 0x629   :  { %v4074_v46 = vpack.c.bf16 %v6914_v24, %v6912_v31  ;;  %4073 = vmatprep.subr.bf16.mxu1 %v4072_v27  ;;  %v6767_v31 = vand.u32 4294901760, %v6029_v14  ;;  %v6766_v27 = vand.u32 4294901760, %v6031_v5  ;;  %v6924_v24 = vld [vmem:[#allocation36_spill] sm:$0xff] }
 0x62a   :  { %4175 = vmatpush3.bf16.msra.mxu0 %v6915_v47  ;;  %v6921_v47 = vld [vmem:[#allocation30_spill] sm:$0xff]  ;;  %v6925_v48 = vand.u32 4294901760, %v6924_v24  ;;  %v6935_v24 = vld [vmem:[#allocation39_spill] sm:$0xff] }
 0x62b   :  { %4177 = vmatprep.subr.bf16.mxu0 %v6916_v36  ;;  %v6046_v26 = vpack.c.bf16 %v6766_v27, %v6767_v31  ;;  %v6919_v36 = vld [vmem:[#allocation29_spill] sm:$0xff]  ;;  %v6936_v4 = vand.u32 4294901760, %v6935_v24  ;;  %v6949_v24 = vand.u32 4294901760, %v5580_v34 }
 0x62c   :  { %4075 = vmatpush3.bf16.msra.mxu1 %v4074_v46  ;;  %v6928_v46 = vld [vmem:[#allocation38_spill] sm:$0xff] }
 0x62d   :  { %4077 = vmatprep.subr.bf16.mxu1 %v4076_v12  ;;  %v6920_v12 = vld [vmem:[#allocation31_spill] sm:$0xff]  ;;  %v6929_v52 = vand.u32 4294901760, %v6928_v46 }
 0x62e   :  { %4179 = vmatpush3.bf16.msra.mxu0 %v6917_v43  ;;  %v6922_v43 = vld [vmem:[#allocation35_spill] sm:$0xff] }
 0x62f   :  { %4181 = vmatprep.subr.bf16.mxu0 %v6918_v21  ;;  %v6923_v21 = vand.u32 4294901760, %v6922_v43  ;;  %v6937_v43 = vld [vmem:[#allocation40_spill] sm:$0xff] }
 0x630   :  { %4079 = vmatpush3.bf16.msra.mxu1 %v6919_v36  ;;  %v6066_v36 = vpack.c.bf16 %v6929_v52, %v6927_v42  ;;  %v6938_v46 = vand.u32 4294901760, %v6937_v43 }
 0x631   :  { %4081 = vmatprep.subr.bf16.mxu1 %v6920_v12  ;;  %v6059_v62 = vpack.c.bf16 %v6925_v48, %v6923_v21  ;;  %v6931_v12 = vand.u32 4294901760, %v5511_v49  ;;  %v6934_v48 = vld [vmem:[#allocation33_spill] sm:$0xff]  ;;  %v6942_v21 = vld [vmem:[#allocation42_spill] sm:$0xff] }
 0x632   :  { %4183 = vmatpush3.bf16.msra.mxu0 %v6921_v47  ;;  %v6932_v47 = vand.u32 4294901760, %v5516_v57  ;;  %v6082_v52 = vpack.c.bf16 %v6938_v46, %v6936_v4  ;;  %v6943_v27 = vand.u32 4294901760, %v6942_v21  ;;  %v6950_v4 = vand.u32 4294901760, %v5589_v16  ;;  %v6952_v46 = vld [vmem:[#allocation8_spill] sm:$0xff] }
 0x633   :  { %4217 = vmatprep.subr.bf16.mxu0 %v6046_v26 }
 0x634   :  { %4083 = vmatpush3.bf16.msra.mxu1 %v6930_v50  ;;  %v6073_v2 = vpack.c.bf16 %v6932_v47, %v6931_v12  ;;  %6939 = vst [vmem:[#allocation46_spill] sm:$0xff] %v6082_v52  ;;  %v6940_v50 = vld [vmem:[#allocation41_spill] sm:$0xff]  ;;  %v6945_v47 = vand.u32 4294901760, %v5546_v9  ;;  %v6102_v43 = vpack.c.bf16 %v6950_v4, %v6949_v24  ;;  %v6963_v4 = vand.u32 4294901760, %v5612_v28 }
 0x635   :  { %1874 = vmatmul.mubr.f32.vlgmr.msra.gmra.mrb[10].mxu0 %v5797_v22  ;;  %4085 = vmatprep.subr.bf16.mxu1 %v6934_v48  ;;  %v6941_v42 = vand.u32 4294901760, %v6940_v50  ;;  %v6946_v48 = vand.u32 4294901760, %v5565_v32 }
 0x636   :  { %6933 = vst [vmem:[#allocation43_spill] sm:$0xff] %v6073_v2  ;;  %4219 = vmatpush3.bf16.msra.mxu0 %v6059_v62  ;;  %6951 = vst [vmem:[#allocation25_spill] sm:$0xff] %v6102_v43  ;;  %v6964_v43 = vand.u32 4294901760, %v5625_v55 }
 0x637   :  { %4221 = vmatprep.subr.bf16.mxu0 %v6066_v36  ;;  %v6089_v12 = vpack.c.bf16 %v6943_v27, %v6941_v42  ;;  %v6095_v31 = vpack.c.bf16 %v6946_v48, %v6945_v47  ;;  %v6953_v27 = vld [vmem:[#allocation44_spill] sm:$0xff]  ;;  %v6955_v42 = vld [vmem:[#allocation45_spill] sm:$0xff]  ;;  %v6960_v48 = vld [vmem:[#allocation51_spill] sm:$0xff] }
 0x638   :  { %4087 = vmatpush3.bf16.msra.mxu1 %v6948_v53  ;;  %v6954_v50 = vand.u32 4294901760, %v6953_v27  ;;  %v6956_v21 = vand.u32 4294901760, %v6955_v42  ;;  %v6958_v53 = vld [vmem:[#allocation49_spill] sm:$0xff]  ;;  %v6124_v2 = vpack.c.bf16 %v6964_v43, %v6963_v4  ;;  %v6968_v42 = vand.u32 4294901760, %v5630_v29 }
 0x639   :  { %6944 = vst [vmem:[#allocation47_spill] sm:$0xff] %v6089_v12  ;;  %6947 = vst [vmem:[#allocation48_spill] sm:$0xff] %v6095_v31  ;;  %4121 = vmatprep.subr.bf16.mxu1 %v6952_v46  ;;  %v6959_v47 = vand.u32 4294901760, %v6958_v53  ;;  %v6961_v31 = vand.u32 4294901760, %v6960_v48  ;;  %v6966_v27 = vld [vmem:[#allocation9_spill] sm:$0xff]  ;;  %v6971_v48 = vld [vmem:[#allocation10_spill] sm:$0xff] }
 0x63a   :  { %4223 = vmatpush3.bf16.msra.mxu0 %v6082_v52  ;;  %v6110_v51 = vpack.c.bf16 %v6956_v21, %v6954_v50  ;;  %6965 = vst [vmem:[#allocation28_spill] sm:$0xff] %v6124_v2  ;;  %v6967_v50 = vand.u32 4294901760, %v5827_v0  ;;  %v6969_v21 = vand.u32 4294901760, %v5641_v58  ;;  %v6977_v0 = vld [vmem:[#allocation57_spill] sm:$0xff]  ;;  %v6979_v2 = vld [vmem:[#allocation60_spill] sm:$0xff] }
 0x63b   :  { %1460 = vmatmul.mubr.f32.vlgmr.msra.gmra.mrb[18].mxu1 %v5797_v22  ;;  %4225 = vmatprep.subr.bf16.mxu0 %v6089_v12  ;;  %v6118_v24 = vpack.c.bf16 %v6961_v31, %v6959_v47  ;;  %v6972_v31 = vld [vmem:[#allocation52_spill] sm:$0xff]  ;;  %v6974_v12 = vld [vmem:[#allocation54_spill] sm:$0xff]  ;;  %v6980_v52 = vand.u32 4294901760, %v6979_v2  ;;  %v6990_v2 = vld [vmem:[#allocation61_spill] sm:$0xff] }
 0x63c   :  { %6957 = vst [vmem:[#allocation26_spill] sm:$0xff] %v6110_v51  ;;  %4123 = vmatpush3.bf16.msra.mxu1 %v6966_v27  ;;  %1702 = vmatprep.mubr.f32.mxu1 %v6967_v50  ;;  %v6133_v53 = vpack.c.bf16 %v6969_v21, %v6968_v42  ;;  %v6973_v47 = vand.u32 4294901760, %v6972_v31  ;;  %v6975_v43 = vand.u32 4294901760, %v6974_v12  ;;  %v6978_v50 = vand.u32 4294901760, %v6977_v0  ;;  %v6992_v0 = vld [vmem:[#allocation62_spill] sm:$0xff] }
 0x63d   :  { %6962 = vst [vmem:[#allocation27_spill] sm:$0xff] %v6118_v24  ;;  %4125 = vmatprep.subr.bf16.mxu1 %v6971_v48  ;;  %v6982_v42 = vand.u32 4294901760, %v5662_v40  ;;  %v6983_v21 = vand.u32 4294901760, %v5674_v61  ;;  %v6986_v12 = vand.u32 4294901760, %v5679_v15  ;;  %v6987_v31 = vand.u32 4294901760, %v5689_v45 }
 0x63e   :  { %6970 = vst [vmem:[#allocation29_spill] sm:$0xff] %v6133_v53  ;;  %4227 = vmatpush3.bf16.msra.mxu0 %v6110_v51  ;;  %v6141_v4 = vpack.c.bf16 %v6975_v43, %v6973_v47  ;;  %v6148_v29 = vpack.c.bf16 %v6980_v52, %v6978_v50  ;;  %v6985_v51 = vld [vmem:[#allocation11_spill] sm:$0xff]  ;;  %v6989_v43 = vld [vmem:[#allocation12_spill] sm:$0xff]  ;;  %v6991_v52 = vand.u32 4294901760, %v6990_v2  ;;  %v6993_v50 = vand.u32 4294901760, %v6992_v0 }
 0x63f   :  { %4229 = vmatprep.subr.bf16.mxu0 %v6118_v24  ;;  %v6154_v53 = vpack.c.bf16 %v6983_v21, %v6982_v42  ;;  %v6161_v47 = vpack.c.bf16 %v6987_v31, %v6986_v12  ;;  %v6995_v42 = vld [vmem:[#allocation63_spill] sm:$0xff]  ;;  %v7000_v12 = vand.u32 4294901760, %v5733_v8  ;;  %v7001_v31 = vand.u32 4294901760, %v5749_v23 }
 0x640   :  { %6976 = vst [vmem:[#allocation31_spill] sm:$0xff] %v6141_v4  ;;  %6981 = vst [vmem:[#allocation30_spill] sm:$0xff] %v6148_v29  ;;  %4127 = vmatpush3.bf16.msra.mxu1 %v6985_v51  ;;  %v6169_v24 = vpack.c.bf16 %v6993_v50, %v6991_v52  ;;  %v6996_v21 = vand.u32 4294901760, %v6995_v42  ;;  %v7004_v2 = vand.u32 4294901760, %v5761_v20  ;;  %v7005_v52 = vand.u32 4294901760, %v5766_v30  ;;  %v7007_v50 = vld [vmem:[#allocation14_spill] sm:$0xff] }
 0x641   :  { %6984 = vst [vmem:[#allocation35_spill] sm:$0xff] %v6154_v53  ;;  %6988 = vst [vmem:[#allocation36_spill] sm:$0xff] %v6161_v47  ;;  %4129 = vmatprep.subr.bf16.mxu1 %v6989_v43  ;;  %v6997_v53 = vld [vmem:[#allocation64_spill] sm:$0xff]  ;;  %v6182_v47 = vpack.c.bf16 %v7001_v31, %v7000_v12  ;;  %v7010_v42 = vld [vmem:[#allocation69_spill] sm:$0xff] }
 0x642   :  { %4231 = vmatpush3.bf16.msra.mxu0 %v6141_v4  ;;  %6994 = vst [vmem:[#allocation37_spill] sm:$0xff] %v6169_v24  ;;  %v6998_v15 = vand.u32 4294901760, %v6997_v53  ;;  %v7003_v4 = vld [vmem:[#allocation13_spill] sm:$0xff]  ;;  %v6189_v0 = vpack.c.bf16 %v7005_v52, %v7004_v2  ;;  %v7017_v2 = vand.u32 4294901760, %v5780_v19  ;;  %v7018_v52 = vand.u32 4294901760, %v5791_v35 }
 0x643   :  { %4233 = vmatprep.subr.bf16.mxu0 %v6148_v29  ;;  %7002 = vst [vmem:[#allocation32_spill] sm:$0xff] %v6182_v47  ;;  %v7013_v12 = vld [vmem:[#allocation73_spill] sm:$0xff]  ;;  %v7015_v47 = vld [vmem:[#allocation75_spill] sm:$0xff] }
 0x644   :  { %v6176_v40 = vpack.c.bf16 %v6998_v15, %v6996_v21  ;;  %4131 = vmatpush3.bf16.msra.mxu1 %v7003_v4  ;;  %7006 = vst [vmem:[#allocation33_spill] sm:$0xff] %v6189_v0  ;;  %v7008_v15 = vld [vmem:[#allocation68_spill] sm:$0xff]  ;;  %v7011_v21 = vand.u32 4294901760, %v7010_v42  ;;  %v7014_v31 = vand.u32 4294901760, %v7013_v12  ;;  %v7016_v20 = vand.u32 4294901760, %v7015_v47 }
 0x645   :  { %4133 = vmatprep.subr.bf16.mxu1 %v7007_v50  ;;  %v7009_v53 = vand.u32 4294901760, %v7008_v15  ;;  %v6210_v0 = vpack.c.bf16 %v7018_v52, %v7017_v2  ;;  %v7021_v15 = vand.u32 4294901760, %v5804_v54  ;;  %v7027_v12 = vld [vmem:[#allocation80_spill] sm:$0xff]  ;;  %v7029_v2 = vand.u32 4294901760, %v5871_v13 }
 0x646   :  { %6999 = vst [vmem:[#allocation38_spill] sm:$0xff] %v6176_v40  ;;  %4235 = vmatpush3.bf16.msra.mxu0 %v6169_v24  ;;  %v6204_v8 = vpack.c.bf16 %v7016_v20, %v7014_v31  ;;  %v7020_v24 = vld [vmem:[#allocation15_spill] sm:$0xff]  ;;  %v7028_v31 = vand.u32 4294901760, %v7027_v12  ;;  %v7030_v52 = vand.u32 4294901760, %v5883_v38  ;;  %v7040_v13 = vand.u32 4294901760, %v6029_v14 }
 0x647   :  { %v6197_v29 = vpack.c.bf16 %v7011_v21, %v7009_v53  ;;  %4237 = vmatprep.subr.bf16.mxu0 %v6176_v40  ;;  %7019 = vst [vmem:[#allocation40_spill] sm:$0xff] %v6210_v0  ;;  %v7022_v53 = vand.u32 4294901760, %v5850_v6  ;;  %v7024_v21 = vld [vmem:[#allocation16_spill] sm:$0xff]  ;;  %v7025_v20 = vld [vmem:[#allocation79_spill] sm:$0xff] }
 0x648   :  { %4135 = vmatpush3.bf16.msra.mxu1 %v7020_v24  ;;  %v7026_v47 = vand.u32 4294901760, %v7025_v20  ;;  %v6232_v0 = vpack.c.bf16 %v7030_v52, %v7029_v2  ;;  %v7036_v20 = vand.u32 4294901760, %v5892_v44  ;;  %v6251_v38 = vsub.f32 %v6029_v14, %v7040_v13 }
 0x649   :  { %7012 = vst [vmem:[#allocation39_spill] sm:$0xff] %v6197_v29  ;;  %v6217_v42 = vpack.c.bf16 %v7022_v53, %v7021_v15  ;;  %4137 = vmatprep.subr.bf16.mxu1 %v7024_v21  ;;  %v7032_v15 = vand.u32 4294901760, %v5858_v11  ;;  %v7033_v53 = vand.u32 4294901760, %v5879_v1  ;;  %v7041_v2 = vand.u32 4294901760, %v6031_v5 }
 0x64a   :  { %4239 = vmatpush3.bf16.msra.mxu0 %v6197_v29  ;;  %v6225_v40 = vpack.c.bf16 %v7028_v31, %v7026_v47  ;;  %7031 = vst [vmem:[#allocation42_spill] sm:$0xff] %v6232_v0  ;;  %v7035_v29 = vld [vmem:[#allocation17_spill] sm:$0xff]  ;;  %v7037_v47 = vand.u32 4294901760, %v5897_v17  ;;  %v7039_v31 = vld [vmem:[#allocation18_spill] sm:$0xff]  ;;  %v7044_v14 = vand.u32 4294901760, %v5928_v63  ;;  %v7045_v13 = vand.u32 4294901760, %v5937_v41 }
 0x64b   :  { %7023 = vst [vmem:[#allocation41_spill] sm:$0xff] %v6217_v42  ;;  %4241 = vmatprep.subr.bf16.mxu0 %v6204_v8  ;;  %v6238_v42 = vpack.c.bf16 %v7033_v53, %v7032_v15  ;;  %v6256_v52 = vsub.f32 %v6031_v5, %v7041_v2  ;;  %v7042_v15 = vand.u32 4294901760, %v5885_v37  ;;  %v7043_v53 = vand.u32 4294901760, %v5887_v7  ;;  %v7046_v5 = vld [vmem:[#allocation19_spill] sm:$0xff] }
 0x64c   :  { %4139 = vmatpush3.bf16.msra.mxu1 %v7035_v29  ;;  %v6245_v12 = vpack.c.bf16 %v7037_v47, %v7036_v20  ;;  %v7047_v2 = vand.u32 4294901760, %v5942_v60  ;;  %v7048_v37 = vand.u32 4294901760, %v5948_v39 }
 0x64d   :  { %7034 = vst [vmem:[#allocation34_spill] sm:$0xff] %v6238_v42  ;;  %4141 = vmatprep.subr.bf16.mxu1 %v7039_v31  ;;  %v6263_v20 = vpack.c.bf16 %v7043_v53, %v7042_v15  ;;  %v4280_v47 = vpack.c.bf16 %v6256_v52, %v6251_v38  ;;  %v7049_v15 = vld [vmem:[#allocation20_spill] sm:$0xff]  ;;  %v7050_v53 = vld [vmem:[#allocation21_spill] sm:$0xff]  ;;  %v7051_v42 = vld [vmem:[#allocation22_spill] sm:$0xff] }
 0x64e   :  { %7038 = vst [vmem:[#allocation8_spill] sm:$0xff] %v6245_v12  ;;  %4243 = vmatpush3.bf16.msra.mxu0 %v6225_v40  ;;  %v6272_v12 = vpack.c.bf16 %v7045_v13, %v7044_v14  ;;  %v6279_v7 = vpack.c.bf16 %v7048_v37, %v7047_v2  ;;  %v7053_v14 = vld [vmem:[#allocation77_spill] sm:$0xff]  ;;  %v7061_v2 = vld [vmem:[#allocation71_spill] sm:$0xff]  ;;  %v7062_v37 = vld [vmem:[#allocation24_spill] sm:$0xff] }
 0x64f   :  { %4245 = vmatprep.subr.bf16.mxu0 %v6232_v0  ;;  %v7052_v0 = vld [vmem:[#allocation23_spill] sm:$0xff]  ;;  %v7054_v13 = vand.u32 4294901760, %v7053_v14 }
 0x650   :  { %4143 = vmatpush3.bf16.msra.mxu1 %v7046_v5 }
 0x651   :  { %4145 = vmatprep.subr.bf16.mxu1 %v7049_v15 }
 0x652   :  { %4247 = vmatpush3.bf16.msra.mxu0 %v6263_v20 }
 0x653   :  { %4281 = vmatprep.subr.bf16.mxu0 %v4280_v47 }
 0x654   :  { %4147 = vmatpush3.bf16.msra.mxu1 %v7050_v53 }
 0x655   :  { %4149 = vmatprep.subr.bf16.mxu1 %v7051_v42 }
 0x658   :  { %4151 = vmatpush3.bf16.msra.mxu1 %v7052_v0 }
 0x659   :  { %4185 = vmatprep.subr.bf16.mxu1 %v6952_v46  ;;  %v2210_v46 = vand.u32 4294901760, %v6251_v38 }
 0x65b   :  { %1706 = vmatmul.mubr.f32.vlgmr.msra.gmra.mrb[20].mxu1 %v7054_v13  ;;  %v7064_v13 = vld [vmem:[#allocation74_spill] sm:$0xff] }
 0x65c   :  { %4187 = vmatpush3.bf16.msra.mxu1 %v6966_v27  ;;  %1976 = vmatprep.mubr.f32.mxu1 %v5799_v33  ;;  %v2217_v27 = vand.u32 4294901760, %v6256_v52  ;;  %v2211_v33 = vsub.f32 %v6251_v38, %v2210_v46 }
 0x65d   :  { %4189 = vmatprep.subr.bf16.mxu1 %v6971_v48 }
 0x660   :  { %4191 = vmatpush3.bf16.msra.mxu1 %v6985_v51  ;;  %v2218_v51 = vsub.f32 %v6256_v52, %v2217_v27 }
 0x661   :  { %4193 = vmatprep.subr.bf16.mxu1 %v6989_v43  ;;  %v7056_v43 = vld [vmem:[#allocation55_spill] sm:$0xff] }
 0x662   :  { %v2219_v48 = vand.u32 4294901760, %v2218_v51 }
 0x664   :  { %4195 = vmatpush3.bf16.msra.mxu1 %v7003_v4  ;;  %v7055_v4 = vld [vmem:[#allocation50_spill] sm:$0xff] }
 0x665   :  { %4197 = vmatprep.subr.bf16.mxu1 %v7007_v50  ;;  %v7057_v50 = vld [vmem:[#allocation58_spill] sm:$0xff] }
 0x668   :  { %4199 = vmatpush3.bf16.msra.mxu1 %v7020_v24  ;;  %v2212_v24 = vand.u32 4294901760, %v2211_v33  ;;  %v7065_v33 = vld [vmem:[#allocation81_spill] sm:$0xff] }
 0x669   :  { %4201 = vmatprep.subr.bf16.mxu1 %v7024_v21  ;;  %v7058_v21 = vld [vmem:[#allocation65_spill] sm:$0xff] }
 0x66c   :  { %4203 = vmatpush3.bf16.msra.mxu1 %v7035_v29  ;;  %v4248_v29 = vpack.c.bf16 %v2219_v48, %v2212_v24 }
 0x66d   :  { %4205 = vmatprep.subr.bf16.mxu1 %v7039_v31  ;;  %v7059_v31 = vld [vmem:[#allocation66_spill] sm:$0xff] }
 0x670   :  { %4207 = vmatpush3.bf16.msra.mxu1 %v7046_v5  ;;  %v7060_v5 = vld [vmem:[#allocation72_spill] sm:$0xff] }
 0x671   :  { %4209 = vmatprep.subr.bf16.mxu1 %v7049_v15 }
 0x674   :  { %4211 = vmatpush3.bf16.msra.mxu1 %v7050_v53  ;;  %v7063_v53 = vld [vmem:[#allocation78_spill] sm:$0xff] }
 0x675   :  { %4213 = vmatprep.subr.bf16.mxu1 %v7051_v42 }
 0x678   :  { %4215 = vmatpush3.bf16.msra.mxu1 %v7052_v0 }
 0x679   :  { %4249 = vmatprep.subr.bf16.mxu1 %v4248_v29 }
 0x67b   :  { %1978 = vmatmul.mubr.f32.vlgmr.msra.gmra.mrb[22].mxu1 %v5797_v22 }
 0x67c   :  { %4251 = vmatpush3.bf16.msra.mxu1 %v7055_v4  ;;  %v7066_v4 = vld [vmem:[#allocation82_spill] sm:$0xff] }
 0x67d   :  { %4253 = vmatprep.subr.bf16.mxu1 %v7056_v43 }
 0x680   :  { %4255 = vmatpush3.bf16.msra.mxu1 %v7057_v50 }
 0x681   :  { %4257 = vmatprep.subr.bf16.mxu1 %v7058_v21 }
 0x684   :  { %4259 = vmatpush3.bf16.msra.mxu1 %v7059_v31 }
 0x685   :  { %v6319_v47 = vpop.permute.xlu0 %1030  ;;  %4261 = vmatprep.subr.bf16.mxu1 %v7060_v5 }
 0x686   :  { %v1029_v42 = vpop.permute.xlu1 %1028 }
 0x687   :  { %v1034_v0 = vsel %vm358_vm9, %v7061_v2, %v1029_v42  ;;  %v1035_v22 = vsel %vm358_vm9, %v1029_v42, %v6319_v47  ;;  %v7067_v2 = vpack.c.bf16 %v5516_v57, %v5511_v49  ;;  %v7071_v49 = vld [vmem:[#allocation53_spill] sm:$0xff] }
 0x688   :  { %v1043_v15 = vmax.f32 %v7062_v37, %v1034_v0  ;;  %v1044_v14 = vmax.f32 %v7063_v53, %v1035_v22  ;;  %4263 = vmatpush3.bf16.msra.mxu1 %v7064_v13  ;;  %v7072_v57 = vpack.c.bf16 %v5641_v58, %v7071_v49  ;;  %v7082_v58 = vld [vmem:[#allocation27_spill] sm:$0xff]  ;;  %v7083_v0 = vld [vmem:[#allocation70_spill] sm:$0xff]  ;;  %v7085_v22 = vpack.c.bf16 %v5791_v35, %v5780_v19  ;;  %v7090_v53 = vld [vmem:[#allocation37_spill] sm:$0xff] }
 0x689   :  { %4265 = vmatprep.subr.bf16.mxu1 %v7065_v33  ;;  %v7086_v37 = vld [vmem:[#allocation31_spill] sm:$0xff]  ;;  %v7092_v35 = vpack.c.bf16 %v5897_v17, %v5892_v44  ;;  %v7093_v19 = vpack.c.bf16 %v5937_v41, %v5928_v63  ;;  %v7098_v17 = vld [vmem:[#allocation48_spill] sm:$0xff]  ;;  %v7099_v41 = vld [vmem:[#allocation25_spill] sm:$0xff] }
 0x68a   :  { %v6330_v51 = vand.u32 4294901760, %v1044_v14  ;;  %v6332_v24 = vand.u32 4294901760, %v1043_v15  ;;  %v7097_v44 = vld [vmem:[#allocation43_spill] sm:$0xff] }
 0x68b   :  { %v6414_v63 = vld [vmem:[#allocation2 + $0x200] sm:$0xff] }
 0x68c   :  { %v2080_v48 = vsub.f32 %v1044_v14, %v6330_v51  ;;  %v2086_v29 = vsub.f32 %v1043_v15, %v6332_v24  ;;  %4267 = vmatpush3.bf16.msra.mxu1 %v7066_v4  ;;  %2320 = vmatprep.mubr.f32.mxu1 %v6330_v51  ;;  %v7089_v15 = vpack.c.bf16 %v5879_v1, %v5858_v11  ;;  %v7096_v1 = vld [vmem:[#allocation42_spill] sm:$0xff]  ;;  %v2846_v38 = vand.u32 4294901760, %v6414_v63  ;;  %v7102_v14 = vld [vmem:[#allocation35_spill] sm:$0xff]  ;;  %v6449_v4 = vld [vmem:[#allocation2 + $0x228] sm:$0xff] }
 0x68d   :  { %4269 = vmatprep.subr.bf16.mxu1 %v5932_v10  ;;  %v7068_v10 = vpack.c.bf16 %v5565_v32, %v5546_v9  ;;  %v7073_v9 = vld [vmem:[#allocation56_spill] sm:$0xff]  ;;  %v7095_v11 = vpack.c.bf16 %v5948_v39, %v5942_v60 }
 0x68e   :  { %v2087_v43 = vand.u32 4294901760, %v2086_v29  ;;  %v2081_v50 = vand.u32 4294901760, %v2080_v48  ;;  %v7074_v32 = vpack.c.bf16 %v5674_v61, %v7073_v9  ;;  %v7084_v61 = vpack.c.bf16 %v5766_v30, %v7083_v0  ;;  %v7091_v30 = vld [vmem:[#allocation38_spill] sm:$0xff]  ;;  %v6417_v60 = vld [vmem:[#allocation2 + $0x208] sm:$0xff] }
 0x68f   :  { %v7100_v39 = vld [vmem:[#allocation28_spill] sm:$0xff]  ;;  %v2849_v52 = vand.u32 4294901760, %v6417_v60 }
 0x690   :  { %4271 = vmatpush3.bf16.msra.mxu1 %v5957_v3  ;;  %v2082_v21 = vsub.f32 %v2080_v48, %v2081_v50  ;;  %v2088_v31 = vsub.f32 %v2086_v29, %v2087_v43  ;;  %v7069_v3 = vpack.c.bf16 %v5589_v16, %v5580_v34  ;;  %v7075_v16 = vld [vmem:[#allocation46_spill] sm:$0xff]  ;;  %v7076_v34 = vld [vmem:[#allocation47_spill] sm:$0xff] }
 0x691   :  { %4273 = vmatprep.subr.bf16.mxu1 %v5994_v56  ;;  %v7079_v56 = vld [vmem:[#allocation67_spill] sm:$0xff] }
 0x692   :  { %v2083_v5 = vand.u32 4294901760, %v2082_v21  ;;  %v2089_v42 = vand.u32 4294901760, %v2088_v31 }
 0x694   :  { %4275 = vmatpush3.bf16.msra.mxu1 %v6001_v59  ;;  %2084 = vmatprep.mubr.f32.mxu0 %v2083_v5  ;;  %v7070_v59 = vpack.c.bf16 %v5625_v55, %v5612_v28  ;;  %v7077_v28 = vld [vmem:[#allocation59_spill] sm:$0xff] }
 0x695   :  { %2090 = vmatmul.mubr.f32.vlgmr.msra.gmra.mrb[12].mxu0 %v2089_v42  ;;  %4277 = vmatprep.subr.bf16.mxu1 %v6013_v25  ;;  %v7078_v55 = vpack.c.bf16 %v5689_v45, %v7077_v28  ;;  %v7080_v25 = vpack.c.bf16 %v5749_v23, %v7079_v56  ;;  %v7087_v45 = vld [vmem:[#allocation30_spill] sm:$0xff]  ;;  %v7088_v23 = vpack.c.bf16 %v5850_v6, %v5804_v54  ;;  %v7094_v6 = vld [vmem:[#allocation39_spill] sm:$0xff]  ;;  %v7105_v42 = vld [vmem:[#allocation33_spill] sm:$0xff] }
 0x696   :  { %4283 = vmatpush3.bf16.msra.mxu0 %v7067_v2  ;;  %2457 = vmatprep.mubr.f32.mxu0 %v2080_v48  ;;  %v4344_v54 = vpack.c.bf16 %v2217_v27, %v2210_v46  ;;  %v6426_v46 = vld [vmem:[#allocation2 + $0x210] sm:$0xff]  ;;  %v6428_v27 = vld [vmem:[#allocation2 + $0x218] sm:$0xff]  ;;  %v6446_v48 = vld [vmem:[#allocation2 + $0x220] sm:$0xff]  ;;  %v2861_v2 = vand.u32 4294901760, %v6449_v4 }
 0x697   :  { %4285 = vmatprep.subr.bf16.mxu0 %v7068_v10  ;;  %v2852_v13 = vand.u32 4294901760, %v6426_v46  ;;  %v2855_v33 = vand.u32 4294901760, %v6428_v27  ;;  %v2858_v5 = vand.u32 4294901760, %v6446_v48  ;;  %v7106_v10 = vld [vmem:[#allocation40_spill] sm:$0xff] }
 0x698   :  { %4279 = vmatpush3.bf16.msra.mxu1 %v6015_v18  ;;  %v7081_v18 = vld [vmem:[#allocation26_spill] sm:$0xff]  ;;  %v6492_v28 = vsub.f32 %v6449_v4, %v2861_v2 }
 0x699   :  { %4313 = vmatprep.subr.bf16.mxu1 %v6046_v26  ;;  %v6458_v21 = vsub.f32 %v6426_v46, %v2852_v13  ;;  %v6463_v31 = vsub.f32 %v6428_v27, %v2855_v33 }
 0x69a   :  { %4287 = vmatpush3.bf16.msra.mxu0 %v7069_v3  ;;  %v6469_v3 = vld [vmem:[#allocation2 + $0x230] sm:$0xff] }
 0x69b   :  { %2322 = vmatmul.mubr.f32.vlgmr.msra.gmra.mrb[24].mxu1 %v6332_v24  ;;  %4289 = vmatprep.subr.bf16.mxu0 %v7070_v59  ;;  %v6471_v59 = vld [vmem:[#allocation2 + $0x238] sm:$0xff]  ;;  %v2945_v9 = vand.u32 4294901760, %v6458_v21 }
 0x69c   :  { %4315 = vmatpush3.bf16.msra.mxu1 %v6059_v62  ;;  %2564 = vmatprep.mubr.f32.mxu1 %v2081_v50  ;;  %v2867_v56 = vand.u32 4294901760, %v6471_v59 }
 0x69d   :  { %4317 = vmatprep.subr.bf16.mxu1 %v6066_v36  ;;  %v2946_v0 = vsub.f32 %v6458_v21, %v2945_v9 }
 0x69e   :  { %4291 = vmatpush3.bf16.msra.mxu0 %v7072_v57 }
 0x69f   :  { %4293 = vmatprep.subr.bf16.mxu0 %v7074_v32  ;;  %v2952_v32 = vand.u32 4294901760, %v6463_v31 }
 0x6a0   :  { %4319 = vmatpush3.bf16.msra.mxu1 %v7075_v16 }
 0x6a1   :  { %4321 = vmatprep.subr.bf16.mxu1 %v7076_v34 }
 0x6a2   :  { %4295 = vmatpush3.bf16.msra.mxu0 %v7078_v55  ;;  %v2864_v55 = vand.u32 4294901760, %v6469_v3 }
 0x6a3   :  { %4297 = vmatprep.subr.bf16.mxu0 %v7080_v25  ;;  %v7108_v25 = vld [vmem:[#allocation34_spill] sm:$0xff] }
 0x6a4   :  { %4323 = vmatpush3.bf16.msra.mxu1 %v7081_v18  ;;  %v6586_v46 = vpack.c.bf16 %v2867_v56, %v2864_v55 }
 0x6a5   :  { %4325 = vmatprep.subr.bf16.mxu1 %v7082_v58 }
 0x6a6   :  { %4299 = vmatpush3.bf16.msra.mxu0 %v7084_v61  ;;  %v2953_v61 = vsub.f32 %v6463_v31, %v2952_v32 }
 0x6a7   :  { %4301 = vmatprep.subr.bf16.mxu0 %v7085_v22 }
 0x6a8   :  { %4327 = vmatpush3.bf16.msra.mxu1 %v7086_v37 }
 0x6a9   :  { %4329 = vmatprep.subr.bf16.mxu1 %v7087_v45 }
 0x6aa   :  { %4303 = vmatpush3.bf16.msra.mxu0 %v7088_v23  ;;  %v6511_v23 = vsub.f32 %v6469_v3, %v2864_v55 }
 0x6ab   :  { %4305 = vmatprep.subr.bf16.mxu0 %v7089_v15  ;;  %v6516_v15 = vsub.f32 %v6471_v59, %v2867_v56 }
 0x6ac   :  { %4331 = vmatpush3.bf16.msra.mxu1 %v7090_v53 }
 0x6ad   :  { %4333 = vmatprep.subr.bf16.mxu1 %v7091_v30  ;;  %v4442_v3 = vpack.c.bf16 %v6516_v15, %v6511_v23 }
 0x6ae   :  { %4307 = vmatpush3.bf16.msra.mxu0 %v7092_v35  ;;  %v2954_v35 = vand.u32 4294901760, %v2953_v61 }
 0x6af   :  { %4309 = vmatprep.subr.bf16.mxu0 %v7093_v19 }
 0x6b0   :  { %4335 = vmatpush3.bf16.msra.mxu1 %v7094_v6 }
 0x6b1   :  { %4337 = vmatprep.subr.bf16.mxu1 %v6204_v8 }
 0x6b2   :  { %4311 = vmatpush3.bf16.msra.mxu0 %v7095_v11 }
 0x6b3   :  { %4345 = vmatprep.subr.bf16.mxu0 %v4344_v54  ;;  %v7110_v54 = vld [vmem:[#allocation76_spill] sm:$0xff] }
 0x6b4   :  { %4339 = vmatpush3.bf16.msra.mxu1 %v6225_v40  ;;  %v1045_v11 = vmax.f32 %v7110_v54, %v6319_v47 }
 0x6b5   :  { %2460 = vmatmul.mubr.f32.vlgmr.msra.gmra.mrb[14].mxu0 %v2086_v29  ;;  %4341 = vmatprep.subr.bf16.mxu1 %v7096_v1  ;;  %v7104_v29 = vld [vmem:[#allocation32_spill] sm:$0xff] }
 0x6b6   :  { %4347 = vmatpush3.bf16.msra.mxu0 %v7097_v44  ;;  %2734 = vmatprep.mubr.f32.mxu0 %v6330_v51  ;;  %v4668_v44 = vmov 0.0|0.0  }
 0x6b7   :  { %4349 = vmatprep.subr.bf16.mxu0 %v7098_v17 }
 0x6b8   :  { %4343 = vmatpush3.bf16.msra.mxu1 %v6263_v20 }
 0x6b9   :  { %4377 = vmatprep.subr.bf16.mxu1 %v6046_v26  ;;  %v7101_v26 = vld [vmem:[#allocation29_spill] sm:$0xff] }
 0x6ba   :  { %4351 = vmatpush3.bf16.msra.mxu0 %v7099_v41 }
 0x6bb   :  { %2568 = vmatmul.mubr.f32.vlgmr.msra.gmra.mrb[26].mxu1 %v2087_v43  ;;  %4353 = vmatprep.subr.bf16.mxu0 %v7100_v39 }
 0x6bc   :  { %4379 = vmatpush3.bf16.msra.mxu1 %v6059_v62  ;;  %2838 = vmatprep.mubr.f32.mxu1 %v6330_v51  ;;  %v6435_v62 = vsub.f32 %v6414_v63, %v2846_v38  ;;  %v7103_v51 = vld [vmem:[#allocation36_spill] sm:$0xff] }
 0x6bd   :  { %4381 = vmatprep.subr.bf16.mxu1 %v6066_v36  ;;  %v6441_v36 = vsub.f32 %v6417_v60, %v2849_v52 }
 0x6be   :  { %4355 = vmatpush3.bf16.msra.mxu0 %v7101_v26  ;;  %v2931_v43 = vand.u32 4294901760, %v6435_v62 }
 0x6bf   :  { %4357 = vmatprep.subr.bf16.mxu0 %v7102_v14  ;;  %v2938_v50 = vand.u32 4294901760, %v6441_v36  ;;  %v7111_v14 = vmov 0.0  }
 0x6c0   :  { %4383 = vmatpush3.bf16.msra.mxu1 %v7075_v16  ;;  %v2932_v49 = vsub.f32 %v6435_v62, %v2931_v43  ;;  %v6486_v16 = vsub.f32 %v6446_v48, %v2858_v5 }
 0x6c1   :  { %4385 = vmatprep.subr.bf16.mxu1 %v7076_v34  ;;  %v2939_v57 = vsub.f32 %v6441_v36, %v2938_v50  ;;  %v7107_v34 = vld [vmem:[#allocation41_spill] sm:$0xff] }
 0x6c2   :  { %4359 = vmatpush3.bf16.msra.mxu0 %v7103_v51  ;;  %v2959_v22 = vand.u32 4294901760, %v6486_v16 }
 0x6c3   :  { %4361 = vmatprep.subr.bf16.mxu0 %v7104_v29 }
 0x6c4   :  { %4387 = vmatpush3.bf16.msra.mxu1 %v7081_v18  ;;  %v2933_v18 = vand.u32 4294901760, %v2932_v49  ;;  %v2960_v19 = vsub.f32 %v6486_v16, %v2959_v22 }
 0x6c5   :  { %4389 = vmatprep.subr.bf16.mxu1 %v7082_v58  ;;  %v2940_v58 = vand.u32 4294901760, %v2939_v57  ;;  %v4457_v57 = vpack.c.bf16 %v2938_v50, %v2931_v43 }
 0x6c6   :  { %4363 = vmatpush3.bf16.msra.mxu0 %v7105_v42  ;;  %v2961_v17 = vand.u32 4294901760, %v2960_v19 }
 0x6c7   :  { %4365 = vmatprep.subr.bf16.mxu0 %v7106_v10 }
 0x6c8   :  { %4391 = vmatpush3.bf16.msra.mxu1 %v7086_v37  ;;  %v7109_v37 = vld [vmem:[#allocation8_spill] sm:$0xff] }
 0x6c9   :  { %4393 = vmatprep.subr.bf16.mxu1 %v7087_v45  ;;  %v2966_v45 = vand.u32 4294901760, %v6492_v28 }
 0x6ca   :  { %4367 = vmatpush3.bf16.msra.mxu0 %v7107_v34  ;;  %v4460_v34 = vpack.c.bf16 %v2952_v32, %v2945_v9 }
 0x6cb   :  { %4369 = vmatprep.subr.bf16.mxu0 %v7108_v25 }
 0x6cc   :  { %4395 = vmatpush3.bf16.msra.mxu1 %v7090_v53  ;;  %v4421_v53 = vpack.c.bf16 %v2940_v58, %v2933_v18 }
 0x6cd   :  { %4397 = vmatprep.subr.bf16.mxu1 %v7091_v30  ;;  %v2947_v30 = vand.u32 4294901760, %v2946_v0 }
 0x6ce   :  { %4371 = vmatpush3.bf16.msra.mxu0 %v7109_v37 }
 0x6cf   :  { %4373 = vmatprep.subr.bf16.mxu0 %v6272_v12  ;;  %v2967_v12 = vsub.f32 %v6492_v28, %v2966_v45  ;;  %v4424_v47 = vpack.c.bf16 %v2954_v35, %v2947_v30 }
 0x6d0   :  { %4399 = vmatpush3.bf16.msra.mxu1 %v7094_v6  ;;  %v2973_v6 = vand.u32 4294901760, %v6511_v23 }
 0x6d1   :  { %4401 = vmatprep.subr.bf16.mxu1 %v6204_v8  ;;  %v2980_v8 = vand.u32 4294901760, %v6516_v15  ;;  %v2968_v41 = vand.u32 4294901760, %v2967_v12 }
 0x6d2   :  { %4375 = vmatpush3.bf16.msra.mxu0 %v6279_v7  ;;  %v1119_v7 = vsel %vm696_vm4, %v1045_v11, 0  ;;  %v2974_v39 = vsub.f32 %v6511_v23, %v2973_v6 }
 0x6d3   :  { %4420 = vmatprep.subr.bf16.mxu0 %v4668_v44  ;;  %v2981_v26 = vsub.f32 %v6516_v15, %v2980_v8  ;;  %v4427_v51 = vpack.c.bf16 %v2968_v41, %v2961_v17  ;;  %v4466_v50 = vpack.c.bf16 %v2980_v8, %v2973_v6 }
 0x6d4   :  { %4403 = vmatpush3.bf16.msra.mxu1 %v6225_v40  ;;  %v6551_v40 = vpack.c.bf16 %v2849_v52, %v2846_v38  ;;  %v2975_v29 = vand.u32 4294901760, %v2974_v39  ;;  %v4433_v52 = vpack.c.bf16 %v6441_v36, %v6435_v62  ;;  %v4463_v36 = vpack.c.bf16 %v2966_v45, %v2959_v22 }
 0x6d5   :  { %2736 = vmatmul.mubr.f32.vlgmr.msra.gmra.mrb[16].mxu0 %v6332_v24  ;;  %4405 = vmatprep.subr.bf16.mxu1 %v7096_v1  ;;  %v6553_v1 = vand.u32 4294901760, %v1119_v7  ;;  %v2982_v42 = vand.u32 4294901760, %v2981_v26 }
 0x6d6   :  { %4422 = vmatpush3.bf16.msra.mxu0 %v4421_v53  ;;  %3945 = vmatprep.mubr.msk.f32.mxu0 %vm4667_vm2, %v7111_v14 }
 0x6d7   :  { %4423 = vmatprep.subr.bf16.mxu0 %v4668_v44  ;;  %v2919_v63 = vsub.f32 %v1119_v7, %v6553_v1  ;;  %v4430_v60 = vpack.c.bf16 %v2982_v42, %v2975_v29 }
 0x6d8   :  { %4407 = vmatpush3.bf16.msra.mxu1 %v6263_v20  ;;  %v6563_v20 = vpack.c.bf16 %v2855_v33, %v2852_v13  ;;  %v4436_v13 = vpack.c.bf16 %v6463_v31, %v6458_v21 }
 0x6d9   :  { %4408 = vmatprep.subr.bf16.mxu1 %v4668_v44  ;;  %v2920_v38 = vand.u32 4294901760, %v2919_v63 }
 0x6da   :  { %4425 = vmatpush3.bf16.msra.mxu0 %v4424_v47 }
 0x6db   :  { %2840 = vmatmul.mubr.f32.vlgmr.msra.gmra.mrb[28].mxu1 %v6332_v24  ;;  %4426 = vmatprep.subr.bf16.mxu0 %v4668_v44  ;;  %v6575_v24 = vpack.c.bf16 %v2861_v2, %v2858_v5  ;;  %v2921_v27 = vsub.f32 %v2919_v63, %v2920_v38  ;;  %v4439_v2 = vpack.c.bf16 %v6492_v28, %v6486_v16 }
 0x6dc   :  { %4410 = vmatpush3.bf16.msra.mxu1 %v6551_v40  ;;  %3926 = vmatprep.mubr.msk.f32.mxu1 %vm4667_vm2, %v7111_v14 }
 0x6dd   :  { %4411 = vmatprep.subr.bf16.mxu1 %v4668_v44  ;;  %v2922_v4 = vand.u32 4294901760, %v2921_v27 }
 0x6de   :  { %4428 = vmatpush3.bf16.msra.mxu0 %v4427_v51 }
 0x6df   :  { %4429 = vmatprep.subr.bf16.mxu0 %v4668_v44 }
 0x6e0   :  { %4413 = vmatpush3.bf16.msra.mxu1 %v6563_v20 }
 0x6e1   :  { %4414 = vmatprep.subr.bf16.mxu1 %v4668_v44 }
 0x6e2   :  { %4431 = vmatpush3.bf16.msra.mxu0 %v4430_v60 }
 0x6e3   :  { %4432 = vmatprep.subr.bf16.mxu0 %v4668_v44 }
 0x6e4   :  { %4416 = vmatpush3.bf16.msra.mxu1 %v6575_v24 }
 0x6e5   :  { %3946 = vmatmul.mubr.f32.vlgmr.msra.gmra.mrb[18].mxu0 %v6553_v1  ;;  %4417 = vmatprep.subr.bf16.mxu1 %v4668_v44 }
 0x6e6   :  { %4434 = vmatpush3.bf16.msra.mxu0 %v4433_v52  ;;  %3964 = vmatprep.mubr.msk.f32.mxu0 %vm4667_vm2, %v7111_v14 }
 0x6e7   :  { %4435 = vmatprep.subr.bf16.mxu0 %v4668_v44 }
 0x6e8   :  { %4419 = vmatpush3.bf16.msra.mxu1 %v6586_v46  ;;  %v3518_v33 = vpop.f32.mrb[8].mxu0 }
 0x6e9   :  { %v3519_v48 = vpop.f32.mrb[9].mxu0 }
 0x6ea   :  { %v3520_v5 = vadd.f32 %v3519_v48, %v3518_v33  ;;  %4437 = vmatpush3.bf16.msra.mxu0 %v4436_v13 }
 0x6eb   :  { %3927 = vmatmul.mubr.f32.vlgmr.msra.gmra.mrb[30].mxu1 %v2922_v4  ;;  %4438 = vmatprep.subr.bf16.mxu0 %v4668_v44 }
 0x6ee   :  { %4440 = vmatpush3.bf16.msra.mxu0 %v4439_v2  ;;  %v3448_v10 = vpop.f32.mrb[16].mxu1 }
 0x6ef   :  { %v3449_v59 = vpop.f32.mrb[17].mxu1  ;;  %4441 = vmatprep.subr.bf16.mxu0 %v4668_v44 }
 0x6f0   :  { %v3450_v49 = vadd.f32 %v3449_v59, %v3448_v10 }
 0x6f2   :  { %4443 = vmatpush3.bf16.msra.mxu0 %v4442_v3 }
 0x6f3   :  { %4444 = vmatprep.subr.bf16.mxu0 %v4668_v44 }
 0x6f5   :  { %3965 = vmatmul.mubr.f32.vlgmr.msra.gmra.mrb[18].mxu0 %v2919_v63 }
 0x6f6   :  { %4446 = vmatpush3.bf16.msra.mxu0 %v6551_v40  ;;  %3983 = vmatprep.mubr.msk.f32.mxu0 %vm4667_vm2, %v7111_v14 }
 0x6f7   :  { %4447 = vmatprep.subr.bf16.mxu0 %v4668_v44 }
 0x6fa   :  { %4449 = vmatpush3.bf16.msra.mxu0 %v6563_v20 }
 0x6fb   :  { %4450 = vmatprep.subr.bf16.mxu0 %v4668_v44 }
 0x6fe   :  { %4452 = vmatpush3.bf16.msra.mxu0 %v6575_v24 }
 0x6ff   :  { %4453 = vmatprep.subr.bf16.mxu0 %v4668_v44 }
 0x702   :  { %4455 = vmatpush3.bf16.msra.mxu0 %v6586_v46 }
 0x703   :  { %4456 = vmatprep.subr.bf16.mxu0 %v4668_v44 }
 0x705   :  { %3984 = vmatmul.mubr.f32.vlgmr.msra.gmra.mrb[18].mxu0 %v2920_v38 }
 0x706   :  { %4458 = vmatpush3.bf16.msra.mxu0 %v4457_v57  ;;  %4002 = vmatprep.mubr.msk.f32.mxu0 %vm4667_vm2, %v7111_v14 }
 0x707   :  { %4459 = vmatprep.subr.bf16.mxu0 %v4668_v44 }
 0x708   :  { %v3588_v55 = vpop.f32.mrb[10].mxu0 }
 0x709   :  { %v3589_v56 = vpop.f32.mrb[11].mxu0 }
 0x70a   :  { %v3590_v62 = vadd.f32 %v3589_v56, %v3588_v55  ;;  %4461 = vmatpush3.bf16.msra.mxu0 %v4460_v34 }
 0x70b   :  { %4462 = vmatprep.subr.bf16.mxu0 %v4668_v44 }
 0x70e   :  { %v3483_v43 = vpop.f32.mrb[18].mxu1  ;;  %4464 = vmatpush3.bf16.msra.mxu0 %v4463_v36 }
 0x70f   :  { %v3484_v21 = vpop.f32.mrb[19].mxu1  ;;  %4465 = vmatprep.subr.bf16.mxu0 %v4668_v44 }
 0x710   :  { %v3485_v31 = vadd.f32 %v3484_v21, %v3483_v43 }
 0x712   :  { %v1462_v9 = vadd.f32 %v3485_v31, %v3450_v49  ;;  %4467 = vmatpush3.bf16.msra.mxu0 %v4466_v50 }
 0x713   :  { %4468 = vmatprep.subr.bf16.mxu0 %v4668_v44 }
 0x714   :  { %v1600_v32 = vadd.f32 %v3520_v5, %v1462_v9 }
 0x715   :  { %4003 = vmatmul.mubr.f32.vlgmr.msra.gmra.mrb[18].mxu0 %v6553_v1 }
 0x716   :  { %4470 = vmatpush3.bf16.msra.mxu0 %v6551_v40  ;;  %4021 = vmatprep.mubr.msk.f32.mxu0 %vm4667_vm2, %v7111_v14 }
 0x717   :  { %4471 = vmatprep.subr.bf16.mxu0 %v4668_v44 }
 0x71a   :  { %4473 = vmatpush3.bf16.msra.mxu0 %v6563_v20 }
 0x71b   :  { %4474 = vmatprep.subr.bf16.mxu0 %v4668_v44 }
 0x71e   :  { %4476 = vmatpush3.bf16.msra.mxu0 %v6575_v24 }
 0x71f   :  { %4477 = vmatprep.subr.bf16.mxu0 %v4668_v44 }
 0x722   :  { %4479 = vmatpush3.bf16.msra.mxu0 %v6586_v46 }
 0x725   :  { %4022 = vmatmul.mubr.f32.vlgmr.msra.gmra.mrb[18].mxu0 %v6553_v1 }
 0x72e   :  { %v3553_v16 = vpop.f32.mrb[20].mxu1 }
 0x72f   :  { %v3554_v28 = vpop.f32.mrb[21].mxu1 }
 0x730   :  { %v3555_v25 = vadd.f32 %v3554_v28, %v3553_v16 }
 0x732   :  { %v1708_v18 = vadd.f32 %v3555_v25, %v1600_v32 }
 0x734   :  { %v1876_v58 = vadd.f32 %v3590_v62, %v1708_v18 }
 0x74e   :  { %v3623_v0 = vpop.f32.mrb[22].mxu1 }
 0x74f   :  { %v3624_v61 = vpop.f32.mrb[23].mxu1 }
 0x750   :  { %v3625_v22 = vadd.f32 %v3624_v61, %v3623_v0 }
 0x752   :  { %v1980_v37 = vadd.f32 %v3625_v22, %v1876_v58 }
 0x768   :  { %v3658_v45 = vpop.f32.mrb[12].mxu0 }
 0x769   :  { %v3659_v23 = vpop.f32.mrb[13].mxu0 }
 0x76a   :  { %v3660_v15 = vadd.f32 %v3659_v23, %v3658_v45 }
 0x76c   :  { %v2092_v53 = vadd.f32 %v3660_v15, %v1980_v37 }
 0x76e   :  { %v3693_v30 = vpop.f32.mrb[24].mxu1 }
 0x76f   :  { %v3694_v35 = vpop.f32.mrb[25].mxu1 }
 0x770   :  { %v3695_v19 = vadd.f32 %v3694_v35, %v3693_v30 }
 0x772   :  { %v2324_v54 = vadd.f32 %v3695_v19, %v2092_v53 }
 0x788   :  { %v3728_v11 = vpop.f32.mrb[14].mxu0 }
 0x789   :  { %v3729_v12 = vpop.f32.mrb[15].mxu0 }
 0x78a   :  { %v3730_v6 = vadd.f32 %v3729_v12, %v3728_v11 }
 0x78c   :  { %v2462_v8 = vadd.f32 %v3730_v6, %v2324_v54 }
 0x78e   :  { %v3763_v44 = vpop.f32.mrb[26].mxu1 }
 0x78f   :  { %v3764_v47 = vpop.f32.mrb[27].mxu1 }
 0x790   :  { %v3765_v17 = vadd.f32 %v3764_v47, %v3763_v44 }
 0x792   :  { %v2570_v7 = vadd.f32 %v3765_v17, %v2462_v8 }
 0x7a8   :  { %v3798_v41 = vpop.f32.mrb[16].mxu0 }
 0x7a9   :  { %v3799_v39 = vpop.f32.mrb[17].mxu0 }
 0x7aa   :  { %v3800_v26 = vadd.f32 %v3799_v39, %v3798_v41 }
 0x7ac   :  { %v2738_v14 = vadd.f32 %v3800_v26, %v2570_v7 }
 0x7ae   :  { %v3833_v40 = vpop.f32.mrb[28].mxu1 }
 0x7af   :  { %v3834_v1 = vpop.f32.mrb[29].mxu1 }
 0x7b0   :  { %v3835_v51 = vadd.f32 %v3834_v1, %v3833_v40 }
 0x7b2   :  { %v2842_v29 = vadd.f32 %v3835_v51, %v2738_v14 }
 0x7be   :  { %v2924_v42 = vpop.f32.mrb[30].mxu1 }
 0x7bf   :  { %v2925_v20 = vadd.f32 %v2924_v42, %v2842_v29  ;;  %v3928_v63 = vpop.f32.mrb[31].mxu1 }
 0x7f8   :  { %v3378_v60 = vpop.f32.mrb[18].mxu0 }
 0x7f9   :  { %v4481_v24 = vadd.f32 %v3378_v60, %v2925_v20  ;;  %v4023_v38 = vpop.f32.mrb[19].mxu0 }
 0x7fb   :  { %3382 = vst [vmem:[#allocation5] sm:$0xff] %v4481_v24 }
 0x7fc   :  { %4632 = shalt.err (!%p4629_p12)
}
 0x7fd   :  { %s4633_s21 = scalar_lea.hbm %s6671_s13, 128 }
 0x7fe   :  { %p4634_p13 = scmp.ne.s32.totalorder %s6671_s13, %s4633_s21  ;;  %p4637_p0 = scmp.lt.u32.totalorder %s4633_s21, %s6671_s13 }
 0x800   :  { %p4639_p1 = pnand %p4637_p0, %p4634_p13 }
 0x802   :  { %4642 = shalt.err (!%p4639_p1)
}
 0x803   :  { %3392 = dma.vmem_to_hbm [thread:$0]  %s3390_s2, 128, %s6671_s13, [#allocation4]  }
 0x804   :  { %4645 = dma.done.wait [#allocation4], 128  }
 0x805   :  { %4646 = vsyncadd [#allocation4], 4294967168 }
 0x806   :  { %3396 = vsyncpa [#allocation3], 1 }
 0x807   :  { %3397 = vsyncpa [#allocation4], 1 }

</bundles_post_ra>
